<compile_context>
chip_gen: v7x
topology: tpu7x:2x2x1
jax: 0.10.0
libtpu: 0.0.40
codegen_flags: <defaults>
</compile_context>

<pallas_src>
import numpy as np
import jax
import jax.numpy as jnp
from jax import lax
from jax.experimental import pallas as pl
from jax.experimental.pallas import tpu as pltpu


# --------------------------------------------------------------------------
# Host-side structured-operator assembly (index plumbing only, O(1) in batch)
# --------------------------------------------------------------------------
def _build_scatter(H, w_in, w_out, K, offset_fn):
    """Per-batch width-scatter matrices turning a 1xk ConvTranspose2d's width
    placement into a matmul in the per-batch (C, H*w) layout.  Block-diagonal
    over H only -> memory/flops independent of batch size."""
    s = np.zeros((K, H * w_in, H * w_out), np.float32)
    for k in range(K):
        for h in range(H):
            for wi in range(w_in):
                ow = offset_fn(wi, k)
                if 0 <= ow < w_out:
                    s[k, h * w_in + wi, h * w_out + ow] = 1.0
    return jnp.asarray(s)


def _pack_conv(conv):
    """Stack the K conv taps into one (K*Cout, Cin) channel-mix matrix and pack
    (conv bias, bn gamma, bn beta) into a (3, Cout, 1) affine block."""
    taps = conv['taps']                                  # (K, Cout, Cin)
    K, cout, cin = taps.shape
    w = taps.reshape(K * cout, cin)
    aff = jnp.stack([conv['bias'], conv['bn_g'], conv['bn_b']])   # (3, Cout, 1)
    return w, aff


def init_params(key, c_in, c_out, feat):
    ks = iter(jax.random.split(key, 32))

    def rnd(shape, scale=0.2):
        return (scale * jax.random.normal(next(ks), shape)).astype(jnp.float32)

    def conv_t(cin, cout, kw):
        w = rnd((cin, cout, 1, kw))                      # ConvTranspose2d weight layout
        taps = jnp.transpose(w[:, :, 0, :], (2, 1, 0))   # (K, Cout, Cin)
        return dict(taps=taps, bias=rnd((cout, 1), 0.1),
                    bn_g=1.0 + rnd((cout, 1), 0.1), bn_b=rnd((cout, 1), 0.1))

    c8 = max(c_in // 8, 1)
    return dict(
        # selfattentiont1_MGCD (only t1 is used in forward)
        wq=rnd((c8, c_in)), bq=rnd((c8, 1), 0.1),
        wk=rnd((c8, c_in)), bk=rnd((c8, 1), 0.1),
        wv=rnd((c_in, c_in)), bv=rnd((c_in, 1), 0.1),
        gamma=jnp.full((1, 1), 0.1, jnp.float32),
        down=conv_t(c_in, c_out, 2),    # tcnn2ddown_MGCD
        up=conv_t(c_out, c_out, 3),     # cnn2dup_MGCD
        res=conv_t(c_in, c_out, 2),     # cnn2dRes_MGCD
        up1=conv_t(c_out, c_out, 3),    # cnn2dup1_MGCD
        fc1_wT=rnd((feat, feat)), fc1_b=rnd((1, feat), 0.1),   # fcD11_MGCD
        fc2_wT=rnd((feat, feat)), fc2_b=rnd((1, feat), 0.1),   # fcD12_MGCD
        fc3_wT=rnd((feat, feat)), fc3_b=rnd((1, feat), 0.1),   # fcD13_MGCD
    )


# --------------------------------------------------------------------------
# Fused forward
# --------------------------------------------------------------------------
@jax.jit
def mgcd_forward(p, mgce_out, x, ac0, ad0, aw0):
    B, c_in, H, W = x.shape
    N = H * W
    feat = 2 * W
    assert feat == W + 2, "residual add in MGCD requires 2*W == W + 2 (W == 2)"
    HF = H * feat
    c_out = p['down']['bias'].shape[0]
    Kd, Ku, Kr = 2, 3, 2
    eps = 1e-5

    # ---- host side: free reshapes and tiny constant/operator assembly only ----
    x3 = x.reshape(B, c_in, N)                  # row-major (h, w) flatten, no transpose
    m3 = mgce_out.reshape(B, c_in, N)

    dwn_w, dwn_a = _pack_conv(p['down'])
    up_w, up_a = _pack_conv(p['up'])
    res_w, res_a = _pack_conv(p['res'])
    up1_w, up1_a = _pack_conv(p['up1'])

    s_down = _build_scatter(H, W, feat, Kd, lambda wi, k: 2 * wi + k)    # stride (1,2)
    s_up = _build_scatter(H, feat, feat, Ku, lambda wi, k: wi - 1 + k)   # pad (0,1)
    s_res = _build_scatter(H, W, feat, Kr, lambda wi, k: wi + 2 * k)     # dilation (1,2)

    # Graph + fc step as one flat operator per batch (exact algebraic rewrite):
    #   fc_i(A_i[b] @ X[b, c]) over all channels == X_flat[b] @ kron(A_i[b]^T, W_i^T)
    # summed over the three branches, plus tile(sum_i b_i, H).
    def kron_op(a, w_t):                        # a: (B, H, H), w_t == W^T: (F, F)
        return jnp.einsum('bhp,qf->bpqhf', a, w_t).reshape(B, HF, HF)

    g_op = (kron_op(ac0, p['fc1_wT']) + kron_op(ad0, p['fc2_wT'])
            + kron_op(aw0, p['fc3_wT']))                          # (B, HF, HF)
    g_bias = jnp.tile(p['fc1_b'] + p['fc2_b'] + p['fc3_b'], (1, H))   # (1, HF)

    # ---- the single fused kernel: all intermediates live in VMEM ----
    def kernel(x_ref, m_ref, wq_ref, bq_ref, wk_ref, bk_ref, wv_ref, bv_ref,
               gamma_ref, dwn_w_ref, dwn_s_ref, dwn_a_ref, gop_ref, gb_ref,
               up_w_ref, up_s_ref, up_a_ref, res_w_ref, res_s_ref, res_a_ref,
               up1_w_ref, up1_a_ref, o_ref):
        gamma = gamma_ref[0, 0]

        def self_attention(z):                               # z: (C_in, N)
            q = jnp.dot(wq_ref[...], z, preferred_element_type=jnp.float32) + bq_ref[...]
            k = jnp.dot(wk_ref[...], z, preferred_element_type=jnp.float32) + bk_ref[...]
            v = jnp.dot(wv_ref[...], z, preferred_element_type=jnp.float32) + bv_ref[...]
            # attn[n, n'] = sum_c q[c, n] * k[c, n']  (== q^T @ k)
            s = lax.dot_general(q, k, (((0,), (0,)), ((), ())),
                                preferred_element_type=jnp.float32)       # (N, N)
            s = s - jnp.max(s, axis=-1, keepdims=True)
            e = jnp.exp(s)
            attn = e * pl.reciprocal(jnp.sum(e, axis=-1, keepdims=True), approx=True)
            # out[c, m] = sum_n v[c, n] * attn[m, n]  (== v @ attn^T)
            out = lax.dot_general(v, attn, (((1,), (1,)), ((), ())),
                                  preferred_element_type=jnp.float32)     # (C_in, N)
            return gamma * out + z

        # --- X = selfattention_t1(X) * sigmoid(selfattention_t1(MGCE_out)) ---
        # per-batch pieces (static unroll, B is small); everything stays on-chip
        x0 = [self_attention(x_ref[b]) * jax.nn.sigmoid(self_attention(m_ref[b]))
              for b in range(B)]                              # each (C_in, N)

        # --- 1xk ConvTranspose2d + training-mode BatchNorm2d + ReLU ---
        def conv_bn_relu(pieces, w_ref, s_ref, a_ref, K, m_out):
            pre = []
            for b in range(B):
                # one stacked channel-mix matmul for all K taps
                mix = jnp.dot(w_ref[...], pieces[b],
                              preferred_element_type=jnp.float32)   # (K*Cout, m_in)
                acc = jnp.dot(mix[0:c_out], s_ref[0],
                              preferred_element_type=jnp.float32)   # (Cout, m_out)
                for k in range(1, K):
                    acc = acc + jnp.dot(mix[k * c_out:(k + 1) * c_out], s_ref[k],
                                        preferred_element_type=jnp.float32)
                pre.append(acc + a_ref[0])                          # + conv bias
            # batch statistics over every (b, h, w) column, per output channel
            n = float(B * m_out)
            mean = sum(jnp.sum(t, axis=1, keepdims=True) for t in pre) / n
            var = sum(jnp.sum(jnp.square(t - mean), axis=1, keepdims=True)
                      for t in pre) / n                             # biased variance
            inv = lax.rsqrt(var + eps) * a_ref[1]                   # fold bn gamma
            return [jnp.maximum((t - mean) * inv + a_ref[2], 0.0) for t in pre]

        # --- tcnn2ddown_MGCD ---
        xd = conv_bn_relu(x0, dwn_w_ref, dwn_s_ref, dwn_a_ref, Kd, HF)   # (Cout, HF) x B

        # --- fcD11(AC@X) + fcD12(AD@X) + fcD13(AW@X): one matmul per batch ---
        xg = [jnp.dot(xd[b], gop_ref[b], preferred_element_type=jnp.float32)
              + gb_ref[...] for b in range(B)]

        # --- cnn2dup_MGCD and cnn2dRes_MGCD ---
        xu = conv_bn_relu(xg, up_w_ref, up_s_ref, up_a_ref, Ku, HF)
        xr = conv_bn_relu(x0, res_w_ref, res_s_ref, res_a_ref, Kr, HF)

        # --- X = relu(up + res); cnn2dup1_MGCD ---
        x1 = [jnp.maximum(xu[b] + xr[b], 0.0) for b in range(B)]
        xf = conv_bn_relu(x1, up1_w_ref, up_s_ref, up1_a_ref, Ku, HF)

        for b in range(B):
            o_ref[b] = xf[b]                                  # (Cout, HF) per batch

    vmem = pl.BlockSpec(memory_space=pltpu.MemorySpace.VMEM)
    smem = pl.BlockSpec(memory_space=pltpu.MemorySpace.SMEM)

    out = pl.pallas_call(
        kernel,
        out_shape=jax.ShapeDtypeStruct((B, c_out, HF), jnp.float32),
        in_specs=[vmem] * 8 + [smem] + [vmem] * 13,
        out_specs=vmem,
    )(x3, m3, p['wq'], p['bq'], p['wk'], p['bk'], p['wv'], p['bv'], p['gamma'],
      dwn_w, s_down, dwn_a, g_op, g_bias,
      up_w, s_up, up_a, res_w, s_res, res_a, up1_w, up1_a)

    # free reshape only; no host transpose
    return out.reshape(B, c_out, H, feat)


# --------------------------------------------------------------------------
if __name__ == "__main__":
    B, C_IN, C_OUT, H, W = 2, 16, 8, 16, 2
    FEAT = 2 * W                     # feature_num of the nn.Linear layers

    key = jax.random.PRNGKey(0)
    k1, k2, k3, k4, k5, kp = jax.random.split(key, 6)
    X = jax.random.normal(k1, (B, C_IN, H, W), jnp.float32)
    MGCE_out = jax.random.normal(k2, (B, C_IN, H, W), jnp.float32)
    AC0 = 0.2 * jax.random.normal(k3, (B, H, H), jnp.float32)
    AD0 = 0.2 * jax.random.normal(k4, (B, H, H), jnp.float32)
    AW0 = 0.2 * jax.random.normal(k5, (B, H, H), jnp.float32)

    params = init_params(kp, C_IN, C_OUT, FEAT)

    out = mgcd_forward(params, MGCE_out, X, AC0, AD0, AW0)
    out = jax.block_until_ready(out)
    assert out.shape == (B, C_OUT, H, FEAT), out.shape
    assert bool(jnp.all(jnp.isfinite(out)))
    print("KERNEL_OK")
</pallas_src>

<mosaic_0001>
module attributes {stable_mosaic.version = 11 : i64} {
  func.func @kernel(%arg0: memref<2x16x32xf32, #tpu.memory_space<vmem>>, %arg1: memref<2x16x32xf32, #tpu.memory_space<vmem>>, %arg2: memref<2x16xf32, #tpu.memory_space<vmem>>, %arg3: memref<2x1xf32, #tpu.memory_space<vmem>>, %arg4: memref<2x16xf32, #tpu.memory_space<vmem>>, %arg5: memref<2x1xf32, #tpu.memory_space<vmem>>, %arg6: memref<16x16xf32, #tpu.memory_space<vmem>>, %arg7: memref<16x1xf32, #tpu.memory_space<vmem>>, %arg8: memref<1x1xf32, #tpu.memory_space<smem>>, %arg9: memref<16x16xf32, #tpu.memory_space<vmem>>, %arg10: memref<2x32x64xf32, #tpu.memory_space<vmem>>, %arg11: memref<3x8x1xf32, #tpu.memory_space<vmem>>, %arg12: memref<2x64x64xf32, #tpu.memory_space<vmem>>, %arg13: memref<1x64xf32, #tpu.memory_space<vmem>>, %arg14: memref<24x8xf32, #tpu.memory_space<vmem>>, %arg15: memref<3x64x64xf32, #tpu.memory_space<vmem>>, %arg16: memref<3x8x1xf32, #tpu.memory_space<vmem>>, %arg17: memref<16x16xf32, #tpu.memory_space<vmem>>, %arg18: memref<2x32x64xf32, #tpu.memory_space<vmem>>, %arg19: memref<3x8x1xf32, #tpu.memory_space<vmem>>, %arg20: memref<24x8xf32, #tpu.memory_space<vmem>>, %arg21: memref<3x8x1xf32, #tpu.memory_space<vmem>>, %arg22: memref<2x8x64xf32, #tpu.memory_space<vmem>>) attributes {dimension_semantics = [], scalar_prefetch = 0 : i64, scratch_operands = 0 : i64, tpu.core_type = #tpu.core_type<tc>} {
    %c0 = arith.constant 0 : index
    %c0_0 = arith.constant 0 : index
    %0 = memref.load %arg8[%c0, %c0_0] : memref<1x1xf32, #tpu.memory_space<smem>>
    %c0_1 = arith.constant 0 : index
    %c0_2 = arith.constant 0 : index
    %c0_3 = arith.constant 0 : index
    %1 = vector.load %arg0[%c0_1, %c0_2, %c0_3] : memref<2x16x32xf32, #tpu.memory_space<vmem>>, vector<1x16x32xf32>
    %2 = vector.shape_cast %1 : vector<1x16x32xf32> to vector<16x32xf32>
    %c0_4 = arith.constant 0 : index
    %c0_5 = arith.constant 0 : index
    %3 = vector.load %arg2[%c0_4, %c0_5] : memref<2x16xf32, #tpu.memory_space<vmem>>, vector<2x16xf32>
    %cst = arith.constant dense<0.000000e+00> : vector<2x32xf32>
    %4 = tpu.matmul %3, %2, %cst {dimension_numbers = #tpu.dot_dimension_numbers<[1], [0], [0], [1], [0, 0, 1, 1], [], []>} : vector<2x16xf32>, vector<16x32xf32>, vector<2x32xf32> -> vector<2x32xf32>
    %c0_6 = arith.constant 0 : index
    %c0_7 = arith.constant 0 : index
    %5 = vector.load %arg3[%c0_6, %c0_7] : memref<2x1xf32, #tpu.memory_space<vmem>>, vector<2x1xf32>
    %6 = vector.broadcast %5 : vector<2x1xf32> to vector<2x32xf32>
    %7 = arith.addf %4, %6 : vector<2x32xf32>
    %c0_8 = arith.constant 0 : index
    %c0_9 = arith.constant 0 : index
    %8 = vector.load %arg4[%c0_8, %c0_9] : memref<2x16xf32, #tpu.memory_space<vmem>>, vector<2x16xf32>
    %cst_10 = arith.constant dense<0.000000e+00> : vector<2x32xf32>
    %9 = tpu.matmul %8, %2, %cst_10 {dimension_numbers = #tpu.dot_dimension_numbers<[1], [0], [0], [1], [0, 0, 1, 1], [], []>} : vector<2x16xf32>, vector<16x32xf32>, vector<2x32xf32> -> vector<2x32xf32>
    %c0_11 = arith.constant 0 : index
    %c0_12 = arith.constant 0 : index
    %10 = vector.load %arg5[%c0_11, %c0_12] : memref<2x1xf32, #tpu.memory_space<vmem>>, vector<2x1xf32>
    %11 = vector.broadcast %10 : vector<2x1xf32> to vector<2x32xf32>
    %12 = arith.addf %9, %11 : vector<2x32xf32>
    %c0_13 = arith.constant 0 : index
    %c0_14 = arith.constant 0 : index
    %13 = vector.load %arg6[%c0_13, %c0_14] : memref<16x16xf32, #tpu.memory_space<vmem>>, vector<16x16xf32>
    %cst_15 = arith.constant dense<0.000000e+00> : vector<16x32xf32>
    %14 = tpu.matmul %13, %2, %cst_15 {dimension_numbers = #tpu.dot_dimension_numbers<[1], [0], [0], [1], [0, 0, 1, 1], [], []>} : vector<16x16xf32>, vector<16x32xf32>, vector<16x32xf32> -> vector<16x32xf32>
    %c0_16 = arith.constant 0 : index
    %c0_17 = arith.constant 0 : index
    %15 = vector.load %arg7[%c0_16, %c0_17] : memref<16x1xf32, #tpu.memory_space<vmem>>, vector<16x1xf32>
    %16 = vector.broadcast %15 : vector<16x1xf32> to vector<16x32xf32>
    %17 = arith.addf %14, %16 : vector<16x32xf32>
    %cst_18 = arith.constant dense<0.000000e+00> : vector<32x32xf32>
    %18 = tpu.matmul %7, %12, %cst_18 {dimension_numbers = #tpu.dot_dimension_numbers<[0], [0], [1], [1], [0, 1, 1, 1], [], []>} : vector<2x32xf32>, vector<2x32xf32>, vector<32x32xf32> -> vector<32x32xf32>
    %cst_19 = arith.constant dense<0xFF800000> : vector<32xf32>
    %19 = vector.multi_reduction <maximumf>, %18, %cst_19 [1] : vector<32x32xf32> to vector<32xf32>
    %20 = vector.shape_cast %19 : vector<32xf32> to vector<32x1xf32>
    %21 = vector.broadcast %20 : vector<32x1xf32> to vector<32x32xf32>
    %22 = arith.subf %18, %21 : vector<32x32xf32>
    %23 = math.exp %22 : vector<32x32xf32>
    %cst_20 = arith.constant dense<0.000000e+00> : vector<32xf32>
    %24 = vector.multi_reduction <add>, %23, %cst_20 [1] : vector<32x32xf32> to vector<32xf32>
    %25 = vector.shape_cast %24 : vector<32xf32> to vector<32x1xf32>
    %26 = tpu.reciprocal %25 {approx = true} : vector<32x1xf32> -> vector<32x1xf32>
    %27 = vector.broadcast %26 : vector<32x1xf32> to vector<32x32xf32>
    %28 = arith.mulf %23, %27 : vector<32x32xf32>
    %cst_21 = arith.constant dense<0.000000e+00> : vector<16x32xf32>
    %29 = tpu.matmul %17, %28, %cst_21 {dimension_numbers = #tpu.dot_dimension_numbers<[1], [1], [0], [0], [0, 0, 1, 0], [], []>} : vector<16x32xf32>, vector<32x32xf32>, vector<16x32xf32> -> vector<16x32xf32>
    %30 = vector.broadcast %0 : f32 to vector<16x32xf32>
    %31 = arith.mulf %30, %29 : vector<16x32xf32>
    %32 = arith.addf %31, %2 : vector<16x32xf32>
    %c0_22 = arith.constant 0 : index
    %c0_23 = arith.constant 0 : index
    %c0_24 = arith.constant 0 : index
    %33 = vector.load %arg1[%c0_22, %c0_23, %c0_24] : memref<2x16x32xf32, #tpu.memory_space<vmem>>, vector<1x16x32xf32>
    %34 = vector.shape_cast %33 : vector<1x16x32xf32> to vector<16x32xf32>
    %c0_25 = arith.constant 0 : index
    %c0_26 = arith.constant 0 : index
    %35 = vector.load %arg2[%c0_25, %c0_26] : memref<2x16xf32, #tpu.memory_space<vmem>>, vector<2x16xf32>
    %cst_27 = arith.constant dense<0.000000e+00> : vector<2x32xf32>
    %36 = tpu.matmul %35, %34, %cst_27 {dimension_numbers = #tpu.dot_dimension_numbers<[1], [0], [0], [1], [0, 0, 1, 1], [], []>} : vector<2x16xf32>, vector<16x32xf32>, vector<2x32xf32> -> vector<2x32xf32>
    %c0_28 = arith.constant 0 : index
    %c0_29 = arith.constant 0 : index
    %37 = vector.load %arg3[%c0_28, %c0_29] : memref<2x1xf32, #tpu.memory_space<vmem>>, vector<2x1xf32>
    %38 = vector.broadcast %37 : vector<2x1xf32> to vector<2x32xf32>
    %39 = arith.addf %36, %38 : vector<2x32xf32>
    %c0_30 = arith.constant 0 : index
    %c0_31 = arith.constant 0 : index
    %40 = vector.load %arg4[%c0_30, %c0_31] : memref<2x16xf32, #tpu.memory_space<vmem>>, vector<2x16xf32>
    %cst_32 = arith.constant dense<0.000000e+00> : vector<2x32xf32>
    %41 = tpu.matmul %40, %34, %cst_32 {dimension_numbers = #tpu.dot_dimension_numbers<[1], [0], [0], [1], [0, 0, 1, 1], [], []>} : vector<2x16xf32>, vector<16x32xf32>, vector<2x32xf32> -> vector<2x32xf32>
    %c0_33 = arith.constant 0 : index
    %c0_34 = arith.constant 0 : index
    %42 = vector.load %arg5[%c0_33, %c0_34] : memref<2x1xf32, #tpu.memory_space<vmem>>, vector<2x1xf32>
    %43 = vector.broadcast %42 : vector<2x1xf32> to vector<2x32xf32>
    %44 = arith.addf %41, %43 : vector<2x32xf32>
    %c0_35 = arith.constant 0 : index
    %c0_36 = arith.constant 0 : index
    %45 = vector.load %arg6[%c0_35, %c0_36] : memref<16x16xf32, #tpu.memory_space<vmem>>, vector<16x16xf32>
    %cst_37 = arith.constant dense<0.000000e+00> : vector<16x32xf32>
    %46 = tpu.matmul %45, %34, %cst_37 {dimension_numbers = #tpu.dot_dimension_numbers<[1], [0], [0], [1], [0, 0, 1, 1], [], []>} : vector<16x16xf32>, vector<16x32xf32>, vector<16x32xf32> -> vector<16x32xf32>
    %c0_38 = arith.constant 0 : index
    %c0_39 = arith.constant 0 : index
    %47 = vector.load %arg7[%c0_38, %c0_39] : memref<16x1xf32, #tpu.memory_space<vmem>>, vector<16x1xf32>
    %48 = vector.broadcast %47 : vector<16x1xf32> to vector<16x32xf32>
    %49 = arith.addf %46, %48 : vector<16x32xf32>
    %cst_40 = arith.constant dense<0.000000e+00> : vector<32x32xf32>
    %50 = tpu.matmul %39, %44, %cst_40 {dimension_numbers = #tpu.dot_dimension_numbers<[0], [0], [1], [1], [0, 1, 1, 1], [], []>} : vector<2x32xf32>, vector<2x32xf32>, vector<32x32xf32> -> vector<32x32xf32>
    %cst_41 = arith.constant dense<0xFF800000> : vector<32xf32>
    %51 = vector.multi_reduction <maximumf>, %50, %cst_41 [1] : vector<32x32xf32> to vector<32xf32>
    %52 = vector.shape_cast %51 : vector<32xf32> to vector<32x1xf32>
    %53 = vector.broadcast %52 : vector<32x1xf32> to vector<32x32xf32>
    %54 = arith.subf %50, %53 : vector<32x32xf32>
    %55 = math.exp %54 : vector<32x32xf32>
    %cst_42 = arith.constant dense<0.000000e+00> : vector<32xf32>
    %56 = vector.multi_reduction <add>, %55, %cst_42 [1] : vector<32x32xf32> to vector<32xf32>
    %57 = vector.shape_cast %56 : vector<32xf32> to vector<32x1xf32>
    %58 = tpu.reciprocal %57 {approx = true} : vector<32x1xf32> -> vector<32x1xf32>
    %59 = vector.broadcast %58 : vector<32x1xf32> to vector<32x32xf32>
    %60 = arith.mulf %55, %59 : vector<32x32xf32>
    %cst_43 = arith.constant dense<0.000000e+00> : vector<16x32xf32>
    %61 = tpu.matmul %49, %60, %cst_43 {dimension_numbers = #tpu.dot_dimension_numbers<[1], [1], [0], [0], [0, 0, 1, 0], [], []>} : vector<16x32xf32>, vector<32x32xf32>, vector<16x32xf32> -> vector<16x32xf32>
    %62 = vector.broadcast %0 : f32 to vector<16x32xf32>
    %63 = arith.mulf %62, %61 : vector<16x32xf32>
    %64 = arith.addf %63, %34 : vector<16x32xf32>
    %65 = arith.negf %64 : vector<16x32xf32>
    %66 = math.exp %65 : vector<16x32xf32>
    %cst_44 = arith.constant 1.000000e+00 : f32
    %67 = vector.broadcast %cst_44 : f32 to vector<16x32xf32>
    %68 = arith.addf %67, %66 : vector<16x32xf32>
    %69 = arith.divf %67, %68 : vector<16x32xf32>
    %70 = arith.mulf %32, %69 : vector<16x32xf32>
    %c1 = arith.constant 1 : index
    %c0_45 = arith.constant 0 : index
    %c0_46 = arith.constant 0 : index
    %71 = vector.load %arg0[%c1, %c0_45, %c0_46] : memref<2x16x32xf32, #tpu.memory_space<vmem>>, vector<1x16x32xf32>
    %72 = vector.shape_cast %71 : vector<1x16x32xf32> to vector<16x32xf32>
    %c0_47 = arith.constant 0 : index
    %c0_48 = arith.constant 0 : index
    %73 = vector.load %arg2[%c0_47, %c0_48] : memref<2x16xf32, #tpu.memory_space<vmem>>, vector<2x16xf32>
    %cst_49 = arith.constant dense<0.000000e+00> : vector<2x32xf32>
    %74 = tpu.matmul %73, %72, %cst_49 {dimension_numbers = #tpu.dot_dimension_numbers<[1], [0], [0], [1], [0, 0, 1, 1], [], []>} : vector<2x16xf32>, vector<16x32xf32>, vector<2x32xf32> -> vector<2x32xf32>
    %c0_50 = arith.constant 0 : index
    %c0_51 = arith.constant 0 : index
    %75 = vector.load %arg3[%c0_50, %c0_51] : memref<2x1xf32, #tpu.memory_space<vmem>>, vector<2x1xf32>
    %76 = vector.broadcast %75 : vector<2x1xf32> to vector<2x32xf32>
    %77 = arith.addf %74, %76 : vector<2x32xf32>
    %c0_52 = arith.constant 0 : index
    %c0_53 = arith.constant 0 : index
    %78 = vector.load %arg4[%c0_52, %c0_53] : memref<2x16xf32, #tpu.memory_space<vmem>>, vector<2x16xf32>
    %cst_54 = arith.constant dense<0.000000e+00> : vector<2x32xf32>
    %79 = tpu.matmul %78, %72, %cst_54 {dimension_numbers = #tpu.dot_dimension_numbers<[1], [0], [0], [1], [0, 0, 1, 1], [], []>} : vector<2x16xf32>, vector<16x32xf32>, vector<2x32xf32> -> vector<2x32xf32>
    %c0_55 = arith.constant 0 : index
    %c0_56 = arith.constant 0 : index
    %80 = vector.load %arg5[%c0_55, %c0_56] : memref<2x1xf32, #tpu.memory_space<vmem>>, vector<2x1xf32>
    %81 = vector.broadcast %80 : vector<2x1xf32> to vector<2x32xf32>
    %82 = arith.addf %79, %81 : vector<2x32xf32>
    %c0_57 = arith.constant 0 : index
    %c0_58 = arith.constant 0 : index
    %83 = vector.load %arg6[%c0_57, %c0_58] : memref<16x16xf32, #tpu.memory_space<vmem>>, vector<16x16xf32>
    %cst_59 = arith.constant dense<0.000000e+00> : vector<16x32xf32>
    %84 = tpu.matmul %83, %72, %cst_59 {dimension_numbers = #tpu.dot_dimension_numbers<[1], [0], [0], [1], [0, 0, 1, 1], [], []>} : vector<16x16xf32>, vector<16x32xf32>, vector<16x32xf32> -> vector<16x32xf32>
    %c0_60 = arith.constant 0 : index
    %c0_61 = arith.constant 0 : index
    %85 = vector.load %arg7[%c0_60, %c0_61] : memref<16x1xf32, #tpu.memory_space<vmem>>, vector<16x1xf32>
    %86 = vector.broadcast %85 : vector<16x1xf32> to vector<16x32xf32>
    %87 = arith.addf %84, %86 : vector<16x32xf32>
    %cst_62 = arith.constant dense<0.000000e+00> : vector<32x32xf32>
    %88 = tpu.matmul %77, %82, %cst_62 {dimension_numbers = #tpu.dot_dimension_numbers<[0], [0], [1], [1], [0, 1, 1, 1], [], []>} : vector<2x32xf32>, vector<2x32xf32>, vector<32x32xf32> -> vector<32x32xf32>
    %cst_63 = arith.constant dense<0xFF800000> : vector<32xf32>
    %89 = vector.multi_reduction <maximumf>, %88, %cst_63 [1] : vector<32x32xf32> to vector<32xf32>
    %90 = vector.shape_cast %89 : vector<32xf32> to vector<32x1xf32>
    %91 = vector.broadcast %90 : vector<32x1xf32> to vector<32x32xf32>
    %92 = arith.subf %88, %91 : vector<32x32xf32>
    %93 = math.exp %92 : vector<32x32xf32>
    %cst_64 = arith.constant dense<0.000000e+00> : vector<32xf32>
    %94 = vector.multi_reduction <add>, %93, %cst_64 [1] : vector<32x32xf32> to vector<32xf32>
    %95 = vector.shape_cast %94 : vector<32xf32> to vector<32x1xf32>
    %96 = tpu.reciprocal %95 {approx = true} : vector<32x1xf32> -> vector<32x1xf32>
    %97 = vector.broadcast %96 : vector<32x1xf32> to vector<32x32xf32>
    %98 = arith.mulf %93, %97 : vector<32x32xf32>
    %cst_65 = arith.constant dense<0.000000e+00> : vector<16x32xf32>
    %99 = tpu.matmul %87, %98, %cst_65 {dimension_numbers = #tpu.dot_dimension_numbers<[1], [1], [0], [0], [0, 0, 1, 0], [], []>} : vector<16x32xf32>, vector<32x32xf32>, vector<16x32xf32> -> vector<16x32xf32>
    %100 = vector.broadcast %0 : f32 to vector<16x32xf32>
    %101 = arith.mulf %100, %99 : vector<16x32xf32>
    %102 = arith.addf %101, %72 : vector<16x32xf32>
    %c1_66 = arith.constant 1 : index
    %c0_67 = arith.constant 0 : index
    %c0_68 = arith.constant 0 : index
    %103 = vector.load %arg1[%c1_66, %c0_67, %c0_68] : memref<2x16x32xf32, #tpu.memory_space<vmem>>, vector<1x16x32xf32>
    %104 = vector.shape_cast %103 : vector<1x16x32xf32> to vector<16x32xf32>
    %c0_69 = arith.constant 0 : index
    %c0_70 = arith.constant 0 : index
    %105 = vector.load %arg2[%c0_69, %c0_70] : memref<2x16xf32, #tpu.memory_space<vmem>>, vector<2x16xf32>
    %cst_71 = arith.constant dense<0.000000e+00> : vector<2x32xf32>
    %106 = tpu.matmul %105, %104, %cst_71 {dimension_numbers = #tpu.dot_dimension_numbers<[1], [0], [0], [1], [0, 0, 1, 1], [], []>} : vector<2x16xf32>, vector<16x32xf32>, vector<2x32xf32> -> vector<2x32xf32>
    %c0_72 = arith.constant 0 : index
    %c0_73 = arith.constant 0 : index
    %107 = vector.load %arg3[%c0_72, %c0_73] : memref<2x1xf32, #tpu.memory_space<vmem>>, vector<2x1xf32>
    %108 = vector.broadcast %107 : vector<2x1xf32> to vector<2x32xf32>
    %109 = arith.addf %106, %108 : vector<2x32xf32>
    %c0_74 = arith.constant 0 : index
    %c0_75 = arith.constant 0 : index
    %110 = vector.load %arg4[%c0_74, %c0_75] : memref<2x16xf32, #tpu.memory_space<vmem>>, vector<2x16xf32>
    %cst_76 = arith.constant dense<0.000000e+00> : vector<2x32xf32>
    %111 = tpu.matmul %110, %104, %cst_76 {dimension_numbers = #tpu.dot_dimension_numbers<[1], [0], [0], [1], [0, 0, 1, 1], [], []>} : vector<2x16xf32>, vector<16x32xf32>, vector<2x32xf32> -> vector<2x32xf32>
    %c0_77 = arith.constant 0 : index
    %c0_78 = arith.constant 0 : index
    %112 = vector.load %arg5[%c0_77, %c0_78] : memref<2x1xf32, #tpu.memory_space<vmem>>, vector<2x1xf32>
    %113 = vector.broadcast %112 : vector<2x1xf32> to vector<2x32xf32>
    %114 = arith.addf %111, %113 : vector<2x32xf32>
    %c0_79 = arith.constant 0 : index
    %c0_80 = arith.constant 0 : index
    %115 = vector.load %arg6[%c0_79, %c0_80] : memref<16x16xf32, #tpu.memory_space<vmem>>, vector<16x16xf32>
    %cst_81 = arith.constant dense<0.000000e+00> : vector<16x32xf32>
    %116 = tpu.matmul %115, %104, %cst_81 {dimension_numbers = #tpu.dot_dimension_numbers<[1], [0], [0], [1], [0, 0, 1, 1], [], []>} : vector<16x16xf32>, vector<16x32xf32>, vector<16x32xf32> -> vector<16x32xf32>
    %c0_82 = arith.constant 0 : index
    %c0_83 = arith.constant 0 : index
    %117 = vector.load %arg7[%c0_82, %c0_83] : memref<16x1xf32, #tpu.memory_space<vmem>>, vector<16x1xf32>
    %118 = vector.broadcast %117 : vector<16x1xf32> to vector<16x32xf32>
    %119 = arith.addf %116, %118 : vector<16x32xf32>
    %cst_84 = arith.constant dense<0.000000e+00> : vector<32x32xf32>
    %120 = tpu.matmul %109, %114, %cst_84 {dimension_numbers = #tpu.dot_dimension_numbers<[0], [0], [1], [1], [0, 1, 1, 1], [], []>} : vector<2x32xf32>, vector<2x32xf32>, vector<32x32xf32> -> vector<32x32xf32>
    %cst_85 = arith.constant dense<0xFF800000> : vector<32xf32>
    %121 = vector.multi_reduction <maximumf>, %120, %cst_85 [1] : vector<32x32xf32> to vector<32xf32>
    %122 = vector.shape_cast %121 : vector<32xf32> to vector<32x1xf32>
    %123 = vector.broadcast %122 : vector<32x1xf32> to vector<32x32xf32>
    %124 = arith.subf %120, %123 : vector<32x32xf32>
    %125 = math.exp %124 : vector<32x32xf32>
    %cst_86 = arith.constant dense<0.000000e+00> : vector<32xf32>
    %126 = vector.multi_reduction <add>, %125, %cst_86 [1] : vector<32x32xf32> to vector<32xf32>
    %127 = vector.shape_cast %126 : vector<32xf32> to vector<32x1xf32>
    %128 = tpu.reciprocal %127 {approx = true} : vector<32x1xf32> -> vector<32x1xf32>
    %129 = vector.broadcast %128 : vector<32x1xf32> to vector<32x32xf32>
    %130 = arith.mulf %125, %129 : vector<32x32xf32>
    %cst_87 = arith.constant dense<0.000000e+00> : vector<16x32xf32>
    %131 = tpu.matmul %119, %130, %cst_87 {dimension_numbers = #tpu.dot_dimension_numbers<[1], [1], [0], [0], [0, 0, 1, 0], [], []>} : vector<16x32xf32>, vector<32x32xf32>, vector<16x32xf32> -> vector<16x32xf32>
    %132 = vector.broadcast %0 : f32 to vector<16x32xf32>
    %133 = arith.mulf %132, %131 : vector<16x32xf32>
    %134 = arith.addf %133, %104 : vector<16x32xf32>
    %135 = arith.negf %134 : vector<16x32xf32>
    %136 = math.exp %135 : vector<16x32xf32>
    %cst_88 = arith.constant 1.000000e+00 : f32
    %137 = vector.broadcast %cst_88 : f32 to vector<16x32xf32>
    %138 = arith.addf %137, %136 : vector<16x32xf32>
    %139 = arith.divf %137, %138 : vector<16x32xf32>
    %140 = arith.mulf %102, %139 : vector<16x32xf32>
    %c0_89 = arith.constant 0 : index
    %c0_90 = arith.constant 0 : index
    %141 = vector.load %arg9[%c0_89, %c0_90] : memref<16x16xf32, #tpu.memory_space<vmem>>, vector<16x16xf32>
    %cst_91 = arith.constant dense<0.000000e+00> : vector<16x32xf32>
    %142 = tpu.matmul %141, %70, %cst_91 {dimension_numbers = #tpu.dot_dimension_numbers<[1], [0], [0], [1], [0, 0, 1, 1], [], []>} : vector<16x16xf32>, vector<16x32xf32>, vector<16x32xf32> -> vector<16x32xf32>
    %143 = vector.extract_strided_slice %142 {offsets = [0, 0], sizes = [8, 32], strides = [1, 1]} : vector<16x32xf32> to vector<8x32xf32>
    %c0_92 = arith.constant 0 : index
    %c0_93 = arith.constant 0 : index
    %c0_94 = arith.constant 0 : index
    %144 = vector.load %arg10[%c0_92, %c0_93, %c0_94] : memref<2x32x64xf32, #tpu.memory_space<vmem>>, vector<1x32x64xf32>
    %145 = vector.shape_cast %144 : vector<1x32x64xf32> to vector<32x64xf32>
    %cst_95 = arith.constant dense<0.000000e+00> : vector<8x64xf32>
    %146 = tpu.matmul %143, %145, %cst_95 {dimension_numbers = #tpu.dot_dimension_numbers<[1], [0], [0], [1], [0, 0, 1, 1], [], []>} : vector<8x32xf32>, vector<32x64xf32>, vector<8x64xf32> -> vector<8x64xf32>
    %147 = vector.extract_strided_slice %142 {offsets = [8, 0], sizes = [8, 32], strides = [1, 1]} : vector<16x32xf32> to vector<8x32xf32>
    %c1_96 = arith.constant 1 : index
    %c0_97 = arith.constant 0 : index
    %c0_98 = arith.constant 0 : index
    %148 = vector.load %arg10[%c1_96, %c0_97, %c0_98] : memref<2x32x64xf32, #tpu.memory_space<vmem>>, vector<1x32x64xf32>
    %149 = vector.shape_cast %148 : vector<1x32x64xf32> to vector<32x64xf32>
    %cst_99 = arith.constant dense<0.000000e+00> : vector<8x64xf32>
    %150 = tpu.matmul %147, %149, %cst_99 {dimension_numbers = #tpu.dot_dimension_numbers<[1], [0], [0], [1], [0, 0, 1, 1], [], []>} : vector<8x32xf32>, vector<32x64xf32>, vector<8x64xf32> -> vector<8x64xf32>
    %151 = arith.addf %146, %150 : vector<8x64xf32>
    %c0_100 = arith.constant 0 : index
    %c0_101 = arith.constant 0 : index
    %c0_102 = arith.constant 0 : index
    %152 = vector.load %arg11[%c0_100, %c0_101, %c0_102] : memref<3x8x1xf32, #tpu.memory_space<vmem>>, vector<1x8x1xf32>
    %153 = vector.shape_cast %152 : vector<1x8x1xf32> to vector<8x1xf32>
    %154 = vector.broadcast %153 : vector<8x1xf32> to vector<8x64xf32>
    %155 = arith.addf %151, %154 : vector<8x64xf32>
    %c0_103 = arith.constant 0 : index
    %c0_104 = arith.constant 0 : index
    %156 = vector.load %arg9[%c0_103, %c0_104] : memref<16x16xf32, #tpu.memory_space<vmem>>, vector<16x16xf32>
    %cst_105 = arith.constant dense<0.000000e+00> : vector<16x32xf32>
    %157 = tpu.matmul %156, %140, %cst_105 {dimension_numbers = #tpu.dot_dimension_numbers<[1], [0], [0], [1], [0, 0, 1, 1], [], []>} : vector<16x16xf32>, vector<16x32xf32>, vector<16x32xf32> -> vector<16x32xf32>
    %158 = vector.extract_strided_slice %157 {offsets = [0, 0], sizes = [8, 32], strides = [1, 1]} : vector<16x32xf32> to vector<8x32xf32>
    %c0_106 = arith.constant 0 : index
    %c0_107 = arith.constant 0 : index
    %c0_108 = arith.constant 0 : index
    %159 = vector.load %arg10[%c0_106, %c0_107, %c0_108] : memref<2x32x64xf32, #tpu.memory_space<vmem>>, vector<1x32x64xf32>
    %160 = vector.shape_cast %159 : vector<1x32x64xf32> to vector<32x64xf32>
    %cst_109 = arith.constant dense<0.000000e+00> : vector<8x64xf32>
    %161 = tpu.matmul %158, %160, %cst_109 {dimension_numbers = #tpu.dot_dimension_numbers<[1], [0], [0], [1], [0, 0, 1, 1], [], []>} : vector<8x32xf32>, vector<32x64xf32>, vector<8x64xf32> -> vector<8x64xf32>
    %162 = vector.extract_strided_slice %157 {offsets = [8, 0], sizes = [8, 32], strides = [1, 1]} : vector<16x32xf32> to vector<8x32xf32>
    %c1_110 = arith.constant 1 : index
    %c0_111 = arith.constant 0 : index
    %c0_112 = arith.constant 0 : index
    %163 = vector.load %arg10[%c1_110, %c0_111, %c0_112] : memref<2x32x64xf32, #tpu.memory_space<vmem>>, vector<1x32x64xf32>
    %164 = vector.shape_cast %163 : vector<1x32x64xf32> to vector<32x64xf32>
    %cst_113 = arith.constant dense<0.000000e+00> : vector<8x64xf32>
    %165 = tpu.matmul %162, %164, %cst_113 {dimension_numbers = #tpu.dot_dimension_numbers<[1], [0], [0], [1], [0, 0, 1, 1], [], []>} : vector<8x32xf32>, vector<32x64xf32>, vector<8x64xf32> -> vector<8x64xf32>
    %166 = arith.addf %161, %165 : vector<8x64xf32>
    %c0_114 = arith.constant 0 : index
    %c0_115 = arith.constant 0 : index
    %c0_116 = arith.constant 0 : index
    %167 = vector.load %arg11[%c0_114, %c0_115, %c0_116] : memref<3x8x1xf32, #tpu.memory_space<vmem>>, vector<1x8x1xf32>
    %168 = vector.shape_cast %167 : vector<1x8x1xf32> to vector<8x1xf32>
    %169 = vector.broadcast %168 : vector<8x1xf32> to vector<8x64xf32>
    %170 = arith.addf %166, %169 : vector<8x64xf32>
    %cst_117 = arith.constant dense<0.000000e+00> : vector<8xf32>
    %171 = vector.multi_reduction <add>, %155, %cst_117 [1] : vector<8x64xf32> to vector<8xf32>
    %172 = vector.shape_cast %171 : vector<8xf32> to vector<8x1xf32>
    %cst_118 = arith.constant 0.000000e+00 : f32
    %173 = vector.broadcast %cst_118 : f32 to vector<8x1xf32>
    %174 = arith.addf %173, %172 : vector<8x1xf32>
    %cst_119 = arith.constant dense<0.000000e+00> : vector<8xf32>
    %175 = vector.multi_reduction <add>, %170, %cst_119 [1] : vector<8x64xf32> to vector<8xf32>
    %176 = vector.shape_cast %175 : vector<8xf32> to vector<8x1xf32>
    %177 = arith.addf %174, %176 : vector<8x1xf32>
    %cst_120 = arith.constant 1.280000e+02 : f32
    %178 = vector.broadcast %cst_120 : f32 to vector<8x1xf32>
    %179 = arith.divf %177, %178 : vector<8x1xf32>
    %180 = vector.broadcast %179 : vector<8x1xf32> to vector<8x64xf32>
    %181 = arith.subf %155, %180 : vector<8x64xf32>
    %182 = arith.mulf %181, %181 : vector<8x64xf32>
    %cst_121 = arith.constant dense<0.000000e+00> : vector<8xf32>
    %183 = vector.multi_reduction <add>, %182, %cst_121 [1] : vector<8x64xf32> to vector<8xf32>
    %184 = vector.shape_cast %183 : vector<8xf32> to vector<8x1xf32>
    %cst_122 = arith.constant 0.000000e+00 : f32
    %185 = vector.broadcast %cst_122 : f32 to vector<8x1xf32>
    %186 = arith.addf %185, %184 : vector<8x1xf32>
    %187 = vector.broadcast %179 : vector<8x1xf32> to vector<8x64xf32>
    %188 = arith.subf %170, %187 : vector<8x64xf32>
    %189 = arith.mulf %188, %188 : vector<8x64xf32>
    %cst_123 = arith.constant dense<0.000000e+00> : vector<8xf32>
    %190 = vector.multi_reduction <add>, %189, %cst_123 [1] : vector<8x64xf32> to vector<8xf32>
    %191 = vector.shape_cast %190 : vector<8xf32> to vector<8x1xf32>
    %192 = arith.addf %186, %191 : vector<8x1xf32>
    %cst_124 = arith.constant 1.280000e+02 : f32
    %193 = vector.broadcast %cst_124 : f32 to vector<8x1xf32>
    %194 = arith.divf %192, %193 : vector<8x1xf32>
    %cst_125 = arith.constant 9.99999974E-6 : f32
    %195 = vector.broadcast %cst_125 : f32 to vector<8x1xf32>
    %196 = arith.addf %194, %195 : vector<8x1xf32>
    %197 = math.rsqrt %196 : vector<8x1xf32>
    %c1_126 = arith.constant 1 : index
    %c0_127 = arith.constant 0 : index
    %c0_128 = arith.constant 0 : index
    %198 = vector.load %arg11[%c1_126, %c0_127, %c0_128] : memref<3x8x1xf32, #tpu.memory_space<vmem>>, vector<1x8x1xf32>
    %199 = vector.shape_cast %198 : vector<1x8x1xf32> to vector<8x1xf32>
    %200 = arith.mulf %197, %199 : vector<8x1xf32>
    %201 = vector.broadcast %179 : vector<8x1xf32> to vector<8x64xf32>
    %202 = arith.subf %155, %201 : vector<8x64xf32>
    %203 = vector.broadcast %200 : vector<8x1xf32> to vector<8x64xf32>
    %204 = arith.mulf %202, %203 : vector<8x64xf32>
    %c2 = arith.constant 2 : index
    %c0_129 = arith.constant 0 : index
    %c0_130 = arith.constant 0 : index
    %205 = vector.load %arg11[%c2, %c0_129, %c0_130] : memref<3x8x1xf32, #tpu.memory_space<vmem>>, vector<1x8x1xf32>
    %206 = vector.shape_cast %205 : vector<1x8x1xf32> to vector<8x1xf32>
    %207 = vector.broadcast %206 : vector<8x1xf32> to vector<8x64xf32>
    %208 = arith.addf %204, %207 : vector<8x64xf32>
    %cst_131 = arith.constant 0.000000e+00 : f32
    %209 = vector.broadcast %cst_131 : f32 to vector<8x64xf32>
    %210 = arith.maximumf %208, %209 : vector<8x64xf32>
    %211 = vector.broadcast %179 : vector<8x1xf32> to vector<8x64xf32>
    %212 = arith.subf %170, %211 : vector<8x64xf32>
    %213 = vector.broadcast %200 : vector<8x1xf32> to vector<8x64xf32>
    %214 = arith.mulf %212, %213 : vector<8x64xf32>
    %c2_132 = arith.constant 2 : index
    %c0_133 = arith.constant 0 : index
    %c0_134 = arith.constant 0 : index
    %215 = vector.load %arg11[%c2_132, %c0_133, %c0_134] : memref<3x8x1xf32, #tpu.memory_space<vmem>>, vector<1x8x1xf32>
    %216 = vector.shape_cast %215 : vector<1x8x1xf32> to vector<8x1xf32>
    %217 = vector.broadcast %216 : vector<8x1xf32> to vector<8x64xf32>
    %218 = arith.addf %214, %217 : vector<8x64xf32>
    %cst_135 = arith.constant 0.000000e+00 : f32
    %219 = vector.broadcast %cst_135 : f32 to vector<8x64xf32>
    %220 = arith.maximumf %218, %219 : vector<8x64xf32>
    %c0_136 = arith.constant 0 : index
    %c0_137 = arith.constant 0 : index
    %c0_138 = arith.constant 0 : index
    %221 = vector.load %arg12[%c0_136, %c0_137, %c0_138] : memref<2x64x64xf32, #tpu.memory_space<vmem>>, vector<1x64x64xf32>
    %222 = vector.shape_cast %221 : vector<1x64x64xf32> to vector<64x64xf32>
    %cst_139 = arith.constant dense<0.000000e+00> : vector<8x64xf32>
    %223 = tpu.matmul %210, %222, %cst_139 {dimension_numbers = #tpu.dot_dimension_numbers<[1], [0], [0], [1], [0, 0, 1, 1], [], []>} : vector<8x64xf32>, vector<64x64xf32>, vector<8x64xf32> -> vector<8x64xf32>
    %c0_140 = arith.constant 0 : index
    %c0_141 = arith.constant 0 : index
    %224 = vector.load %arg13[%c0_140, %c0_141] : memref<1x64xf32, #tpu.memory_space<vmem>>, vector<1x64xf32>
    %225 = vector.broadcast %224 : vector<1x64xf32> to vector<8x64xf32>
    %226 = arith.addf %223, %225 : vector<8x64xf32>
    %c1_142 = arith.constant 1 : index
    %c0_143 = arith.constant 0 : index
    %c0_144 = arith.constant 0 : index
    %227 = vector.load %arg12[%c1_142, %c0_143, %c0_144] : memref<2x64x64xf32, #tpu.memory_space<vmem>>, vector<1x64x64xf32>
    %228 = vector.shape_cast %227 : vector<1x64x64xf32> to vector<64x64xf32>
    %cst_145 = arith.constant dense<0.000000e+00> : vector<8x64xf32>
    %229 = tpu.matmul %220, %228, %cst_145 {dimension_numbers = #tpu.dot_dimension_numbers<[1], [0], [0], [1], [0, 0, 1, 1], [], []>} : vector<8x64xf32>, vector<64x64xf32>, vector<8x64xf32> -> vector<8x64xf32>
    %c0_146 = arith.constant 0 : index
    %c0_147 = arith.constant 0 : index
    %230 = vector.load %arg13[%c0_146, %c0_147] : memref<1x64xf32, #tpu.memory_space<vmem>>, vector<1x64xf32>
    %231 = vector.broadcast %230 : vector<1x64xf32> to vector<8x64xf32>
    %232 = arith.addf %229, %231 : vector<8x64xf32>
    %c0_148 = arith.constant 0 : index
    %c0_149 = arith.constant 0 : index
    %233 = vector.load %arg14[%c0_148, %c0_149] : memref<24x8xf32, #tpu.memory_space<vmem>>, vector<24x8xf32>
    %cst_150 = arith.constant dense<0.000000e+00> : vector<24x64xf32>
    %234 = tpu.matmul %233, %226, %cst_150 {dimension_numbers = #tpu.dot_dimension_numbers<[1], [0], [0], [1], [0, 0, 1, 1], [], []>} : vector<24x8xf32>, vector<8x64xf32>, vector<24x64xf32> -> vector<24x64xf32>
    %235 = vector.extract_strided_slice %234 {offsets = [0, 0], sizes = [8, 64], strides = [1, 1]} : vector<24x64xf32> to vector<8x64xf32>
    %c0_151 = arith.constant 0 : index
    %c0_152 = arith.constant 0 : index
    %c0_153 = arith.constant 0 : index
    %236 = vector.load %arg15[%c0_151, %c0_152, %c0_153] : memref<3x64x64xf32, #tpu.memory_space<vmem>>, vector<1x64x64xf32>
    %237 = vector.shape_cast %236 : vector<1x64x64xf32> to vector<64x64xf32>
    %cst_154 = arith.constant dense<0.000000e+00> : vector<8x64xf32>
    %238 = tpu.matmul %235, %237, %cst_154 {dimension_numbers = #tpu.dot_dimension_numbers<[1], [0], [0], [1], [0, 0, 1, 1], [], []>} : vector<8x64xf32>, vector<64x64xf32>, vector<8x64xf32> -> vector<8x64xf32>
    %239 = vector.extract_strided_slice %234 {offsets = [8, 0], sizes = [8, 64], strides = [1, 1]} : vector<24x64xf32> to vector<8x64xf32>
    %c1_155 = arith.constant 1 : index
    %c0_156 = arith.constant 0 : index
    %c0_157 = arith.constant 0 : index
    %240 = vector.load %arg15[%c1_155, %c0_156, %c0_157] : memref<3x64x64xf32, #tpu.memory_space<vmem>>, vector<1x64x64xf32>
    %241 = vector.shape_cast %240 : vector<1x64x64xf32> to vector<64x64xf32>
    %cst_158 = arith.constant dense<0.000000e+00> : vector<8x64xf32>
    %242 = tpu.matmul %239, %241, %cst_158 {dimension_numbers = #tpu.dot_dimension_numbers<[1], [0], [0], [1], [0, 0, 1, 1], [], []>} : vector<8x64xf32>, vector<64x64xf32>, vector<8x64xf32> -> vector<8x64xf32>
    %243 = arith.addf %238, %242 : vector<8x64xf32>
    %244 = vector.extract_strided_slice %234 {offsets = [16, 0], sizes = [8, 64], strides = [1, 1]} : vector<24x64xf32> to vector<8x64xf32>
    %c2_159 = arith.constant 2 : index
    %c0_160 = arith.constant 0 : index
    %c0_161 = arith.constant 0 : index
    %245 = vector.load %arg15[%c2_159, %c0_160, %c0_161] : memref<3x64x64xf32, #tpu.memory_space<vmem>>, vector<1x64x64xf32>
    %246 = vector.shape_cast %245 : vector<1x64x64xf32> to vector<64x64xf32>
    %cst_162 = arith.constant dense<0.000000e+00> : vector<8x64xf32>
    %247 = tpu.matmul %244, %246, %cst_162 {dimension_numbers = #tpu.dot_dimension_numbers<[1], [0], [0], [1], [0, 0, 1, 1], [], []>} : vector<8x64xf32>, vector<64x64xf32>, vector<8x64xf32> -> vector<8x64xf32>
    %248 = arith.addf %243, %247 : vector<8x64xf32>
    %c0_163 = arith.constant 0 : index
    %c0_164 = arith.constant 0 : index
    %c0_165 = arith.constant 0 : index
    %249 = vector.load %arg16[%c0_163, %c0_164, %c0_165] : memref<3x8x1xf32, #tpu.memory_space<vmem>>, vector<1x8x1xf32>
    %250 = vector.shape_cast %249 : vector<1x8x1xf32> to vector<8x1xf32>
    %251 = vector.broadcast %250 : vector<8x1xf32> to vector<8x64xf32>
    %252 = arith.addf %248, %251 : vector<8x64xf32>
    %c0_166 = arith.constant 0 : index
    %c0_167 = arith.constant 0 : index
    %253 = vector.load %arg14[%c0_166, %c0_167] : memref<24x8xf32, #tpu.memory_space<vmem>>, vector<24x8xf32>
    %cst_168 = arith.constant dense<0.000000e+00> : vector<24x64xf32>
    %254 = tpu.matmul %253, %232, %cst_168 {dimension_numbers = #tpu.dot_dimension_numbers<[1], [0], [0], [1], [0, 0, 1, 1], [], []>} : vector<24x8xf32>, vector<8x64xf32>, vector<24x64xf32> -> vector<24x64xf32>
    %255 = vector.extract_strided_slice %254 {offsets = [0, 0], sizes = [8, 64], strides = [1, 1]} : vector<24x64xf32> to vector<8x64xf32>
    %c0_169 = arith.constant 0 : index
    %c0_170 = arith.constant 0 : index
    %c0_171 = arith.constant 0 : index
    %256 = vector.load %arg15[%c0_169, %c0_170, %c0_171] : memref<3x64x64xf32, #tpu.memory_space<vmem>>, vector<1x64x64xf32>
    %257 = vector.shape_cast %256 : vector<1x64x64xf32> to vector<64x64xf32>
    %cst_172 = arith.constant dense<0.000000e+00> : vector<8x64xf32>
    %258 = tpu.matmul %255, %257, %cst_172 {dimension_numbers = #tpu.dot_dimension_numbers<[1], [0], [0], [1], [0, 0, 1, 1], [], []>} : vector<8x64xf32>, vector<64x64xf32>, vector<8x64xf32> -> vector<8x64xf32>
    %259 = vector.extract_strided_slice %254 {offsets = [8, 0], sizes = [8, 64], strides = [1, 1]} : vector<24x64xf32> to vector<8x64xf32>
    %c1_173 = arith.constant 1 : index
    %c0_174 = arith.constant 0 : index
    %c0_175 = arith.constant 0 : index
    %260 = vector.load %arg15[%c1_173, %c0_174, %c0_175] : memref<3x64x64xf32, #tpu.memory_space<vmem>>, vector<1x64x64xf32>
    %261 = vector.shape_cast %260 : vector<1x64x64xf32> to vector<64x64xf32>
    %cst_176 = arith.constant dense<0.000000e+00> : vector<8x64xf32>
    %262 = tpu.matmul %259, %261, %cst_176 {dimension_numbers = #tpu.dot_dimension_numbers<[1], [0], [0], [1], [0, 0, 1, 1], [], []>} : vector<8x64xf32>, vector<64x64xf32>, vector<8x64xf32> -> vector<8x64xf32>
    %263 = arith.addf %258, %262 : vector<8x64xf32>
    %264 = vector.extract_strided_slice %254 {offsets = [16, 0], sizes = [8, 64], strides = [1, 1]} : vector<24x64xf32> to vector<8x64xf32>
    %c2_177 = arith.constant 2 : index
    %c0_178 = arith.constant 0 : index
    %c0_179 = arith.constant 0 : index
    %265 = vector.load %arg15[%c2_177, %c0_178, %c0_179] : memref<3x64x64xf32, #tpu.memory_space<vmem>>, vector<1x64x64xf32>
    %266 = vector.shape_cast %265 : vector<1x64x64xf32> to vector<64x64xf32>
    %cst_180 = arith.constant dense<0.000000e+00> : vector<8x64xf32>
    %267 = tpu.matmul %264, %266, %cst_180 {dimension_numbers = #tpu.dot_dimension_numbers<[1], [0], [0], [1], [0, 0, 1, 1], [], []>} : vector<8x64xf32>, vector<64x64xf32>, vector<8x64xf32> -> vector<8x64xf32>
    %268 = arith.addf %263, %267 : vector<8x64xf32>
    %c0_181 = arith.constant 0 : index
    %c0_182 = arith.constant 0 : index
    %c0_183 = arith.constant 0 : index
    %269 = vector.load %arg16[%c0_181, %c0_182, %c0_183] : memref<3x8x1xf32, #tpu.memory_space<vmem>>, vector<1x8x1xf32>
    %270 = vector.shape_cast %269 : vector<1x8x1xf32> to vector<8x1xf32>
    %271 = vector.broadcast %270 : vector<8x1xf32> to vector<8x64xf32>
    %272 = arith.addf %268, %271 : vector<8x64xf32>
    %cst_184 = arith.constant dense<0.000000e+00> : vector<8xf32>
    %273 = vector.multi_reduction <add>, %252, %cst_184 [1] : vector<8x64xf32> to vector<8xf32>
    %274 = vector.shape_cast %273 : vector<8xf32> to vector<8x1xf32>
    %cst_185 = arith.constant 0.000000e+00 : f32
    %275 = vector.broadcast %cst_185 : f32 to vector<8x1xf32>
    %276 = arith.addf %275, %274 : vector<8x1xf32>
    %cst_186 = arith.constant dense<0.000000e+00> : vector<8xf32>
    %277 = vector.multi_reduction <add>, %272, %cst_186 [1] : vector<8x64xf32> to vector<8xf32>
    %278 = vector.shape_cast %277 : vector<8xf32> to vector<8x1xf32>
    %279 = arith.addf %276, %278 : vector<8x1xf32>
    %cst_187 = arith.constant 1.280000e+02 : f32
    %280 = vector.broadcast %cst_187 : f32 to vector<8x1xf32>
    %281 = arith.divf %279, %280 : vector<8x1xf32>
    %282 = vector.broadcast %281 : vector<8x1xf32> to vector<8x64xf32>
    %283 = arith.subf %252, %282 : vector<8x64xf32>
    %284 = arith.mulf %283, %283 : vector<8x64xf32>
    %cst_188 = arith.constant dense<0.000000e+00> : vector<8xf32>
    %285 = vector.multi_reduction <add>, %284, %cst_188 [1] : vector<8x64xf32> to vector<8xf32>
    %286 = vector.shape_cast %285 : vector<8xf32> to vector<8x1xf32>
    %cst_189 = arith.constant 0.000000e+00 : f32
    %287 = vector.broadcast %cst_189 : f32 to vector<8x1xf32>
    %288 = arith.addf %287, %286 : vector<8x1xf32>
    %289 = vector.broadcast %281 : vector<8x1xf32> to vector<8x64xf32>
    %290 = arith.subf %272, %289 : vector<8x64xf32>
    %291 = arith.mulf %290, %290 : vector<8x64xf32>
    %cst_190 = arith.constant dense<0.000000e+00> : vector<8xf32>
    %292 = vector.multi_reduction <add>, %291, %cst_190 [1] : vector<8x64xf32> to vector<8xf32>
    %293 = vector.shape_cast %292 : vector<8xf32> to vector<8x1xf32>
    %294 = arith.addf %288, %293 : vector<8x1xf32>
    %cst_191 = arith.constant 1.280000e+02 : f32
    %295 = vector.broadcast %cst_191 : f32 to vector<8x1xf32>
    %296 = arith.divf %294, %295 : vector<8x1xf32>
    %cst_192 = arith.constant 9.99999974E-6 : f32
    %297 = vector.broadcast %cst_192 : f32 to vector<8x1xf32>
    %298 = arith.addf %296, %297 : vector<8x1xf32>
    %299 = math.rsqrt %298 : vector<8x1xf32>
    %c1_193 = arith.constant 1 : index
    %c0_194 = arith.constant 0 : index
    %c0_195 = arith.constant 0 : index
    %300 = vector.load %arg16[%c1_193, %c0_194, %c0_195] : memref<3x8x1xf32, #tpu.memory_space<vmem>>, vector<1x8x1xf32>
    %301 = vector.shape_cast %300 : vector<1x8x1xf32> to vector<8x1xf32>
    %302 = arith.mulf %299, %301 : vector<8x1xf32>
    %303 = vector.broadcast %281 : vector<8x1xf32> to vector<8x64xf32>
    %304 = arith.subf %252, %303 : vector<8x64xf32>
    %305 = vector.broadcast %302 : vector<8x1xf32> to vector<8x64xf32>
    %306 = arith.mulf %304, %305 : vector<8x64xf32>
    %c2_196 = arith.constant 2 : index
    %c0_197 = arith.constant 0 : index
    %c0_198 = arith.constant 0 : index
    %307 = vector.load %arg16[%c2_196, %c0_197, %c0_198] : memref<3x8x1xf32, #tpu.memory_space<vmem>>, vector<1x8x1xf32>
    %308 = vector.shape_cast %307 : vector<1x8x1xf32> to vector<8x1xf32>
    %309 = vector.broadcast %308 : vector<8x1xf32> to vector<8x64xf32>
    %310 = arith.addf %306, %309 : vector<8x64xf32>
    %cst_199 = arith.constant 0.000000e+00 : f32
    %311 = vector.broadcast %cst_199 : f32 to vector<8x64xf32>
    %312 = arith.maximumf %310, %311 : vector<8x64xf32>
    %313 = vector.broadcast %281 : vector<8x1xf32> to vector<8x64xf32>
    %314 = arith.subf %272, %313 : vector<8x64xf32>
    %315 = vector.broadcast %302 : vector<8x1xf32> to vector<8x64xf32>
    %316 = arith.mulf %314, %315 : vector<8x64xf32>
    %c2_200 = arith.constant 2 : index
    %c0_201 = arith.constant 0 : index
    %c0_202 = arith.constant 0 : index
    %317 = vector.load %arg16[%c2_200, %c0_201, %c0_202] : memref<3x8x1xf32, #tpu.memory_space<vmem>>, vector<1x8x1xf32>
    %318 = vector.shape_cast %317 : vector<1x8x1xf32> to vector<8x1xf32>
    %319 = vector.broadcast %318 : vector<8x1xf32> to vector<8x64xf32>
    %320 = arith.addf %316, %319 : vector<8x64xf32>
    %cst_203 = arith.constant 0.000000e+00 : f32
    %321 = vector.broadcast %cst_203 : f32 to vector<8x64xf32>
    %322 = arith.maximumf %320, %321 : vector<8x64xf32>
    %c0_204 = arith.constant 0 : index
    %c0_205 = arith.constant 0 : index
    %323 = vector.load %arg17[%c0_204, %c0_205] : memref<16x16xf32, #tpu.memory_space<vmem>>, vector<16x16xf32>
    %cst_206 = arith.constant dense<0.000000e+00> : vector<16x32xf32>
    %324 = tpu.matmul %323, %70, %cst_206 {dimension_numbers = #tpu.dot_dimension_numbers<[1], [0], [0], [1], [0, 0, 1, 1], [], []>} : vector<16x16xf32>, vector<16x32xf32>, vector<16x32xf32> -> vector<16x32xf32>
    %325 = vector.extract_strided_slice %324 {offsets = [0, 0], sizes = [8, 32], strides = [1, 1]} : vector<16x32xf32> to vector<8x32xf32>
    %c0_207 = arith.constant 0 : index
    %c0_208 = arith.constant 0 : index
    %c0_209 = arith.constant 0 : index
    %326 = vector.load %arg18[%c0_207, %c0_208, %c0_209] : memref<2x32x64xf32, #tpu.memory_space<vmem>>, vector<1x32x64xf32>
    %327 = vector.shape_cast %326 : vector<1x32x64xf32> to vector<32x64xf32>
    %cst_210 = arith.constant dense<0.000000e+00> : vector<8x64xf32>
    %328 = tpu.matmul %325, %327, %cst_210 {dimension_numbers = #tpu.dot_dimension_numbers<[1], [0], [0], [1], [0, 0, 1, 1], [], []>} : vector<8x32xf32>, vector<32x64xf32>, vector<8x64xf32> -> vector<8x64xf32>
    %329 = vector.extract_strided_slice %324 {offsets = [8, 0], sizes = [8, 32], strides = [1, 1]} : vector<16x32xf32> to vector<8x32xf32>
    %c1_211 = arith.constant 1 : index
    %c0_212 = arith.constant 0 : index
    %c0_213 = arith.constant 0 : index
    %330 = vector.load %arg18[%c1_211, %c0_212, %c0_213] : memref<2x32x64xf32, #tpu.memory_space<vmem>>, vector<1x32x64xf32>
    %331 = vector.shape_cast %330 : vector<1x32x64xf32> to vector<32x64xf32>
    %cst_214 = arith.constant dense<0.000000e+00> : vector<8x64xf32>
    %332 = tpu.matmul %329, %331, %cst_214 {dimension_numbers = #tpu.dot_dimension_numbers<[1], [0], [0], [1], [0, 0, 1, 1], [], []>} : vector<8x32xf32>, vector<32x64xf32>, vector<8x64xf32> -> vector<8x64xf32>
    %333 = arith.addf %328, %332 : vector<8x64xf32>
    %c0_215 = arith.constant 0 : index
    %c0_216 = arith.constant 0 : index
    %c0_217 = arith.constant 0 : index
    %334 = vector.load %arg19[%c0_215, %c0_216, %c0_217] : memref<3x8x1xf32, #tpu.memory_space<vmem>>, vector<1x8x1xf32>
    %335 = vector.shape_cast %334 : vector<1x8x1xf32> to vector<8x1xf32>
    %336 = vector.broadcast %335 : vector<8x1xf32> to vector<8x64xf32>
    %337 = arith.addf %333, %336 : vector<8x64xf32>
    %c0_218 = arith.constant 0 : index
    %c0_219 = arith.constant 0 : index
    %338 = vector.load %arg17[%c0_218, %c0_219] : memref<16x16xf32, #tpu.memory_space<vmem>>, vector<16x16xf32>
    %cst_220 = arith.constant dense<0.000000e+00> : vector<16x32xf32>
    %339 = tpu.matmul %338, %140, %cst_220 {dimension_numbers = #tpu.dot_dimension_numbers<[1], [0], [0], [1], [0, 0, 1, 1], [], []>} : vector<16x16xf32>, vector<16x32xf32>, vector<16x32xf32> -> vector<16x32xf32>
    %340 = vector.extract_strided_slice %339 {offsets = [0, 0], sizes = [8, 32], strides = [1, 1]} : vector<16x32xf32> to vector<8x32xf32>
    %c0_221 = arith.constant 0 : index
    %c0_222 = arith.constant 0 : index
    %c0_223 = arith.constant 0 : index
    %341 = vector.load %arg18[%c0_221, %c0_222, %c0_223] : memref<2x32x64xf32, #tpu.memory_space<vmem>>, vector<1x32x64xf32>
    %342 = vector.shape_cast %341 : vector<1x32x64xf32> to vector<32x64xf32>
    %cst_224 = arith.constant dense<0.000000e+00> : vector<8x64xf32>
    %343 = tpu.matmul %340, %342, %cst_224 {dimension_numbers = #tpu.dot_dimension_numbers<[1], [0], [0], [1], [0, 0, 1, 1], [], []>} : vector<8x32xf32>, vector<32x64xf32>, vector<8x64xf32> -> vector<8x64xf32>
    %344 = vector.extract_strided_slice %339 {offsets = [8, 0], sizes = [8, 32], strides = [1, 1]} : vector<16x32xf32> to vector<8x32xf32>
    %c1_225 = arith.constant 1 : index
    %c0_226 = arith.constant 0 : index
    %c0_227 = arith.constant 0 : index
    %345 = vector.load %arg18[%c1_225, %c0_226, %c0_227] : memref<2x32x64xf32, #tpu.memory_space<vmem>>, vector<1x32x64xf32>
    %346 = vector.shape_cast %345 : vector<1x32x64xf32> to vector<32x64xf32>
    %cst_228 = arith.constant dense<0.000000e+00> : vector<8x64xf32>
    %347 = tpu.matmul %344, %346, %cst_228 {dimension_numbers = #tpu.dot_dimension_numbers<[1], [0], [0], [1], [0, 0, 1, 1], [], []>} : vector<8x32xf32>, vector<32x64xf32>, vector<8x64xf32> -> vector<8x64xf32>
    %348 = arith.addf %343, %347 : vector<8x64xf32>
    %c0_229 = arith.constant 0 : index
    %c0_230 = arith.constant 0 : index
    %c0_231 = arith.constant 0 : index
    %349 = vector.load %arg19[%c0_229, %c0_230, %c0_231] : memref<3x8x1xf32, #tpu.memory_space<vmem>>, vector<1x8x1xf32>
    %350 = vector.shape_cast %349 : vector<1x8x1xf32> to vector<8x1xf32>
    %351 = vector.broadcast %350 : vector<8x1xf32> to vector<8x64xf32>
    %352 = arith.addf %348, %351 : vector<8x64xf32>
    %cst_232 = arith.constant dense<0.000000e+00> : vector<8xf32>
    %353 = vector.multi_reduction <add>, %337, %cst_232 [1] : vector<8x64xf32> to vector<8xf32>
    %354 = vector.shape_cast %353 : vector<8xf32> to vector<8x1xf32>
    %cst_233 = arith.constant 0.000000e+00 : f32
    %355 = vector.broadcast %cst_233 : f32 to vector<8x1xf32>
    %356 = arith.addf %355, %354 : vector<8x1xf32>
    %cst_234 = arith.constant dense<0.000000e+00> : vector<8xf32>
    %357 = vector.multi_reduction <add>, %352, %cst_234 [1] : vector<8x64xf32> to vector<8xf32>
    %358 = vector.shape_cast %357 : vector<8xf32> to vector<8x1xf32>
    %359 = arith.addf %356, %358 : vector<8x1xf32>
    %cst_235 = arith.constant 1.280000e+02 : f32
    %360 = vector.broadcast %cst_235 : f32 to vector<8x1xf32>
    %361 = arith.divf %359, %360 : vector<8x1xf32>
    %362 = vector.broadcast %361 : vector<8x1xf32> to vector<8x64xf32>
    %363 = arith.subf %337, %362 : vector<8x64xf32>
    %364 = arith.mulf %363, %363 : vector<8x64xf32>
    %cst_236 = arith.constant dense<0.000000e+00> : vector<8xf32>
    %365 = vector.multi_reduction <add>, %364, %cst_236 [1] : vector<8x64xf32> to vector<8xf32>
    %366 = vector.shape_cast %365 : vector<8xf32> to vector<8x1xf32>
    %cst_237 = arith.constant 0.000000e+00 : f32
    %367 = vector.broadcast %cst_237 : f32 to vector<8x1xf32>
    %368 = arith.addf %367, %366 : vector<8x1xf32>
    %369 = vector.broadcast %361 : vector<8x1xf32> to vector<8x64xf32>
    %370 = arith.subf %352, %369 : vector<8x64xf32>
    %371 = arith.mulf %370, %370 : vector<8x64xf32>
    %cst_238 = arith.constant dense<0.000000e+00> : vector<8xf32>
    %372 = vector.multi_reduction <add>, %371, %cst_238 [1] : vector<8x64xf32> to vector<8xf32>
    %373 = vector.shape_cast %372 : vector<8xf32> to vector<8x1xf32>
    %374 = arith.addf %368, %373 : vector<8x1xf32>
    %cst_239 = arith.constant 1.280000e+02 : f32
    %375 = vector.broadcast %cst_239 : f32 to vector<8x1xf32>
    %376 = arith.divf %374, %375 : vector<8x1xf32>
    %cst_240 = arith.constant 9.99999974E-6 : f32
    %377 = vector.broadcast %cst_240 : f32 to vector<8x1xf32>
    %378 = arith.addf %376, %377 : vector<8x1xf32>
    %379 = math.rsqrt %378 : vector<8x1xf32>
    %c1_241 = arith.constant 1 : index
    %c0_242 = arith.constant 0 : index
    %c0_243 = arith.constant 0 : index
    %380 = vector.load %arg19[%c1_241, %c0_242, %c0_243] : memref<3x8x1xf32, #tpu.memory_space<vmem>>, vector<1x8x1xf32>
    %381 = vector.shape_cast %380 : vector<1x8x1xf32> to vector<8x1xf32>
    %382 = arith.mulf %379, %381 : vector<8x1xf32>
    %383 = vector.broadcast %361 : vector<8x1xf32> to vector<8x64xf32>
    %384 = arith.subf %337, %383 : vector<8x64xf32>
    %385 = vector.broadcast %382 : vector<8x1xf32> to vector<8x64xf32>
    %386 = arith.mulf %384, %385 : vector<8x64xf32>
    %c2_244 = arith.constant 2 : index
    %c0_245 = arith.constant 0 : index
    %c0_246 = arith.constant 0 : index
    %387 = vector.load %arg19[%c2_244, %c0_245, %c0_246] : memref<3x8x1xf32, #tpu.memory_space<vmem>>, vector<1x8x1xf32>
    %388 = vector.shape_cast %387 : vector<1x8x1xf32> to vector<8x1xf32>
    %389 = vector.broadcast %388 : vector<8x1xf32> to vector<8x64xf32>
    %390 = arith.addf %386, %389 : vector<8x64xf32>
    %cst_247 = arith.constant 0.000000e+00 : f32
    %391 = vector.broadcast %cst_247 : f32 to vector<8x64xf32>
    %392 = arith.maximumf %390, %391 : vector<8x64xf32>
    %393 = vector.broadcast %361 : vector<8x1xf32> to vector<8x64xf32>
    %394 = arith.subf %352, %393 : vector<8x64xf32>
    %395 = vector.broadcast %382 : vector<8x1xf32> to vector<8x64xf32>
    %396 = arith.mulf %394, %395 : vector<8x64xf32>
    %c2_248 = arith.constant 2 : index
    %c0_249 = arith.constant 0 : index
    %c0_250 = arith.constant 0 : index
    %397 = vector.load %arg19[%c2_248, %c0_249, %c0_250] : memref<3x8x1xf32, #tpu.memory_space<vmem>>, vector<1x8x1xf32>
    %398 = vector.shape_cast %397 : vector<1x8x1xf32> to vector<8x1xf32>
    %399 = vector.broadcast %398 : vector<8x1xf32> to vector<8x64xf32>
    %400 = arith.addf %396, %399 : vector<8x64xf32>
    %cst_251 = arith.constant 0.000000e+00 : f32
    %401 = vector.broadcast %cst_251 : f32 to vector<8x64xf32>
    %402 = arith.maximumf %400, %401 : vector<8x64xf32>
    %403 = arith.addf %312, %392 : vector<8x64xf32>
    %cst_252 = arith.constant 0.000000e+00 : f32
    %404 = vector.broadcast %cst_252 : f32 to vector<8x64xf32>
    %405 = arith.maximumf %403, %404 : vector<8x64xf32>
    %406 = arith.addf %322, %402 : vector<8x64xf32>
    %cst_253 = arith.constant 0.000000e+00 : f32
    %407 = vector.broadcast %cst_253 : f32 to vector<8x64xf32>
    %408 = arith.maximumf %406, %407 : vector<8x64xf32>
    %c0_254 = arith.constant 0 : index
    %c0_255 = arith.constant 0 : index
    %409 = vector.load %arg20[%c0_254, %c0_255] : memref<24x8xf32, #tpu.memory_space<vmem>>, vector<24x8xf32>
    %cst_256 = arith.constant dense<0.000000e+00> : vector<24x64xf32>
    %410 = tpu.matmul %409, %405, %cst_256 {dimension_numbers = #tpu.dot_dimension_numbers<[1], [0], [0], [1], [0, 0, 1, 1], [], []>} : vector<24x8xf32>, vector<8x64xf32>, vector<24x64xf32> -> vector<24x64xf32>
    %411 = vector.extract_strided_slice %410 {offsets = [0, 0], sizes = [8, 64], strides = [1, 1]} : vector<24x64xf32> to vector<8x64xf32>
    %c0_257 = arith.constant 0 : index
    %c0_258 = arith.constant 0 : index
    %c0_259 = arith.constant 0 : index
    %412 = vector.load %arg15[%c0_257, %c0_258, %c0_259] : memref<3x64x64xf32, #tpu.memory_space<vmem>>, vector<1x64x64xf32>
    %413 = vector.shape_cast %412 : vector<1x64x64xf32> to vector<64x64xf32>
    %cst_260 = arith.constant dense<0.000000e+00> : vector<8x64xf32>
    %414 = tpu.matmul %411, %413, %cst_260 {dimension_numbers = #tpu.dot_dimension_numbers<[1], [0], [0], [1], [0, 0, 1, 1], [], []>} : vector<8x64xf32>, vector<64x64xf32>, vector<8x64xf32> -> vector<8x64xf32>
    %415 = vector.extract_strided_slice %410 {offsets = [8, 0], sizes = [8, 64], strides = [1, 1]} : vector<24x64xf32> to vector<8x64xf32>
    %c1_261 = arith.constant 1 : index
    %c0_262 = arith.constant 0 : index
    %c0_263 = arith.constant 0 : index
    %416 = vector.load %arg15[%c1_261, %c0_262, %c0_263] : memref<3x64x64xf32, #tpu.memory_space<vmem>>, vector<1x64x64xf32>
    %417 = vector.shape_cast %416 : vector<1x64x64xf32> to vector<64x64xf32>
    %cst_264 = arith.constant dense<0.000000e+00> : vector<8x64xf32>
    %418 = tpu.matmul %415, %417, %cst_264 {dimension_numbers = #tpu.dot_dimension_numbers<[1], [0], [0], [1], [0, 0, 1, 1], [], []>} : vector<8x64xf32>, vector<64x64xf32>, vector<8x64xf32> -> vector<8x64xf32>
    %419 = arith.addf %414, %418 : vector<8x64xf32>
    %420 = vector.extract_strided_slice %410 {offsets = [16, 0], sizes = [8, 64], strides = [1, 1]} : vector<24x64xf32> to vector<8x64xf32>
    %c2_265 = arith.constant 2 : index
    %c0_266 = arith.constant 0 : index
    %c0_267 = arith.constant 0 : index
    %421 = vector.load %arg15[%c2_265, %c0_266, %c0_267] : memref<3x64x64xf32, #tpu.memory_space<vmem>>, vector<1x64x64xf32>
    %422 = vector.shape_cast %421 : vector<1x64x64xf32> to vector<64x64xf32>
    %cst_268 = arith.constant dense<0.000000e+00> : vector<8x64xf32>
    %423 = tpu.matmul %420, %422, %cst_268 {dimension_numbers = #tpu.dot_dimension_numbers<[1], [0], [0], [1], [0, 0, 1, 1], [], []>} : vector<8x64xf32>, vector<64x64xf32>, vector<8x64xf32> -> vector<8x64xf32>
    %424 = arith.addf %419, %423 : vector<8x64xf32>
    %c0_269 = arith.constant 0 : index
    %c0_270 = arith.constant 0 : index
    %c0_271 = arith.constant 0 : index
    %425 = vector.load %arg21[%c0_269, %c0_270, %c0_271] : memref<3x8x1xf32, #tpu.memory_space<vmem>>, vector<1x8x1xf32>
    %426 = vector.shape_cast %425 : vector<1x8x1xf32> to vector<8x1xf32>
    %427 = vector.broadcast %426 : vector<8x1xf32> to vector<8x64xf32>
    %428 = arith.addf %424, %427 : vector<8x64xf32>
    %c0_272 = arith.constant 0 : index
    %c0_273 = arith.constant 0 : index
    %429 = vector.load %arg20[%c0_272, %c0_273] : memref<24x8xf32, #tpu.memory_space<vmem>>, vector<24x8xf32>
    %cst_274 = arith.constant dense<0.000000e+00> : vector<24x64xf32>
    %430 = tpu.matmul %429, %408, %cst_274 {dimension_numbers = #tpu.dot_dimension_numbers<[1], [0], [0], [1], [0, 0, 1, 1], [], []>} : vector<24x8xf32>, vector<8x64xf32>, vector<24x64xf32> -> vector<24x64xf32>
    %431 = vector.extract_strided_slice %430 {offsets = [0, 0], sizes = [8, 64], strides = [1, 1]} : vector<24x64xf32> to vector<8x64xf32>
    %c0_275 = arith.constant 0 : index
    %c0_276 = arith.constant 0 : index
    %c0_277 = arith.constant 0 : index
    %432 = vector.load %arg15[%c0_275, %c0_276, %c0_277] : memref<3x64x64xf32, #tpu.memory_space<vmem>>, vector<1x64x64xf32>
    %433 = vector.shape_cast %432 : vector<1x64x64xf32> to vector<64x64xf32>
    %cst_278 = arith.constant dense<0.000000e+00> : vector<8x64xf32>
    %434 = tpu.matmul %431, %433, %cst_278 {dimension_numbers = #tpu.dot_dimension_numbers<[1], [0], [0], [1], [0, 0, 1, 1], [], []>} : vector<8x64xf32>, vector<64x64xf32>, vector<8x64xf32> -> vector<8x64xf32>
    %435 = vector.extract_strided_slice %430 {offsets = [8, 0], sizes = [8, 64], strides = [1, 1]} : vector<24x64xf32> to vector<8x64xf32>
    %c1_279 = arith.constant 1 : index
    %c0_280 = arith.constant 0 : index
    %c0_281 = arith.constant 0 : index
    %436 = vector.load %arg15[%c1_279, %c0_280, %c0_281] : memref<3x64x64xf32, #tpu.memory_space<vmem>>, vector<1x64x64xf32>
    %437 = vector.shape_cast %436 : vector<1x64x64xf32> to vector<64x64xf32>
    %cst_282 = arith.constant dense<0.000000e+00> : vector<8x64xf32>
    %438 = tpu.matmul %435, %437, %cst_282 {dimension_numbers = #tpu.dot_dimension_numbers<[1], [0], [0], [1], [0, 0, 1, 1], [], []>} : vector<8x64xf32>, vector<64x64xf32>, vector<8x64xf32> -> vector<8x64xf32>
    %439 = arith.addf %434, %438 : vector<8x64xf32>
    %440 = vector.extract_strided_slice %430 {offsets = [16, 0], sizes = [8, 64], strides = [1, 1]} : vector<24x64xf32> to vector<8x64xf32>
    %c2_283 = arith.constant 2 : index
    %c0_284 = arith.constant 0 : index
    %c0_285 = arith.constant 0 : index
    %441 = vector.load %arg15[%c2_283, %c0_284, %c0_285] : memref<3x64x64xf32, #tpu.memory_space<vmem>>, vector<1x64x64xf32>
    %442 = vector.shape_cast %441 : vector<1x64x64xf32> to vector<64x64xf32>
    %cst_286 = arith.constant dense<0.000000e+00> : vector<8x64xf32>
    %443 = tpu.matmul %440, %442, %cst_286 {dimension_numbers = #tpu.dot_dimension_numbers<[1], [0], [0], [1], [0, 0, 1, 1], [], []>} : vector<8x64xf32>, vector<64x64xf32>, vector<8x64xf32> -> vector<8x64xf32>
    %444 = arith.addf %439, %443 : vector<8x64xf32>
    %c0_287 = arith.constant 0 : index
    %c0_288 = arith.constant 0 : index
    %c0_289 = arith.constant 0 : index
    %445 = vector.load %arg21[%c0_287, %c0_288, %c0_289] : memref<3x8x1xf32, #tpu.memory_space<vmem>>, vector<1x8x1xf32>
    %446 = vector.shape_cast %445 : vector<1x8x1xf32> to vector<8x1xf32>
    %447 = vector.broadcast %446 : vector<8x1xf32> to vector<8x64xf32>
    %448 = arith.addf %444, %447 : vector<8x64xf32>
    %cst_290 = arith.constant dense<0.000000e+00> : vector<8xf32>
    %449 = vector.multi_reduction <add>, %428, %cst_290 [1] : vector<8x64xf32> to vector<8xf32>
    %450 = vector.shape_cast %449 : vector<8xf32> to vector<8x1xf32>
    %cst_291 = arith.constant 0.000000e+00 : f32
    %451 = vector.broadcast %cst_291 : f32 to vector<8x1xf32>
    %452 = arith.addf %451, %450 : vector<8x1xf32>
    %cst_292 = arith.constant dense<0.000000e+00> : vector<8xf32>
    %453 = vector.multi_reduction <add>, %448, %cst_292 [1] : vector<8x64xf32> to vector<8xf32>
    %454 = vector.shape_cast %453 : vector<8xf32> to vector<8x1xf32>
    %455 = arith.addf %452, %454 : vector<8x1xf32>
    %cst_293 = arith.constant 1.280000e+02 : f32
    %456 = vector.broadcast %cst_293 : f32 to vector<8x1xf32>
    %457 = arith.divf %455, %456 : vector<8x1xf32>
    %458 = vector.broadcast %457 : vector<8x1xf32> to vector<8x64xf32>
    %459 = arith.subf %428, %458 : vector<8x64xf32>
    %460 = arith.mulf %459, %459 : vector<8x64xf32>
    %cst_294 = arith.constant dense<0.000000e+00> : vector<8xf32>
    %461 = vector.multi_reduction <add>, %460, %cst_294 [1] : vector<8x64xf32> to vector<8xf32>
    %462 = vector.shape_cast %461 : vector<8xf32> to vector<8x1xf32>
    %cst_295 = arith.constant 0.000000e+00 : f32
    %463 = vector.broadcast %cst_295 : f32 to vector<8x1xf32>
    %464 = arith.addf %463, %462 : vector<8x1xf32>
    %465 = vector.broadcast %457 : vector<8x1xf32> to vector<8x64xf32>
    %466 = arith.subf %448, %465 : vector<8x64xf32>
    %467 = arith.mulf %466, %466 : vector<8x64xf32>
    %cst_296 = arith.constant dense<0.000000e+00> : vector<8xf32>
    %468 = vector.multi_reduction <add>, %467, %cst_296 [1] : vector<8x64xf32> to vector<8xf32>
    %469 = vector.shape_cast %468 : vector<8xf32> to vector<8x1xf32>
    %470 = arith.addf %464, %469 : vector<8x1xf32>
    %cst_297 = arith.constant 1.280000e+02 : f32
    %471 = vector.broadcast %cst_297 : f32 to vector<8x1xf32>
    %472 = arith.divf %470, %471 : vector<8x1xf32>
    %cst_298 = arith.constant 9.99999974E-6 : f32
    %473 = vector.broadcast %cst_298 : f32 to vector<8x1xf32>
    %474 = arith.addf %472, %473 : vector<8x1xf32>
    %475 = math.rsqrt %474 : vector<8x1xf32>
    %c1_299 = arith.constant 1 : index
    %c0_300 = arith.constant 0 : index
    %c0_301 = arith.constant 0 : index
    %476 = vector.load %arg21[%c1_299, %c0_300, %c0_301] : memref<3x8x1xf32, #tpu.memory_space<vmem>>, vector<1x8x1xf32>
    %477 = vector.shape_cast %476 : vector<1x8x1xf32> to vector<8x1xf32>
    %478 = arith.mulf %475, %477 : vector<8x1xf32>
    %479 = vector.broadcast %457 : vector<8x1xf32> to vector<8x64xf32>
    %480 = arith.subf %428, %479 : vector<8x64xf32>
    %481 = vector.broadcast %478 : vector<8x1xf32> to vector<8x64xf32>
    %482 = arith.mulf %480, %481 : vector<8x64xf32>
    %c2_302 = arith.constant 2 : index
    %c0_303 = arith.constant 0 : index
    %c0_304 = arith.constant 0 : index
    %483 = vector.load %arg21[%c2_302, %c0_303, %c0_304] : memref<3x8x1xf32, #tpu.memory_space<vmem>>, vector<1x8x1xf32>
    %484 = vector.shape_cast %483 : vector<1x8x1xf32> to vector<8x1xf32>
    %485 = vector.broadcast %484 : vector<8x1xf32> to vector<8x64xf32>
    %486 = arith.addf %482, %485 : vector<8x64xf32>
    %cst_305 = arith.constant 0.000000e+00 : f32
    %487 = vector.broadcast %cst_305 : f32 to vector<8x64xf32>
    %488 = arith.maximumf %486, %487 : vector<8x64xf32>
    %489 = vector.broadcast %457 : vector<8x1xf32> to vector<8x64xf32>
    %490 = arith.subf %448, %489 : vector<8x64xf32>
    %491 = vector.broadcast %478 : vector<8x1xf32> to vector<8x64xf32>
    %492 = arith.mulf %490, %491 : vector<8x64xf32>
    %c2_306 = arith.constant 2 : index
    %c0_307 = arith.constant 0 : index
    %c0_308 = arith.constant 0 : index
    %493 = vector.load %arg21[%c2_306, %c0_307, %c0_308] : memref<3x8x1xf32, #tpu.memory_space<vmem>>, vector<1x8x1xf32>
    %494 = vector.shape_cast %493 : vector<1x8x1xf32> to vector<8x1xf32>
    %495 = vector.broadcast %494 : vector<8x1xf32> to vector<8x64xf32>
    %496 = arith.addf %492, %495 : vector<8x64xf32>
    %cst_309 = arith.constant 0.000000e+00 : f32
    %497 = vector.broadcast %cst_309 : f32 to vector<8x64xf32>
    %498 = arith.maximumf %496, %497 : vector<8x64xf32>
    %c0_310 = arith.constant 0 : index
    %c0_311 = arith.constant 0 : index
    %c0_312 = arith.constant 0 : index
    %499 = vector.load %arg22[%c0_310, %c0_311, %c0_312] : memref<2x8x64xf32, #tpu.memory_space<vmem>>, vector<1x8x64xf32>
    %500 = vector.shape_cast %499 : vector<1x8x64xf32> to vector<8x64xf32>
    %501 = vector.shape_cast %488 : vector<8x64xf32> to vector<1x8x64xf32>
    tpu.vector_store %arg22[%c0_310, %c0_311, %c0_312], %501 {strides = array<i32>} : memref<2x8x64xf32, #tpu.memory_space<vmem>>, vector<1x8x64xf32>,
    %c1_313 = arith.constant 1 : index
    %c0_314 = arith.constant 0 : index
    %c0_315 = arith.constant 0 : index
    %502 = vector.load %arg22[%c1_313, %c0_314, %c0_315] : memref<2x8x64xf32, #tpu.memory_space<vmem>>, vector<1x8x64xf32>
    %503 = vector.shape_cast %502 : vector<1x8x64xf32> to vector<8x64xf32>
    %504 = vector.shape_cast %498 : vector<8x64xf32> to vector<1x8x64xf32>
    tpu.vector_store %arg22[%c1_313, %c0_314, %c0_315], %504 {strides = array<i32>} : memref<2x8x64xf32, #tpu.memory_space<vmem>>, vector<1x8x64xf32>,
    return
  }
}

</mosaic_0001>

<bundles_post_ra>
// kernel: mgcd_forward.1
= control target key start
LH: loop header
LB: loop body
LE: loop exit
PB: predicated region body
PF: predicated region fallthrough
CT: control target
= control target key end

     0   :  { %v6106_v0 = vmov 0.0|0.0   ;;  %vm6107_vm0 = vmmov 0   ;;  %v6108_v3 = vmov 0.0   ;;  %v6109_v5 = vmov 0   ;;  %s7098_s0 = inlined_call_operand.vmem [shape: f32[2,16,32], index: 0, kind: input, shape index: {}]   ;;  %s7099_s3 = inlined_call_operand.vmem [shape: f32[2,1], index: 3, kind: input, shape index: {}]   ;;  %s7100_s2 = inlined_call_operand.vmem [shape: f32[2,16], index: 2, kind: input, shape index: {}]   ;;  %s7101_s5 = inlined_call_operand.vmem [shape: f32[2,1], index: 5, kind: input, shape index: {}]   ;;  %s7102_s4 = inlined_call_operand.vmem [shape: f32[2,16], index: 4, kind: input, shape index: {}]   ;;  %s7103_s1 = inlined_call_operand.vmem [shape: f32[2,16,32], index: 1, kind: input, shape index: {}]   ;;  %s7104_s6 = inlined_call_operand.vmem [shape: f32[16,16], index: 6, kind: input, shape index: {}]   ;;  %s7105_s7 = inlined_call_operand.vmem [shape: f32[16,1], index: 7, kind: input, shape index: {}]   ;;  %s7106_s8 = inlined_call_operand.<no memory space> [shape: f32[1,1], index: 8, kind: input, shape index: {}]   ;;  %s7107_s9 = inlined_call_operand.vmem [shape: f32[16,16], index: 9, kind: input, shape index: {}]   ;;  %s7108_s11 = inlined_call_operand.vmem [shape: f32[3,8,1], index: 11, kind: input, shape index: {}]   ;;  %s7109_s10 = inlined_call_operand.vmem [shape: f32[2,32,64], index: 10, kind: input, shape index: {}]   ;;  %s7110_s12 = inlined_call_operand.vmem [shape: f32[2,64,64], index: 12, kind: input, shape index: {}]   ;;  %s7111_s16 = inlined_call_operand.vmem [shape: f32[3,8,1], index: 16, kind: input, shape index: {}]   ;;  %s7112_s19 = inlined_call_operand.vmem [shape: f32[3,8,1], index: 19, kind: input, shape index: {}]   ;;  %s7113_s15 = inlined_call_operand.vmem [shape: f32[3,64,64], index: 15, kind: input, shape index: {}]   ;;  %s7114_s13 = inlined_call_operand.vmem [shape: f32[1,64], index: 13, kind: input, shape index: {}]   ;;  %s7115_s14 = inlined_call_operand.vmem [shape: f32[24,8], index: 14, kind: input, shape index: {}]   ;;  %s7116_s17 = inlined_call_operand.vmem [shape: f32[16,16], index: 17, kind: input, shape index: {}]   ;;  %s7117_s18 = inlined_call_operand.vmem [shape: f32[2,32,64], index: 18, kind: input, shape index: {}]   ;;  %s7118_s21 = inlined_call_operand.vmem [shape: f32[3,8,1], index: 21, kind: input, shape index: {}]   ;;  %s7119_s20 = inlined_call_operand.vmem [shape: f32[24,8], index: 20, kind: input, shape index: {}]   ;;  %s7120_s22 = inlined_call_operand.vmem [shape: f32[2,8,64], index: 22, kind: output, shape index: {}]  }
   0x1   :  { %7124 = sst [smem:[#allocation3_spill]] %s7098_s0  ;;  %5692 = vmatprep.subr.bf16.mxu1 %v6106_v0  ;;  %5110 = vmatprep.mubr.msk.f32.mxu1 %vm6107_vm0, %v6108_v3  ;;  %vm82_vm1 = vcmask 130048   ;;  %vm376_vm2 = vcmask 1041408   ;;  %vm363_vm3 = vcmask 15360   ;;  %vm465_vm4 = vcmask 261120   ;;  %v239_v59 = vld [vmem:[%s7105_s7 + $0x8] sm:$0xff] }
   0x2   :  { %7125 = sst [smem:[#allocation4_spill]] %s7099_s3  ;;  %s7131_s29 = sld [smem:[#allocation3_spill]]  ;;  %6016 = vset.pattern.permute.xlu0 %v6109_v5  ;;  %v238_v62 = vld [vmem:[%s7105_s7] sm:$0xff]  ;;  %vm6340_vm5 = vmpackc.low %vm465_vm4, %vm465_vm4  ;;  %vm2575_vm6 = vcmask 523264   ;;  %vm2795_vm7 = vcmask 64512  }
   0x3   :  { %7126 = sst [smem:[#allocation5_spill]] %s7100_s2  ;;  %s7132_s23 = sld [smem:[#allocation4_spill]] }
   0x4   :  { %7127 = sst [smem:[#allocation6_spill]] %s7101_s5 }
   0x5   :  { %7128 = sst [smem:[#allocation7_spill]] %s7102_s4  ;;  %s7134_s2 = sld [smem:[#allocation6_spill]] }
   0x6   :  { %7129 = sst [smem:[#allocation8_spill]] %s7103_s1  ;;  %s7135_s28 = sld [smem:[#allocation7_spill]] }
   0x7   :  { %7130 = sst [smem:[#allocation9_spill]] %s7104_s6  ;;  %s7133_s6 = sld [smem:[#allocation5_spill]] }
   0x8   :  { %v6229_v1 = vld [vmem:[%s7131_s29] sm:$0xff]  ;;  %v6234_v2 = vld [vmem:[%s7131_s29 + $0x8] sm:$0xff]  ;;  %s7136_s0 = sld [smem:[#allocation8_spill]] }
   0x9   :  { %v5693_v4 = vpack.c.bf16 %v6234_v2, %v6229_v1  ;;  %v76_v6 = vld [vmem:[%s7132_s23] sm:$0x3] }
   0xa   :  { %79 = vperm.xlu0 %6016, %v76_v6  }
   0xb   :  { %5694 = vmatpush3.bf16.msra.mxu1 %v5693_v4  ;;  %v157_v8 = vld [vmem:[%s7134_s2] sm:$0x3]  ;;  %5699 = vmatprep.subr.bf16.mxu0 %v5693_v4 }
   0xc   :  { %5695 = vmatprep.subr.bf16.mxu1 %v6106_v0  ;;  %5701 = vmatpush3.bf16.msra.mxu0 %v5693_v4  ;;  %v6259_v9 = vld [vmem:[%s7135_s28] sm:$0x3] }
   0xd   :  { %v6246_v7 = vld [vmem:[%s7133_s6] sm:$0x3]  ;;  %s7137_s6 = sld [smem:[#allocation9_spill]] }
   0xe   :  { %5111 = vmatmul.mubr.msk.f32.vlgmr.msra.gmra.mrb[0].mxu1 %vm82_vm1, %v6246_v7  ;;  %160 = vperm.xlu0 %6016, %v157_v8   ;;  %v6275_v18 = vld [vmem:[%s7136_s0] sm:$0xff]  ;;  %v6280_v19 = vld [vmem:[%s7136_s0 + $0x8] sm:$0xff] }
   0xf   :  { %5697 = vmatpush3.bf16.msra.mxu1 %v5693_v4  ;;  %5117 = vmatprep.mubr.msk.f32.mxu1 %vm6107_vm0, %v6108_v3  ;;  %v5715_v21 = vpack.c.bf16 %v6280_v19, %v6275_v18 }
  0x12   :  { %5118 = vmatmul.mubr.msk.f32.vlgmr.msra.gmra.mrb[2].mxu1 %vm82_vm1, %v6259_v9 }
  0x13   :  { %v6300_v25 = vld [vmem:[%s7137_s6] sm:$0xff]  ;;  %v6305_v26 = vld [vmem:[%s7137_s6 + $0x8] sm:$0xff] }
  0x14   :  { %5124 = vmatprep.mubr.msk.f32.mxu0 %vm82_vm1, %v6300_v25 }
  0x15   :  { %5125 = vmatmul.mubr.msk.f32.vlgmr.msra.gmra.mrb[0].mxu0 %vm82_vm1, %v6305_v26 }
  0x89   :  { %v6263_v10 = vpop.permute.xlu0 %79 }
  0x8d   :  { %v6266_v14 = vpop.permute.xlu0 %160 }
  0xe1   :  { %v152_v11 = vpop.f32.mrb[0].mxu1 }
  0xe2   :  { %v5112_v12 = vpop.f32.mrb[1].mxu1  ;;  %v153_v13 = vadd.f32 %v152_v11, %v6263_v10 }
  0xe4   :  { %331 = vxpose.xlu1.b32.start.end [1/1] (short) (narrow) %v153_v13, 32 }
  0xe5   :  { %v232_v15 = vpop.f32.mrb[2].mxu1 }
  0xe6   :  { %v233_v16 = vadd.f32 %v232_v15, %v6266_v14  ;;  %v5119_v17 = vpop.f32.mrb[3].mxu1 }
  0xe8   :  { %5127 = vmatprep.subr.msk.mxu1 %vm376_vm2, %v233_v16  ;;  %v5126_v60 = vpop.f32.mrb[0].mxu0 }
  0xe9   :  { %5128 = vmatpush3.msk.msra.mxu1 %vm376_vm2, %v233_v16  ;;  %v322_v63 = vpop.f32.mrb[1].mxu0 }
  0xea   :  { %5714 = vmatprep.subr.bf16.mxu1 %v6106_v0 }
 0x102   :  { %6017 = vset.pattern.permute.xlu1 %v6109_v5 }
 0x164   :  { %v347_v20 = vpop.trf.xlu1 }
 0x165   :  { %5129 = vmatprep.mubr.msk.f32.mxu1 %vm363_vm3, %v347_v20 }
 0x168   :  { %v348_v22 = vpop.trf.xlu1 }
 0x169   :  { %5130 = vmatmul.mubr.msk.f32.vlgmr.msra.gmra.mrb[4].mxu1 %vm363_vm3, %v348_v22 }
 0x16a   :  { %5716 = vmatpush3.bf16.msra.mxu1 %v5715_v21 }
 0x16b   :  { %5717 = vmatprep.subr.bf16.mxu1 %v6106_v0 }
 0x16c   :  { %v349_v23 = vpop.trf.xlu1 }
 0x16d   :  { %5132 = vmatprep.mubr.msk.f32.mxu1 %vm363_vm3, %v349_v23  ;;  %v2194_v23 = vld [vmem:[%s7109_s10 + $0x18] sm:$0xff] }
 0x170   :  { %v350_v24 = vpop.trf.xlu1 }
 0x171   :  { %5133 = vmatmul.mubr.msk.f32.gmra.mrb[6].mxu1 %vm363_vm3, %v350_v24 }
 0x172   :  { %5150 = vmatprep.mubr.msk.f32.mxu1 %vm6107_vm0, %v6108_v3 }
 0x175   :  { %5151 = vmatmul.mubr.msk.f32.vlgmr.msra.gmra.mrb[8].mxu1 %vm82_vm1, %v6246_v7 }
 0x176   :  { %5719 = vmatpush3.bf16.msra.mxu1 %v5715_v21  ;;  %5157 = vmatprep.mubr.msk.f32.mxu1 %vm6107_vm0, %v6108_v3 }
 0x177   :  { %5721 = vmatprep.subr.bf16.mxu1 %v5715_v21 }
 0x179   :  { %5158 = vmatmul.mubr.msk.f32.vlgmr.msra.gmra.mrb[10].mxu1 %vm82_vm1, %v6259_v9 }
 0x17a   :  { %5723 = vmatpush3.bf16.msra.mxu1 %v5715_v21  ;;  %5164 = vmatprep.mubr.msk.f32.mxu1 %vm82_vm1, %v6300_v25 }
 0x17d   :  { %5165 = vmatmul.mubr.msk.f32.vlgmr.msra.gmra.mrb[12].mxu1 %vm82_vm1, %v6305_v26 }
 0x23c   :  { %v5131_v27 = vpop.f32.mrb[4].mxu1 }
 0x23d   :  { %v446_v28 = vpop.f32.mrb[5].mxu1  ;;  %v469_v29 = vsel %vm465_vm4, %v5131_v27, -inf }
 0x23e   :  { %470 = vmax.xlane.f32.xlu0 %v469_v29  ;;  %v466_v30 = vsel %vm465_vm4, %v446_v28, -inf }
 0x23f   :  { %467 = vmax.xlane.f32.xlu1 %v466_v30 }
 0x244   :  { %v5134_v31 = vpop.f32.mrb[6].mxu1 }
 0x245   :  { %v456_v32 = vpop.f32.mrb[7].mxu1  ;;  %v475_v36 = vsel %vm465_vm4, %v5134_v31, -inf }
 0x246   :  { %v472_v33 = vsel %vm465_vm4, %v456_v32, -inf }
 0x247   :  { %473 = vmax.xlane.f32.xlu0 %v472_v33 }
 0x248   :  { %v676_v34 = vpop.f32.mrb[8].mxu1 }
 0x249   :  { %v5152_v35 = vpop.f32.mrb[9].mxu1  ;;  %v677_v5 = vadd.f32 %v676_v34, %v6263_v10 }
 0x24a   :  { %v6366_v35 = vld [vmem:[%s7131_s29 + $0x10] sm:$0xff] }
 0x24b   :  { %476 = vmax.xlane.f32.xlu0 %v475_v36  ;;  %v6371_v36 = vld [vmem:[%s7131_s29 + $0x18] sm:$0xff] }
 0x24c   :  { %v6319_v37 = vpop.f32.mrb[10].mxu1 }
 0x24d   :  { %v5159_v38 = vpop.f32.mrb[11].mxu1 }
 0x24e   :  { %v5737_v38 = vpack.c.bf16 %v6371_v36, %v6366_v35 }
 0x250   :  { %v6328_v61 = vpop.f32.mrb[12].mxu1 }
 0x251   :  { %v816_v4 = vpop.f32.mrb[13].mxu1 }
 0x2cb   :  { %v471_v39 = vpop.xlane.xlu0 %470 }
 0x2cc   :  { %v479_v40 = vsub.f32 %v5131_v27, %v471_v39  ;;  %v468_v41 = vpop.xlane.xlu1 %467 }
 0x2cd   :  { %v478_v42 = vsub.f32 %v446_v28, %v468_v41 }
 0x2ce   :  { %v484_v43 = vmul.f32 1.442695, %v479_v40 }
 0x2cf   :  { %v482_v44 = vmul.f32 1.442695, %v478_v42 }
 0x2d0   :  { %6018 = vpow2.f32 %v484_v43 }
 0x2d1   :  { %6020 = vpow2.f32 %v482_v44 }
 0x2d4   :  { %v474_v45 = vpop.xlane.xlu0 %473 }
 0x2d5   :  { %v480_v46 = vsub.f32 %v456_v32, %v474_v45  ;;  %v747_v32 = vadd.f32 %v6319_v37, %v6266_v14 }
 0x2d7   :  { %v486_v47 = vmul.f32 1.442695, %v480_v46 }
 0x2d8   :  { %v477_v48 = vpop.xlane.xlu0 %476 }
 0x2d9   :  { %6022 = vpow2.f32 %v486_v47  ;;  %v481_v49 = vsub.f32 %v5134_v31, %v477_v48 }
 0x2da   :  { %v6019_v50 = vpop.eup %6018 }
 0x2db   :  { %v488_v51 = vmul.f32 1.442695, %v481_v49  ;;  %v493_v52 = vsel %vm465_vm4, %v6019_v50, 0.0  ;;  %v6021_v53 = vpop.eup %6020 }
 0x2dc   :  { %494 = vadd.xlane.f32.xlu0 %v493_v52  ;;  %v490_v54 = vsel %vm465_vm4, %v6021_v53, 0.0 }
 0x2dd   :  { %6024 = vpow2.f32 %v488_v51 }
 0x2e0   :  { %491 = vadd.xlane.f32.xlu0 %v490_v54 }
 0x2e3   :  { %v6023_v55 = vpop.eup %6022 }
 0x2e4   :  { %v496_v56 = vsel %vm465_vm4, %v6023_v55, 0.0 }
 0x2e5   :  { %497 = vadd.xlane.f32.xlu0 %v496_v56 }
 0x2e7   :  { %v6025_v57 = vpop.eup %6024 }
 0x2e8   :  { %v499_v58 = vsel %vm465_vm4, %v6025_v57, 0.0 }
 0x2e9   :  { %500 = vadd.xlane.f32.xlu1 %v499_v58 }
 0x2fa   :  { %247 = vperm.xlu1 %6017, %v239_v59  }
 0x2fb   :  { %242 = vperm.xlu0 %6016, %v238_v62  }
 0x323   :  { %825 = vxpose.xlu1.b32.start.end [1/1] (short) (narrow) %v677_v5, 32 }
 0x369   :  { %v495_v6 = vpop.xlane.xlu0 %494 }
 0x36a   :  { %6026 = vrcp.f32 %v495_v6 }
 0x36d   :  { %v492_v8 = vpop.xlane.xlu0 %491 }
 0x36e   :  { %6028 = vrcp.f32 %v492_v8 }
 0x372   :  { %v498_v11 = vpop.xlane.xlu0 %497 }
 0x373   :  { %6030 = vrcp.f32 %v498_v11 }
 0x374   :  { %v6027_v13 = vpop.eup %6026 }
 0x375   :  { %v507_v20 = vmul.f32 %v6027_v13, %v6019_v50 }
 0x376   :  { %v501_v12 = vpop.xlane.xlu1 %500 }
 0x377   :  { %6032 = vrcp.f32 %v501_v12 }
 0x378   :  { %v6029_v15 = vpop.eup %6028 }
 0x379   :  { %v506_v16 = vmul.f32 %v6029_v15, %v6021_v53 }
 0x37a   :  { %v6334_v17 = vpop.permute.xlu0 %242  ;;  %v6357_v33 = vpop.permute.xlu1 %247 }
 0x37b   :  { %v323_v21 = vadd.f32 %v322_v63, %v6334_v17  ;;  %v817_v22 = vadd.f32 %v816_v4, %v6334_v17  ;;  %v5702_v24 = vpack.c.bf16 %v507_v20, %v506_v16  ;;  %v328_v34 = vadd.f32 %v5126_v60, %v6357_v33 }
 0x37d   :  { %5143 = vmatprep.mubr.msk.f32.mxu0 %vm465_vm4, %v323_v21  ;;  %5183 = vmatprep.mubr.msk.f32.mxu1 %vm465_vm4, %v817_v22  ;;  %v6031_v27 = vpop.eup %6030 }
 0x37e   :  { %5704 = vmatprep.subr.msk.bf16.mxu0 %vm6340_vm5, %v5702_v24  ;;  %v508_v29 = vmul.f32 %v6031_v27, %v6023_v55 }
 0x37f   :  { %5707 = vmatpush3.bf16.xpose.msk.msra.mxu0 %vm6340_vm5, %v5702_v24 }
 0x381   :  { %v6033_v28 = vpop.eup %6032 }
 0x382   :  { %v509_v30 = vmul.f32 %v6033_v28, %v6025_v57 }
 0x384   :  { %v5708_v31 = vpack.c.bf16 %v509_v30, %v508_v29 }
 0x386   :  { %5710 = vmatprep.subr.msk.bf16.mxu0 %vm6340_vm5, %v5708_v31 }
 0x387   :  { %5713 = vmatpush3.bf16.xpose.msk.msra.mxu0 %vm6340_vm5, %v5708_v31 }
 0x388   :  { %5167 = vmatprep.subr.msk.mxu0 %vm376_vm2, %v747_v32 }
 0x38e   :  { %5144 = vmatmul.mubr.msk.f32.vlgmr.msra.gmra.mrb[2].mxu0 %vm465_vm4, %v328_v34 }
 0x38f   :  { %5168 = vmatpush3.msk.msra.mxu0 %vm376_vm2, %v747_v32 }
 0x390   :  { %5736 = vmatprep.subr.bf16.mxu0 %v6106_v0 }
 0x3a3   :  { %v841_v37 = vpop.trf.xlu1 }
 0x3a4   :  { %5169 = vmatprep.mubr.msk.f32.mxu0 %vm363_vm3, %v841_v37 }
 0x3a7   :  { %v842_v39 = vpop.trf.xlu1 }
 0x3a8   :  { %5170 = vmatmul.mubr.msk.f32.vlgmr.msra.gmra.mrb[4].mxu0 %vm363_vm3, %v842_v39 }
 0x3a9   :  { %5738 = vmatpush3.bf16.msra.mxu0 %v5737_v38 }
 0x3aa   :  { %5739 = vmatprep.subr.bf16.mxu0 %v6106_v0 }
 0x3ab   :  { %v843_v40 = vpop.trf.xlu1 }
 0x3ac   :  { %5172 = vmatprep.mubr.msk.f32.mxu0 %vm363_vm3, %v843_v40 }
 0x3af   :  { %v844_v41 = vpop.trf.xlu1 }
 0x3b0   :  { %5173 = vmatmul.mubr.msk.f32.gmra.mrb[6].mxu0 %vm363_vm3, %v844_v41 }
 0x3b1   :  { %5190 = vmatprep.mubr.msk.f32.mxu0 %vm6107_vm0, %v6108_v3 }
 0x3b4   :  { %5191 = vmatmul.mubr.msk.f32.vlgmr.msra.gmra.mrb[8].mxu0 %vm82_vm1, %v6246_v7 }
 0x3b5   :  { %5741 = vmatpush3.bf16.msra.mxu0 %v5737_v38  ;;  %5197 = vmatprep.mubr.msk.f32.mxu0 %vm6107_vm0, %v6108_v3 }
 0x3b6   :  { %5743 = vmatprep.subr.bf16.mxu0 %v5737_v38 }
 0x3b8   :  { %5198 = vmatmul.mubr.msk.f32.vlgmr.msra.gmra.mrb[10].mxu0 %vm82_vm1, %v6259_v9 }
 0x3b9   :  { %5745 = vmatpush3.bf16.msra.mxu0 %v5737_v38  ;;  %5204 = vmatprep.mubr.msk.f32.mxu0 %vm82_vm1, %v6300_v25 }
 0x3bc   :  { %5205 = vmatmul.mubr.msk.f32.vlgmr.msra.gmra.mrb[12].mxu0 %vm82_vm1, %v6305_v26 }
 0x461   :  { %v6392_v42 = vpop.f32.mrb[2].mxu0 }
 0x462   :  { %v6394_v43 = vpop.f32.mrb[3].mxu0 }
 0x47b   :  { %v5171_v44 = vpop.f32.mrb[4].mxu0 }
 0x47c   :  { %v938_v45 = vpop.f32.mrb[5].mxu0  ;;  %v960_v47 = vsel %vm465_vm4, %v5171_v44, -inf }
 0x47d   :  { %v957_v46 = vsel %vm465_vm4, %v938_v45, -inf }
 0x47e   :  { %958 = vmax.xlane.f32.xlu0 %v957_v46 }
 0x482   :  { %961 = vmax.xlane.f32.xlu0 %v960_v47 }
 0x483   :  { %v5174_v48 = vpop.f32.mrb[6].mxu0 }
 0x484   :  { %v948_v49 = vpop.f32.mrb[7].mxu0  ;;  %v966_v50 = vsel %vm465_vm4, %v5174_v48, -inf }
 0x485   :  { %967 = vmax.xlane.f32.xlu1 %v966_v50  ;;  %v963_v51 = vsel %vm465_vm4, %v948_v49, -inf }
 0x486   :  { %964 = vmax.xlane.f32.xlu0 %v963_v51  ;;  %v822_v51 = vadd.f32 %v6328_v61, %v6357_v33 }
 0x487   :  { %v1181_v52 = vpop.f32.mrb[8].mxu0 }
 0x488   :  { %v5192_v53 = vpop.f32.mrb[9].mxu0  ;;  %v1182_v30 = vadd.f32 %v1181_v52, %v6263_v10  ;;  %v6427_v52 = vld [vmem:[%s7136_s0 + $0x10] sm:$0xff] }
 0x489   :  { %v6432_v53 = vld [vmem:[%s7136_s0 + $0x18] sm:$0xff] }
 0x48a   :  { %v5759_v61 = vpack.c.bf16 %v6432_v53, %v6427_v52 }
 0x48b   :  { %v1251_v54 = vpop.f32.mrb[10].mxu0 }
 0x48c   :  { %v5199_v55 = vpop.f32.mrb[11].mxu0  ;;  %v1252_v50 = vadd.f32 %v1251_v54, %v6266_v14 }
 0x48f   :  { %v6400_v56 = vpop.f32.mrb[12].mxu0 }
 0x490   :  { %v1321_v57 = vpop.f32.mrb[13].mxu0 }
 0x491   :  { %v1322_v58 = vadd.f32 %v1321_v57, %v6334_v17 }
 0x493   :  { %5223 = vmatprep.mubr.msk.f32.mxu0 %vm465_vm4, %v1322_v58 }
 0x50b   :  { %v959_v59 = vpop.xlane.xlu0 %958 }
 0x50c   :  { %v969_v60 = vsub.f32 %v938_v45, %v959_v59  ;;  %v6456_v59 = vstv %s7106_s8 }
 0x50e   :  { %v973_v4 = vmul.f32 1.442695, %v969_v60 }
 0x50f   :  { %v962_v62 = vpop.xlane.xlu0 %961 }
 0x510   :  { %v970_v63 = vsub.f32 %v5171_v44, %v962_v62 }
 0x512   :  { %v975_v5 = vmul.f32 1.442695, %v970_v63  ;;  %v968_v6 = vpop.xlane.xlu1 %967 }
 0x513   :  { %v965_v8 = vpop.xlane.xlu0 %964  ;;  %v972_v12 = vsub.f32 %v5174_v48, %v968_v6 }
 0x514   :  { %6034 = vpow2.f32 %v975_v5  ;;  %v971_v11 = vsub.f32 %v948_v49, %v965_v8 }
 0x515   :  { %6036 = vpow2.f32 %v973_v4  ;;  %v979_v15 = vmul.f32 1.442695, %v972_v12 }
 0x516   :  { %v977_v13 = vmul.f32 1.442695, %v971_v11 }
 0x518   :  { %6038 = vpow2.f32 %v977_v13 }
 0x519   :  { %6040 = vpow2.f32 %v979_v15 }
 0x51e   :  { %v6035_v16 = vpop.eup %6034 }
 0x51f   :  { %v984_v20 = vsel %vm465_vm4, %v6035_v16, 0.0  ;;  %v6037_v21 = vpop.eup %6036 }
 0x520   :  { %985 = vadd.xlane.f32.xlu0 %v984_v20  ;;  %v981_v22 = vsel %vm465_vm4, %v6037_v21, 0.0 }
 0x522   :  { %v6039_v24 = vpop.eup %6038 }
 0x523   :  { %v987_v27 = vsel %vm465_vm4, %v6039_v24, 0.0  ;;  %v6041_v28 = vpop.eup %6040 }
 0x524   :  { %982 = vadd.xlane.f32.xlu0 %v981_v22  ;;  %v990_v29 = vsel %vm465_vm4, %v6041_v28, 0.0 }
 0x528   :  { %988 = vadd.xlane.f32.xlu0 %v987_v27 }
 0x52c   :  { %991 = vadd.xlane.f32.xlu0 %v990_v29 }
 0x559   :  { %1330 = vxpose.xlu0.b32.start.end [1/1] (short) (narrow) %v1182_v30, 32 }
 0x5ad   :  { %v986_v31 = vpop.xlane.xlu0 %985 }
 0x5ae   :  { %6042 = vrcp.f32 %v986_v31 }
 0x5b1   :  { %v983_v32 = vpop.xlane.xlu0 %982 }
 0x5b2   :  { %6044 = vrcp.f32 %v983_v32 }
 0x5b5   :  { %v989_v34 = vpop.xlane.xlu0 %988 }
 0x5b6   :  { %6046 = vrcp.f32 %v989_v34 }
 0x5b8   :  { %v6043_v38 = vpop.eup %6042 }
 0x5b9   :  { %v992_v37 = vpop.xlane.xlu0 %991  ;;  %v998_v41 = vmul.f32 %v6043_v38, %v6035_v16 }
 0x5ba   :  { %6048 = vrcp.f32 %v992_v37 }
 0x5bc   :  { %v6045_v39 = vpop.eup %6044 }
 0x5bd   :  { %v997_v40 = vmul.f32 %v6045_v39, %v6037_v21  ;;  %v605_v21 = vmul.f32 %v6392_v42, %v6456_v59 }
 0x5bf   :  { %v5724_v44 = vpack.c.bf16 %v998_v41, %v997_v40  ;;  %v607_v29 = vadd.f32 %v605_v21, %v6234_v2  ;;  %v1327_v21 = vadd.f32 %v6400_v56, %v6357_v33 }
 0x5c0   :  { %v6047_v45 = vpop.eup %6046 }
 0x5c1   :  { %5726 = vmatprep.subr.msk.bf16.mxu1 %vm6340_vm5, %v5724_v44  ;;  %v999_v47 = vmul.f32 %v6047_v45, %v6039_v24  ;;  %v604_v24 = vmul.f32 %v6456_v59, %v6394_v43 }
 0x5c2   :  { %5729 = vmatpush3.bf16.xpose.msk.msra.mxu1 %vm6340_vm5, %v5724_v44 }
 0x5c3   :  { %v606_v32 = vadd.f32 %v604_v24, %v6229_v1 }
 0x5c4   :  { %v6049_v46 = vpop.eup %6048 }
 0x5c5   :  { %v1000_v48 = vmul.f32 %v6049_v46, %v6041_v28 }
 0x5c7   :  { %v5730_v49 = vpack.c.bf16 %v1000_v48, %v999_v47 }
 0x5c9   :  { %5732 = vmatprep.subr.msk.bf16.mxu1 %vm6340_vm5, %v5730_v49 }
 0x5ca   :  { %5735 = vmatpush3.bf16.xpose.msk.msra.mxu1 %vm6340_vm5, %v5730_v49 }
 0x5cb   :  { %5207 = vmatprep.subr.msk.mxu1 %vm376_vm2, %v1252_v50 }
 0x5d1   :  { %5184 = vmatmul.mubr.msk.f32.vlgmr.msra.gmra.mrb[14].mxu1 %vm465_vm4, %v822_v51 }
 0x5d2   :  { %5208 = vmatpush3.msk.msra.mxu1 %vm376_vm2, %v1252_v50 }
 0x5d3   :  { %5758 = vmatprep.subr.bf16.mxu1 %v6106_v0 }
 0x5d9   :  { %v1346_v54 = vpop.trf.xlu0 }
 0x5da   :  { %5209 = vmatprep.mubr.msk.f32.mxu1 %vm363_vm3, %v1346_v54 }
 0x5dd   :  { %v1347_v55 = vpop.trf.xlu0 }
 0x5de   :  { %5210 = vmatmul.mubr.msk.f32.vlgmr.msra.gmra.mrb[16].mxu1 %vm363_vm3, %v1347_v55 }
 0x5df   :  { %5760 = vmatpush3.bf16.msra.mxu1 %v5759_v61 }
 0x5e0   :  { %5761 = vmatprep.subr.bf16.mxu1 %v6106_v0 }
 0x5e1   :  { %v1348_v57 = vpop.trf.xlu0 }
 0x5e2   :  { %5212 = vmatprep.mubr.msk.f32.mxu1 %vm363_vm3, %v1348_v57 }
 0x5e5   :  { %v1349_v58 = vpop.trf.xlu0 }
 0x5e6   :  { %5213 = vmatmul.mubr.msk.f32.gmra.mrb[18].mxu1 %vm363_vm3, %v1349_v58 }
 0x5e7   :  { %5230 = vmatprep.mubr.msk.f32.mxu1 %vm6107_vm0, %v6108_v3 }
 0x5ea   :  { %5231 = vmatmul.mubr.msk.f32.vlgmr.msra.gmra.mrb[20].mxu1 %vm82_vm1, %v6246_v7 }
 0x5eb   :  { %5763 = vmatpush3.bf16.msra.mxu1 %v5759_v61  ;;  %5237 = vmatprep.mubr.msk.f32.mxu1 %vm6107_vm0, %v6108_v3 }
 0x5ec   :  { %5765 = vmatprep.subr.bf16.mxu1 %v5759_v61 }
 0x5ee   :  { %5238 = vmatmul.mubr.msk.f32.vlgmr.msra.gmra.mrb[22].mxu1 %vm82_vm1, %v6259_v9 }
 0x5ef   :  { %5767 = vmatpush3.bf16.msra.mxu1 %v5759_v61  ;;  %5244 = vmatprep.mubr.msk.f32.mxu1 %vm82_vm1, %v6300_v25 }
 0x5f2   :  { %5245 = vmatmul.mubr.msk.f32.vlgmr.msra.gmra.mrb[24].mxu1 %vm82_vm1, %v6305_v26 }
 0x6a4   :  { %v5185_v7 = vpop.f32.mrb[14].mxu1 }
 0x6a5   :  { %v1095_v60 = vmul.f32 %v5185_v7, %v6456_v59  ;;  %v1085_v62 = vpop.f32.mrb[15].mxu1 }
 0x6a6   :  { %v1094_v63 = vmul.f32 %v1085_v62, %v6456_v59 }
 0x6a7   :  { %v1097_v9 = vadd.f32 %v1095_v60, %v6280_v19 }
 0x6a8   :  { %v1096_v4 = vadd.f32 %v1094_v63, %v6275_v18 }
 0x6a9   :  { %v4703_v5 = vmul.f32 -1.442695, %v1097_v9 }
 0x6aa   :  { %v4702_v25 = vmul.f32 -1.442695, %v1096_v4 }
 0x6ab   :  { %6050 = vpow2.f32 %v4703_v5 }
 0x6ac   :  { %6052 = vpow2.f32 %v4702_v25 }
 0x6b1   :  { %v5211_v26 = vpop.f32.mrb[16].mxu1 }
 0x6b2   :  { %v1443_v6 = vpop.f32.mrb[17].mxu1  ;;  %v1465_v8 = vsel %vm465_vm4, %v5211_v26, -inf }
 0x6b3   :  { %1466 = vmax.xlane.f32.xlu1 %v1465_v8  ;;  %v1462_v15 = vsel %vm465_vm4, %v1443_v6, -inf }
 0x6b5   :  { %v6051_v11 = vpop.eup %6050 }
 0x6b6   :  { %v6053_v12 = vpop.eup %6052  ;;  %v1105_v13 = vadd.f32 1.0, %v6051_v11 }
 0x6b7   :  { %v1104_v16 = vadd.f32 1.0, %v6053_v12  ;;  %1463 = vmax.xlane.f32.xlu1 %v1462_v15 }
 0x6b8   :  { %6054 = vrcp.f32 %v1105_v13 }
 0x6b9   :  { %6056 = vrcp.f32 %v1104_v16  ;;  %v5214_v19 = vpop.f32.mrb[18].mxu1 }
 0x6ba   :  { %v1453_v18 = vpop.f32.mrb[19].mxu1  ;;  %v1471_v28 = vsel %vm465_vm4, %v5214_v19, -inf }
 0x6bb   :  { %v1468_v20 = vsel %vm465_vm4, %v1453_v18, -inf }
 0x6bc   :  { %1469 = vmax.xlane.f32.xlu1 %v1468_v20 }
 0x6bd   :  { %v1672_v22 = vpop.f32.mrb[20].mxu1 }
 0x6be   :  { %v5232_v27 = vpop.f32.mrb[21].mxu1  ;;  %v1673_v9 = vadd.f32 %v1672_v22, %v6263_v10 }
 0x6bf   :  { %v6507_v27 = vld [vmem:[%s7107_s9] sm:$0xff] }
 0x6c0   :  { %1472 = vmax.xlane.f32.xlu1 %v1471_v28  ;;  %v6512_v28 = vld [vmem:[%s7107_s9 + $0x8] sm:$0xff] }
 0x6c1   :  { %v1742_v30 = vpop.f32.mrb[22].mxu1 }
 0x6c2   :  { %v6055_v31 = vpop.eup %6054  ;;  %v5239_v34 = vpop.f32.mrb[23].mxu1  ;;  %v1743_v20 = vadd.f32 %v1742_v30, %v6266_v14 }
 0x6c3   :  { %v6057_v37 = vpop.eup %6056  ;;  %v1111_v38 = vmul.f32 %v6055_v31, %v607_v29 }
 0x6c4   :  { %v1110_v39 = vmul.f32 %v6057_v37, %v606_v32 }
 0x6c5   :  { %v6472_v40 = vpop.f32.mrb[24].mxu1 }
 0x6c6   :  { %v1812_v42 = vpop.f32.mrb[25].mxu1  ;;  %v6474_v41 = vpack.c.bf16 %v1111_v38, %v1110_v39 }
 0x6c7   :  { %v1813_v43 = vadd.f32 %v1812_v42, %v6334_v17 }
 0x6c9   :  { %5263 = vmatprep.mubr.msk.f32.mxu1 %vm465_vm4, %v1813_v43 }
 0x740   :  { %v1467_v44 = vpop.xlane.xlu1 %1466 }
 0x741   :  { %v1475_v45 = vsub.f32 %v5211_v26, %v1467_v44 }
 0x743   :  { %v1480_v2 = vmul.f32 1.442695, %v1475_v45 }
 0x744   :  { %v1464_v46 = vpop.xlane.xlu1 %1463 }
 0x745   :  { %6058 = vpow2.f32 %v1480_v2  ;;  %v1474_v47 = vsub.f32 %v1443_v6, %v1464_v46 }
 0x747   :  { %v1478_v1 = vmul.f32 1.442695, %v1474_v47 }
 0x749   :  { %6060 = vpow2.f32 %v1478_v1  ;;  %v1470_v48 = vpop.xlane.xlu1 %1469 }
 0x74a   :  { %v1476_v49 = vsub.f32 %v1453_v18, %v1470_v48 }
 0x74c   :  { %v1482_v50 = vmul.f32 1.442695, %v1476_v49 }
 0x74d   :  { %v1473_v51 = vpop.xlane.xlu1 %1472 }
 0x74e   :  { %6062 = vpow2.f32 %v1482_v50  ;;  %v1477_v54 = vsub.f32 %v5214_v19, %v1473_v51 }
 0x74f   :  { %v6059_v61 = vpop.eup %6058 }
 0x750   :  { %v1484_v55 = vmul.f32 1.442695, %v1477_v54  ;;  %v1489_v17 = vsel %vm465_vm4, %v6059_v61, 0.0 }
 0x751   :  { %1490 = vadd.xlane.f32.xlu1 %v1489_v17 }
 0x752   :  { %6064 = vpow2.f32 %v1484_v55 }
 0x753   :  { %v6061_v57 = vpop.eup %6060 }
 0x754   :  { %v1486_v58 = vsel %vm465_vm4, %v6061_v57, 0.0 }
 0x755   :  { %1487 = vadd.xlane.f32.xlu0 %v1486_v58 }
 0x758   :  { %v6063_v7 = vpop.eup %6062 }
 0x759   :  { %v1492_v60 = vsel %vm465_vm4, %v6063_v7, 0.0 }
 0x75a   :  { %1493 = vadd.xlane.f32.xlu1 %v1492_v60 }
 0x75c   :  { %v6065_v62 = vpop.eup %6064 }
 0x75d   :  { %v1495_v63 = vsel %vm465_vm4, %v6065_v62, 0.0 }
 0x75e   :  { %1496 = vadd.xlane.f32.xlu1 %v1495_v63 }
 0x791   :  { %1821 = vxpose.xlu1.b32.start.end [1/1] (short) (narrow) %v1673_v9, 32  ;;  %v2346_v9 = vld [vmem:[%s7108_s11] sm:$0xff] }
 0x7de   :  { %v1491_v4 = vpop.xlane.xlu1 %1490 }
 0x7df   :  { %6066 = vrcp.f32 %v1491_v4  ;;  %v4742_v4 = vld [vmem:[%s7109_s10 + $0x20] sm:$0xff] }
 0x7e2   :  { %v1488_v5 = vpop.xlane.xlu0 %1487 }
 0x7e3   :  { %6068 = vrcp.f32 %v1488_v5  ;;  %v4743_v5 = vld [vmem:[%s7109_s10 + $0x28] sm:$0xff] }
 0x7e7   :  { %v1494_v25 = vpop.xlane.xlu1 %1493 }
 0x7e8   :  { %6070 = vrcp.f32 %v1494_v25  ;;  %v6541_v25 = vpack.c.bf16 %v4743_v5, %v4742_v4 }
 0x7e9   :  { %v6067_v26 = vpop.eup %6066 }
 0x7ea   :  { %v1503_v12 = vmul.f32 %v6067_v26, %v6059_v61  ;;  %v4744_v26 = vld [vmem:[%s7109_s10 + $0x30] sm:$0xff] }
 0x7eb   :  { %v1497_v6 = vpop.xlane.xlu1 %1496 }
 0x7ec   :  { %6072 = vrcp.f32 %v1497_v6  ;;  %v4745_v6 = vld [vmem:[%s7109_s10 + $0x38] sm:$0xff] }
 0x7ed   :  { %v6069_v8 = vpop.eup %6068 }
 0x7ee   :  { %v1502_v11 = vmul.f32 %v6069_v8, %v6061_v57  ;;  %v6551_v8 = vpack.c.bf16 %v4745_v6, %v4744_v26  ;;  %v4753_v26 = vld [vmem:[%s7108_s11 + $0x10] sm:$0xff] }
 0x7f0   :  { %v5746_v13 = vpack.c.bf16 %v1503_v12, %v1502_v11 }
 0x7f2   :  { %5748 = vmatprep.subr.msk.bf16.mxu0 %vm6340_vm5, %v5746_v13  ;;  %v6071_v10 = vpop.eup %6070 }
 0x7f3   :  { %5751 = vmatpush3.bf16.xpose.msk.msra.mxu0 %vm6340_vm5, %v5746_v13  ;;  %v1504_v16 = vmul.f32 %v6071_v10, %v6063_v7 }
 0x7f6   :  { %v6073_v15 = vpop.eup %6072 }
 0x7f7   :  { %v1505_v19 = vmul.f32 %v6073_v15, %v6065_v62 }
 0x7f9   :  { %v5752_v18 = vpack.c.bf16 %v1505_v19, %v1504_v16 }
 0x7fb   :  { %5754 = vmatprep.subr.msk.bf16.mxu0 %vm6340_vm5, %v5752_v18 }
 0x7fc   :  { %5757 = vmatpush3.bf16.xpose.msk.msra.mxu0 %vm6340_vm5, %v5752_v18 }
 0x7fd   :  { %5247 = vmatprep.subr.msk.mxu0 %vm376_vm2, %v1743_v20 }
 0x803   :  { %5224 = vmatmul.mubr.msk.f32.vlgmr.msra.gmra.mrb[14].mxu0 %vm465_vm4, %v1327_v21 }
 0x804   :  { %5248 = vmatpush3.msk.msra.mxu0 %vm376_vm2, %v1743_v20 }
 0x805   :  { %5781 = vmatprep.subr.bf16.mxu0 %v6474_v41 }
 0x811   :  { %v1837_v22 = vpop.trf.xlu1 }
 0x812   :  { %5249 = vmatprep.mubr.msk.f32.mxu0 %vm363_vm3, %v1837_v22 }
 0x815   :  { %v1838_v14 = vpop.trf.xlu1 }
 0x816   :  { %5250 = vmatmul.mubr.msk.f32.vlgmr.msra.gmra.mrb[16].mxu0 %vm363_vm3, %v1838_v14 }
 0x817   :  { %5783 = vmatpush3.bf16.msra.mxu0 %v6474_v41 }
 0x818   :  { %5784 = vmatprep.subr.bf16.mxu0 %v6106_v0 }
 0x819   :  { %v1839_v24 = vpop.trf.xlu1 }
 0x81a   :  { %5252 = vmatprep.mubr.msk.f32.mxu0 %vm363_vm3, %v1839_v24 }
 0x81d   :  { %v1840_v56 = vpop.trf.xlu1 }
 0x81e   :  { %5253 = vmatmul.mubr.msk.f32.gmra.mrb[18].mxu0 %vm363_vm3, %v1840_v56 }
 0x81f   :  { %5270 = vmatprep.mubr.msk.f32.mxu0 %vm82_vm1, %v6507_v27 }
 0x822   :  { %5271 = vmatmul.mubr.msk.f32.vlgmr.msra.gmra.mrb[20].mxu0 %vm82_vm1, %v6512_v28 }
 0x823   :  { %5281 = vmatprep.mubr.msk.f32.mxu0 %vm6107_vm0, %v6108_v3  ;;  %5786 = vmatpush3.bf16.msra.mxu0 %v6541_v25 }
 0x824   :  { %5787 = vmatprep.subr.bf16.mxu0 %v6106_v0 }
 0x827   :  { %5789 = vmatpush3.bf16.msra.mxu0 %v6551_v8 }
 0x8d6   :  { %v6520_v29 = vpop.f32.mrb[14].mxu0 }
 0x8d7   :  { %v6522_v30 = vpop.f32.mrb[15].mxu0 }
 0x8e9   :  { %v5251_v31 = vpop.f32.mrb[16].mxu0 }
 0x8ea   :  { %v1934_v32 = vpop.f32.mrb[17].mxu0  ;;  %v1956_v37 = vsel %vm465_vm4, %v5251_v31, -inf }
 0x8eb   :  { %v1953_v34 = vsel %vm465_vm4, %v1934_v32, -inf }
 0x8ec   :  { %1954 = vmax.xlane.f32.xlu0 %v1953_v34  ;;  %v2192_v34 = vld [vmem:[%s7109_s10 + $0x8] sm:$0xff] }
 0x8f0   :  { %1957 = vmax.xlane.f32.xlu0 %v1956_v37 }
 0x8f1   :  { %v5254_v38 = vpop.f32.mrb[18].mxu0 }
 0x8f2   :  { %v1944_v39 = vpop.f32.mrb[19].mxu0  ;;  %v1962_v42 = vsel %vm465_vm4, %v5254_v38, -inf }
 0x8f3   :  { %1963 = vmax.xlane.f32.xlu1 %v1962_v42  ;;  %v1959_v43 = vsel %vm465_vm4, %v1944_v39, -inf }
 0x8f4   :  { %1960 = vmax.xlane.f32.xlu0 %v1959_v43 }
 0x8f5   :  { %v5272_v11 = vpop.f32.mrb[20].mxu0 }
 0x8f6   :  { %v2182_v12 = vpop.f32.mrb[21].mxu0  ;;  %5282 = vmatmul.mubr.msk.f32.vlgmr.msra.gmra.mrb[22].mxu0 %vm465_vm4, %v5272_v11 }
 0x8f7   :  { %5299 = vmatprep.mubr.msk.f32.mxu0 %vm82_vm1, %v6507_v27 }
 0x979   :  { %v1955_v44 = vpop.xlane.xlu0 %1954 }
 0x97a   :  { %v1965_v45 = vsub.f32 %v1934_v32, %v1955_v44  ;;  %v2191_v32 = vld [vmem:[%s7109_s10] sm:$0xff] }
 0x97b   :  { %v5791_v37 = vpack.c.bf16 %v2192_v34, %v2191_v32  ;;  %v2624_v32 = vld [vmem:[%s7110_s12 + $0x10] sm:$0xff]  ;;  %v2625_v34 = vld [vmem:[%s7110_s12 + $0x18] sm:$0xff] }
 0x97c   :  { %v1969_v47 = vmul.f32 1.442695, %v1965_v45 }
 0x97d   :  { %v1958_v2 = vpop.xlane.xlu0 %1957 }
 0x97e   :  { %v1966_v46 = vsub.f32 %v5251_v31, %v1958_v2 }
 0x980   :  { %v1971_v1 = vmul.f32 1.442695, %v1966_v46  ;;  %v1964_v48 = vpop.xlane.xlu1 %1963 }
 0x981   :  { %v1961_v49 = vpop.xlane.xlu0 %1960  ;;  %v1968_v51 = vsub.f32 %v5254_v38, %v1964_v48  ;;  %v1818_v38 = vadd.f32 %v6472_v40, %v6357_v33 }
 0x982   :  { %6074 = vpow2.f32 %v1971_v1  ;;  %v1967_v50 = vsub.f32 %v1944_v39, %v1961_v49  ;;  %v2193_v39 = vld [vmem:[%s7109_s10 + $0x10] sm:$0xff] }
 0x983   :  { %6076 = vpow2.f32 %v1969_v47  ;;  %v1975_v61 = vmul.f32 1.442695, %v1968_v51  ;;  %v5794_v42 = vpack.c.bf16 %v2194_v23, %v2193_v39  ;;  %v4759_v39 = vld [vmem:[%s7110_s12 + $0x58] sm:$0xff]  ;;  %v5816_v23 = vpack.c.bf16 %v2625_v34, %v2624_v32  ;;  %v2889_v34 = vld [vmem:[%s7113_s15 + $0x20] sm:$0xff] }
 0x984   :  { %v1973_v54 = vmul.f32 1.442695, %v1967_v50 }
 0x986   :  { %6078 = vpow2.f32 %v1973_v54 }
 0x987   :  { %6080 = vpow2.f32 %v1975_v61 }
 0x98c   :  { %v6075_v55 = vpop.eup %6074 }
 0x98d   :  { %v1980_v17 = vsel %vm465_vm4, %v6075_v55, 0.0  ;;  %v6077_v57 = vpop.eup %6076 }
 0x98e   :  { %1981 = vadd.xlane.f32.xlu0 %v1980_v17  ;;  %v1977_v58 = vsel %vm465_vm4, %v6077_v57, 0.0 }
 0x990   :  { %v6079_v7 = vpop.eup %6078 }
 0x991   :  { %v1983_v60 = vsel %vm465_vm4, %v6079_v7, 0.0  ;;  %v6081_v62 = vpop.eup %6080 }
 0x992   :  { %1978 = vadd.xlane.f32.xlu0 %v1977_v58  ;;  %v1986_v63 = vsel %vm465_vm4, %v6081_v62, 0.0 }
 0x996   :  { %1984 = vadd.xlane.f32.xlu0 %v1983_v60 }
 0x99a   :  { %1987 = vadd.xlane.f32.xlu0 %v1986_v63 }
 0x9b0   :  { %2349 = vperm.xlu0 %6016, %v2346_v9  }
 0x9c9   :  { %v2269_v33 = vpop.f32.mrb[22].mxu0 }
 0x9ca   :  { %v5283_v40 = vpop.f32.mrb[23].mxu0 }
 0x9cb   :  { %v2627_v40 = vld [vmem:[%s7110_s12 + $0x28] sm:$0xff] }
 0xa1b   :  { %v1982_v13 = vpop.xlane.xlu0 %1981 }
 0xa1c   :  { %6082 = vrcp.f32 %v1982_v13 }
 0xa1f   :  { %v1979_v10 = vpop.xlane.xlu0 %1978 }
 0xa20   :  { %6084 = vrcp.f32 %v1979_v10 }
 0xa23   :  { %v1985_v15 = vpop.xlane.xlu0 %1984 }
 0xa24   :  { %6086 = vrcp.f32 %v1985_v15 }
 0xa26   :  { %v6083_v19 = vpop.eup %6082 }
 0xa27   :  { %v1988_v16 = vpop.xlane.xlu0 %1987  ;;  %v1994_v21 = vmul.f32 %v6083_v19, %v6075_v55 }
 0xa28   :  { %6088 = vrcp.f32 %v1988_v16 }
 0xa2a   :  { %v6085_v18 = vpop.eup %6084 }
 0xa2b   :  { %v1993_v20 = vmul.f32 %v6085_v18, %v6077_v57 }
 0xa2d   :  { %v5768_v22 = vpack.c.bf16 %v1994_v21, %v1993_v20 }
 0xa2e   :  { %v6087_v14 = vpop.eup %6086 }
 0xa2f   :  { %5770 = vmatprep.subr.msk.bf16.mxu1 %vm6340_vm5, %v5768_v22  ;;  %v1995_v56 = vmul.f32 %v6087_v14, %v6079_v7  ;;  %v2350_v54 = vpop.permute.xlu0 %2349  ;;  %v2622_v14 = vld [vmem:[%s7110_s12] sm:$0xff] }
 0xa30   :  { %5773 = vmatpush3.bf16.xpose.msk.msra.mxu1 %vm6340_vm5, %v5768_v22 }
 0xa32   :  { %v6089_v24 = vpop.eup %6088 }
 0xa33   :  { %v1996_v27 = vmul.f32 %v6089_v24, %v6081_v62  ;;  %v2623_v24 = vld [vmem:[%s7110_s12 + $0x8] sm:$0xff] }
 0xa35   :  { %v5774_v31 = vpack.c.bf16 %v1996_v27, %v1995_v56  ;;  %v4756_v56 = vld [vmem:[%s7110_s12 + $0x40] sm:$0xff]  ;;  %v5813_v27 = vpack.c.bf16 %v2623_v24, %v2622_v14 }
 0xa36   :  { %v2792_v14 = vld [vmem:[%s7115_s14] sm:$0xff] }
 0xa37   :  { %5776 = vmatprep.subr.msk.bf16.mxu1 %vm6340_vm5, %v5774_v31 }
 0xa38   :  { %5779 = vmatpush3.bf16.xpose.msk.msra.mxu1 %vm6340_vm5, %v5774_v31  ;;  %v4757_v31 = vld [vmem:[%s7110_s12 + $0x48] sm:$0xff] }
 0xa39   :  { %5790 = vmatprep.subr.bf16.mxu1 %v6106_v0 }
 0xa3f   :  { %5264 = vmatmul.mubr.msk.f32.vlgmr.msra.gmra.mrb[26].mxu1 %vm465_vm4, %v1818_v38  ;;  %v4758_v38 = vld [vmem:[%s7110_s12 + $0x50] sm:$0xff] }
 0xa40   :  { %5792 = vmatpush3.bf16.msra.mxu1 %v5791_v37  ;;  %5292 = vmatprep.mubr.msk.f32.mxu1 %vm6107_vm0, %v6108_v3 }
 0xa41   :  { %5793 = vmatprep.subr.bf16.mxu1 %v6106_v0 }
 0xa44   :  { %5795 = vmatpush3.bf16.msra.mxu1 %v5794_v42 }
 0xa45   :  { %5806 = vmatprep.subr.bf16.mxu1 %v6106_v0 }
 0xa47   :  { %5293 = vmatmul.mubr.msk.f32.vlgmr.msra.gmra.mrb[28].mxu1 %vm465_vm4, %v2182_v12 }
 0xa48   :  { %5808 = vmatpush3.bf16.msra.mxu1 %v5791_v37  ;;  %5321 = vmatprep.mubr.msk.f32.mxu1 %vm6107_vm0, %v6108_v3  ;;  %v5825_v37 = vpack.c.bf16 %v4757_v31, %v4756_v56  ;;  %v2887_v56 = vld [vmem:[%s7113_s15 + $0x10] sm:$0xff]  ;;  %v2793_v31 = vld [vmem:[%s7115_s14 + $0x8] sm:$0xff] }
 0xa49   :  { %5809 = vmatprep.subr.bf16.mxu1 %v6106_v0 }
 0xa4c   :  { %5811 = vmatpush3.bf16.msra.mxu1 %v5794_v42  ;;  %v5828_v42 = vpack.c.bf16 %v4759_v39, %v4758_v38  ;;  %v2794_v38 = vld [vmem:[%s7115_s14 + $0x10] sm:$0xff] }
 0xa4d   :  { %5824 = vmatprep.subr.bf16.mxu1 %v6106_v0 }
 0xb12   :  { %v5265_v43 = vpop.f32.mrb[26].mxu1 }
 0xb13   :  { %v2091_v44 = vmul.f32 %v5265_v43, %v6456_v59  ;;  %v2081_v45 = vpop.f32.mrb[27].mxu1  ;;  %v4760_v43 = vld [vmem:[%s7110_s12 + $0x60] sm:$0xff] }
 0xb14   :  { %v2090_v2 = vmul.f32 %v2081_v45, %v6456_v59 }
 0xb15   :  { %v2093_v46 = vadd.f32 %v6432_v53, %v2091_v44  ;;  %v1599_v53 = vmul.f32 %v6522_v30, %v6456_v59  ;;  %v4761_v44 = vld [vmem:[%s7110_s12 + $0x68] sm:$0xff] }
 0xb16   :  { %v2092_v47 = vadd.f32 %v6427_v52, %v2090_v2  ;;  %v1600_v52 = vmul.f32 %v6520_v29, %v6456_v59  ;;  %v5831_v2 = vpack.c.bf16 %v4761_v44, %v4760_v43  ;;  %v4775_v43 = vld [vmem:[%s7113_s15 + $0x78] sm:$0xff] }
 0xb17   :  { %v4739_v1 = vmul.f32 -1.442695, %v2093_v46  ;;  %v1601_v63 = vadd.f32 %v6366_v35, %v1599_v53  ;;  %v3722_v53 = vld [vmem:[%s7112_s19] sm:$0xff] }
 0xb18   :  { %v4738_v48 = vmul.f32 -1.442695, %v2092_v47  ;;  %v1602_v60 = vadd.f32 %v6371_v36, %v1600_v52 }
 0xb19   :  { %6090 = vpow2.f32 %v4739_v1 }
 0xb1a   :  { %6092 = vpow2.f32 %v4738_v48  ;;  %v2342_v49 = vpop.f32.mrb[28].mxu1 }
 0xb1b   :  { %v2343_v50 = vadd.f32 %v2342_v49, %v2269_v33  ;;  %v5294_v51 = vpop.f32.mrb[29].mxu1  ;;  %v2626_v33 = vld [vmem:[%s7110_s12 + $0x20] sm:$0xff] }
 0xb1c   :  { %v5819_v45 = vpack.c.bf16 %v2627_v40, %v2626_v33  ;;  %v4774_v40 = vld [vmem:[%s7113_s15 + $0x70] sm:$0xff] }
 0xb1d   :  { %v2352_v61 = vadd.f32 %v2350_v54, %v2343_v50  ;;  %v4752_v50 = vld [vmem:[%s7108_s11 + $0x8] sm:$0xff]  ;;  %v6805_v44 = vpack.c.bf16 %v4775_v43, %v4774_v40 }
 0xb1f   :  { %v2576_v55 = vsel %vm2575_vm6, %v2352_v61, 0.0 }
 0xb20   :  { %2577 = vadd.xlane.f32.xlu0 %v2576_v55  ;;  %v2628_v55 = vld [vmem:[%s7110_s12 + $0x30] sm:$0xff] }
 0xb23   :  { %v6091_v17 = vpop.eup %6090 }
 0xb24   :  { %v6093_v57 = vpop.eup %6092  ;;  %v2101_v58 = vadd.f32 1.0, %v6091_v17  ;;  %v2629_v17 = vld [vmem:[%s7110_s12 + $0x38] sm:$0xff] }
 0xb25   :  { %v2100_v7 = vadd.f32 1.0, %v6093_v57  ;;  %v4762_v57 = vld [vmem:[%s7110_s12 + $0x70] sm:$0xff] }
 0xb26   :  { %6094 = vrcp.f32 %v2101_v58  ;;  %v5822_v58 = vpack.c.bf16 %v2629_v17, %v2628_v55  ;;  %v4783_v55 = vld [vmem:[%s7113_s15 + $0xa8] sm:$0xff] }
 0xb27   :  { %6096 = vrcp.f32 %v2100_v7  ;;  %v4763_v7 = vld [vmem:[%s7110_s12 + $0x78] sm:$0xff] }
 0xb28   :  { %v5834_v52 = vpack.c.bf16 %v4763_v7, %v4762_v57  ;;  %v4784_v7 = vld [vmem:[%s7113_s15 + $0xb0] sm:$0xff] }
 0xb30   :  { %v6095_v62 = vpop.eup %6094 }
 0xb31   :  { %v6097_v9 = vpop.eup %6096  ;;  %v2107_v4 = vmul.f32 %v6095_v62, %v1602_v60 }
 0xb32   :  { %v2106_v5 = vmul.f32 %v6097_v9, %v1601_v63 }
 0xb34   :  { %v6604_v6 = vpack.c.bf16 %v2107_v4, %v2106_v5 }
 0xb36   :  { %5797 = vmatprep.subr.bf16.mxu0 %v6604_v6  ;;  %2614 = vperm.xlu0 %6016, %v4753_v26  }
 0xb37   :  { %5799 = vmatpush3.bf16.msra.mxu0 %v6604_v6 }
 0xb38   :  { %5800 = vmatprep.subr.bf16.mxu0 %v6106_v0 }
 0xb3a   :  { %5300 = vmatmul.mubr.msk.f32.vlgmr.msra.gmra.mrb[24].mxu0 %vm82_vm1, %v6512_v28 }
 0xb3b   :  { %5802 = vmatpush3.bf16.msra.mxu0 %v6541_v25  ;;  %5310 = vmatprep.mubr.msk.f32.mxu0 %vm6107_vm0, %v6108_v3 }
 0xb3c   :  { %5803 = vmatprep.subr.bf16.mxu0 %v6106_v0 }
 0xb3f   :  { %5805 = vmatpush3.bf16.msra.mxu0 %v6551_v8 }
 0xb40   :  { %5812 = vmatprep.subr.bf16.mxu0 %v6106_v0 }
 0xbad   :  { %v2578_v12 = vpop.xlane.xlu0 %2577 }
 0xbb5   :  { %v2615_v9 = vpop.permute.xlu0 %2614 }
 0xc0d   :  { %v5301_v35 = vpop.f32.mrb[24].mxu0 }
 0xc0e   :  { %v2419_v36 = vpop.f32.mrb[25].mxu0  ;;  %5311 = vmatmul.mubr.msk.f32.vlgmr.msra.gmra.mrb[26].mxu0 %vm465_vm4, %v5301_v35 }
 0xc0f   :  { %5322 = vmatmul.mubr.msk.f32.vlgmr.msra.gmra.mrb[30].mxu1 %vm465_vm4, %v2419_v36  ;;  %5340 = vmatprep.mubr.msk.f32.mxu0 %vm6107_vm0, %v6108_v3  ;;  %v4768_v36 = vld [vmem:[%s7113_s15 + $0x40] sm:$0xff] }
 0xc10   :  { %5359 = vmatprep.mubr.msk.f32.mxu1 %vm6107_vm0, %v6108_v3  ;;  %5814 = vmatpush3.bf16.msra.mxu0 %v5813_v27  ;;  %v2888_v27 = vld [vmem:[%s7113_s15 + $0x18] sm:$0xff] }
 0xc11   :  { %5826 = vmatpush3.bf16.msra.mxu1 %v5825_v37  ;;  %5815 = vmatprep.subr.bf16.mxu0 %v6106_v0  ;;  %v6765_v32 = vpack.c.bf16 %v2888_v27, %v2887_v56  ;;  %v2890_v37 = vld [vmem:[%s7113_s15 + $0x28] sm:$0xff]  ;;  %v3567_v56 = vld [vmem:[%s7117_s18] sm:$0xff] }
 0xc12   :  { %5827 = vmatprep.subr.bf16.mxu1 %v6106_v0  ;;  %v6781_v39 = vpack.c.bf16 %v2890_v37, %v2889_v34  ;;  %v3568_v27 = vld [vmem:[%s7117_s18 + $0x8] sm:$0xff]  ;;  %v3569_v34 = vld [vmem:[%s7117_s18 + $0x10] sm:$0xff]  ;;  %v3570_v37 = vld [vmem:[%s7117_s18 + $0x18] sm:$0xff] }
 0xc14   :  { %5817 = vmatpush3.bf16.msra.mxu0 %v5816_v23  ;;  %v2891_v23 = vld [vmem:[%s7113_s15 + $0x30] sm:$0xff] }
 0xc15   :  { %5829 = vmatpush3.bf16.msra.mxu1 %v5828_v42  ;;  %5818 = vmatprep.subr.bf16.mxu0 %v6106_v0  ;;  %v2892_v42 = vld [vmem:[%s7113_s15 + $0x38] sm:$0xff] }
 0xc16   :  { %5830 = vmatprep.subr.bf16.mxu1 %v6106_v0  ;;  %v6792_v33 = vpack.c.bf16 %v2892_v42, %v2891_v23 }
 0xc18   :  { %5820 = vmatpush3.bf16.msra.mxu0 %v5819_v45  ;;  %v4778_v45 = vld [vmem:[%s7113_s15 + $0x80] sm:$0xff] }
 0xc19   :  { %5832 = vmatpush3.bf16.msra.mxu1 %v5831_v2  ;;  %5821 = vmatprep.subr.bf16.mxu0 %v6106_v0  ;;  %v4779_v2 = vld [vmem:[%s7113_s15 + $0x88] sm:$0xff] }
 0xc1a   :  { %5833 = vmatprep.subr.bf16.mxu1 %v6106_v0 }
 0xc1c   :  { %5823 = vmatpush3.bf16.msra.mxu0 %v5822_v58 }
 0xc1d   :  { %5835 = vmatpush3.bf16.msra.mxu1 %v5834_v52  ;;  %5362 = vmatprep.subr.mxu0 %v6108_v3  ;;  %v4785_v52 = vld [vmem:[%s7113_s15 + $0xb8] sm:$0xff] }
 0xc1e   :  { %5836 = vmatprep.subr.bf16.mxu1 %v6106_v0 }
 0xce1   :  { %v2497_v59 = vpop.f32.mrb[26].mxu0 }
 0xce2   :  { %v5312_v28 = vpop.f32.mrb[27].mxu0  ;;  %v2570_v29 = vpop.f32.mrb[30].mxu1 }
 0xce3   :  { %v2571_v30 = vadd.f32 %v2570_v29, %v2497_v59  ;;  %v5323_v25 = vpop.f32.mrb[31].mxu1  ;;  %v4769_v59 = vld [vmem:[%s7113_s15 + $0x48] sm:$0xff]  ;;  %v4770_v29 = vld [vmem:[%s7113_s15 + $0x50] sm:$0xff] }
 0xce4   :  { %v6713_v28 = vpack.c.bf16 %v4769_v59, %v4768_v36 }
 0xce5   :  { %v2574_v8 = vadd.f32 %v2571_v30, %v2350_v54  ;;  %v4771_v30 = vld [vmem:[%s7113_s15 + $0x58] sm:$0xff] }
 0xce6   :  { %v6722_v25 = vpack.c.bf16 %v4771_v30, %v4770_v29  ;;  %v3485_v29 = vld [vmem:[%s7116_s17 + $0x8] sm:$0xff] }
 0xce7   :  { %v2580_v11 = vsel %vm2575_vm6, %v2574_v8, 0.0 }
 0xce8   :  { %2581 = vadd.xlane.f32.xlu1 %v2580_v11  ;;  %v4773_v11 = vld [vmem:[%s7113_s15 + $0x68] sm:$0xff] }
 0xd75   :  { %v2582_v13 = vpop.xlane.xlu1 %2581 }
 0xd76   :  { %v2583_v10 = vadd.f32 %v2582_v13, %v2578_v12  ;;  %v4754_v13 = vld [vmem:[%s7114_s13] ss:$0 sm:$0xff] }
 0xd78   :  { %v2585_v15 = vmul.f32 0.0078125, %v2583_v10  ;;  %v2885_v10 = vld [vmem:[%s7113_s15] sm:$0xff] }
 0xd7a   :  { %v6624_v16 = vsub.f32 %v2352_v61, %v2585_v15  ;;  %v6626_v19 = vsub.f32 %v2574_v8, %v2585_v15  ;;  %v3131_v61 = vld [vmem:[%s7111_s16] sm:$0xff]  ;;  %v2886_v15 = vld [vmem:[%s7113_s15 + $0x8] sm:$0xff] }
 0xd7b   :  { %v4772_v8 = vld [vmem:[%s7113_s15 + $0x60] sm:$0xff]  ;;  %v6749_v24 = vpack.c.bf16 %v2886_v15, %v2885_v10 }
 0xd7c   :  { %v2587_v18 = vmul.f32 %v6624_v16, %v6624_v16  ;;  %v2593_v21 = vmul.f32 %v6626_v19, %v6626_v19  ;;  %v6732_v12 = vpack.c.bf16 %v4773_v11, %v4772_v8  ;;  %v4799_v8 = vld [vmem:[%s7117_s18 + $0x30] sm:$0xff]  ;;  %v4800_v11 = vld [vmem:[%s7117_s18 + $0x38] sm:$0xff] }
 0xd7d   :  { %v5916_v10 = vpack.c.bf16 %v4800_v11, %v4799_v8 }
 0xd7e   :  { %v2588_v20 = vsel %vm2575_vm6, %v2587_v18, 0.0  ;;  %v2594_v22 = vsel %vm2575_vm6, %v2593_v21, 0.0 }
 0xd7f   :  { %2589 = vadd.xlane.f32.xlu1 %v2588_v20 }
 0xd83   :  { %2595 = vadd.xlane.f32.xlu1 %v2594_v22 }
 0xe0c   :  { %v2590_v46 = vpop.xlane.xlu1 %2589 }
 0xe10   :  { %v2596_v47 = vpop.xlane.xlu1 %2595 }
 0xe11   :  { %v2597_v1 = vadd.f32 %v2596_v47, %v2590_v46 }
 0xe13   :  { %v2598_v48 = vmul.f32 0.0078125, %v2597_v1  ;;  %v6818_v1 = vpack.c.bf16 %v4779_v2, %v4778_v45 }
 0xe15   :  { %v2599_v49 = vadd.f32 1e-05, %v2598_v48  ;;  %v4780_v48 = vld [vmem:[%s7113_s15 + $0x90] sm:$0xff] }
 0xe17   :  { %6098 = vrsqrt.f32 %v2599_v49  ;;  %v4781_v49 = vld [vmem:[%s7113_s15 + $0x98] sm:$0xff] }
 0xe21   :  { %v6099_v51 = vpop.eup %6098 }
 0xe22   :  { %v2603_v54 = vmul.f32 %v6099_v51, %v4752_v50 }
 0xe24   :  { %2606 = vperm.xlu1 %6017, %v2603_v54   ;;  %v6832_v54 = vpack.c.bf16 %v4781_v49, %v4780_v48 }
 0xe28   :  { %3134 = vperm.xlu1 %6017, %v3131_v61   ;;  %v4782_v61 = vld [vmem:[%s7113_s15 + $0xa0] sm:$0xff] }
 0xe29   :  { %v6847_v58 = vpack.c.bf16 %v4783_v55, %v4782_v61 }
 0xe2c   :  { %3725 = vperm.xlu1 %6017, %v3722_v53   ;;  %v6862_v53 = vpack.c.bf16 %v4785_v52, %v4784_v7 }
 0xea3   :  { %v2607_v60 = vpop.permute.xlu1 %2606 }
 0xea4   :  { %v2609_v62 = vmul.f32 %v2607_v60, %v6624_v16  ;;  %v2619_v63 = vmul.f32 %v2607_v60, %v6626_v19 }
 0xea6   :  { %v2617_v4 = vadd.f32 %v2615_v9, %v2609_v62  ;;  %v2620_v5 = vadd.f32 %v2619_v63, %v2615_v9  ;;  %v6887_v63 = vld [vmem:[%s7116_s17] sm:$0xff] }
 0xea7   :  { %v4797_v9 = vld [vmem:[%s7117_s18 + $0x20] sm:$0xff] }
 0xea8   :  { %v2618_v26 = vmax.f32 %v2617_v4, 0.0  ;;  %v2621_v35 = vmax.f32 %v2620_v5, 0.0  ;;  %v4798_v4 = vld [vmem:[%s7117_s18 + $0x28] sm:$0xff] }
 0xea9   :  { %v5913_v30 = vpack.c.bf16 %v4798_v4, %v4797_v9 }
 0xeaa   :  { %5341 = vmatmul.mubr.msk.f32.vlgmr.msra.gmra.mrb[28].mxu0 %vm2575_vm6, %v2618_v26  ;;  %5360 = vmatmul.mubr.msk.f32.vlgmr.msra.gmra.mrb[32].mxu1 %vm2575_vm6, %v2621_v35 }
 0xeab   :  { %5364 = vmatprep.mubr.msk.f32.mxu0 %vm6107_vm0, %v6108_v3  ;;  %5389 = vmatprep.mubr.msk.f32.mxu1 %vm6107_vm0, %v6108_v3 }
 0xeac   :  { %5838 = vmatpush3.bf16.msra.mxu1 %v6713_v28 }
 0xead   :  { %5839 = vmatprep.subr.bf16.mxu1 %v6106_v0 }
 0xeb0   :  { %5841 = vmatpush3.bf16.msra.mxu1 %v6722_v25 }
 0xeb1   :  { %5842 = vmatprep.subr.bf16.mxu1 %v6106_v0 }
 0xeb4   :  { %5844 = vmatpush3.bf16.msra.mxu1 %v6732_v12 }
 0xeb5   :  { %5845 = vmatprep.subr.bf16.mxu1 %v6106_v0 }
 0xeb8   :  { %5847 = vmatpush3.bf16.msra.mxu1 %v6805_v44 }
 0xeb9   :  { %5860 = vmatprep.subr.bf16.mxu1 %v6106_v0 }
 0xf7d   :  { %v2706_v16 = vpop.f32.mrb[28].mxu0  ;;  %v2788_v19 = vpop.f32.mrb[32].mxu1 }
 0xf7e   :  { %v2707_v18 = vadd.f32 %v4754_v13, %v2706_v16  ;;  %v2789_v20 = vadd.f32 %v4754_v13, %v2788_v19  ;;  %v5342_v21 = vpop.f32.mrb[29].mxu0  ;;  %v5361_v22 = vpop.f32.mrb[33].mxu1 }
 0xf7f   :  { %v3135_v21 = vpop.permute.xlu1 %3134 }
 0xf80   :  { %5363 = vmatpush3.msra.mxu0 %v2707_v18 }
 0xf81   :  { %5365 = vmatmul.mubr.msk.f32.vlgmr.msra.gmra.mrb[30].mxu0 %vm2795_vm7, %v2792_v14  ;;  %5848 = vmatprep.subr.bf16.mxu0 %v6106_v0 }
 0xf82   :  { %5367 = vmatprep.mubr.msk.f32.mxu0 %vm6107_vm0, %v6108_v3  ;;  %5850 = vmatpush3.bf16.msra.mxu0 %v6749_v24 }
 0xf83   :  { %5851 = vmatprep.subr.bf16.mxu0 %v6106_v0 }
 0xf85   :  { %5368 = vmatmul.mubr.msk.f32.gmra.mrb[32].mxu0 %vm2795_vm7, %v2793_v31 }
 0xf86   :  { %5370 = vmatprep.mubr.msk.f32.mxu0 %vm6107_vm0, %v6108_v3  ;;  %5853 = vmatpush3.bf16.msra.mxu0 %v6765_v32 }
 0xf87   :  { %5854 = vmatprep.subr.bf16.mxu0 %v6106_v0 }
 0xf89   :  { %5371 = vmatmul.mubr.msk.f32.gmra.mrb[34].mxu0 %vm2795_vm7, %v2794_v38 }
 0xf8a   :  { %5856 = vmatpush3.bf16.msra.mxu0 %v6781_v39  ;;  %5408 = vmatprep.mubr.msk.f32.mxu0 %vm6107_vm0, %v6108_v3 }
 0xf8b   :  { %5857 = vmatprep.subr.bf16.mxu0 %v6106_v0 }
 0xf8e   :  { %5859 = vmatpush3.bf16.msra.mxu0 %v6792_v33 }
 0xf8f   :  { %5430 = vmatprep.subr.mxu0 %v6108_v3 }
0x1054   :  { %v2871_v46 = vpop.f32.mrb[30].mxu0 }
0x1055   :  { %v5366_v47 = vpop.f32.mrb[31].mxu0  ;;  %5409 = vmatmul.mubr.msk.f32.vlgmr.msra.gmra.mrb[36].mxu0 %vm2575_vm6, %v2871_v46 }
0x1056   :  { %5431 = vmatpush3.msra.mxu0 %v2789_v20  ;;  %5432 = vmatprep.mubr.msk.f32.mxu0 %vm6107_vm0, %v6108_v3 }
0x1057   :  { %5872 = vmatprep.subr.bf16.mxu0 %v6106_v0 }
0x1058   :  { %v2876_v50 = vpop.f32.mrb[32].mxu0 }
0x1059   :  { %5390 = vmatmul.mubr.msk.f32.vlgmr.msra.gmra.mrb[34].mxu1 %vm2575_vm6, %v2876_v50  ;;  %5433 = vmatmul.mubr.msk.f32.vlgmr.msra.gmra.mrb[38].mxu0 %vm2795_vm7, %v2792_v14  ;;  %v5369_v51 = vpop.f32.mrb[33].mxu0 }
0x105a   :  { %5862 = vmatpush3.bf16.msra.mxu1 %v6818_v1  ;;  %5435 = vmatprep.mubr.msk.f32.mxu0 %vm6107_vm0, %v6108_v3  ;;  %v3726_v51 = vpop.permute.xlu1 %3725 }
0x105b   :  { %5863 = vmatprep.subr.bf16.mxu1 %v6106_v0  ;;  %5427 = vmatprep.mubr.msk.f32.mxu1 %vm6107_vm0, %v6108_v3 }
0x105c   :  { %v2881_v17 = vpop.f32.mrb[34].mxu0  ;;  %5874 = vmatpush3.bf16.msra.mxu0 %v6713_v28 }
0x105d   :  { %5436 = vmatmul.mubr.msk.f32.gmra.mrb[40].mxu0 %vm2795_vm7, %v2793_v31  ;;  %v5372_v57 = vpop.f32.mrb[35].mxu0  ;;  %5875 = vmatprep.subr.bf16.mxu0 %v6106_v0  ;;  %v5919_v31 = vpack.c.bf16 %v3568_v27, %v3567_v56 }
0x105e   :  { %5865 = vmatpush3.bf16.msra.mxu1 %v6832_v54  ;;  %5438 = vmatprep.mubr.msk.f32.mxu0 %vm6107_vm0, %v6108_v3 }
0x105f   :  { %5866 = vmatprep.subr.bf16.mxu1 %v6106_v0 }
0x1060   :  { %5877 = vmatpush3.bf16.msra.mxu0 %v6722_v25 }
0x1061   :  { %5439 = vmatmul.mubr.msk.f32.gmra.mrb[42].mxu0 %vm2795_vm7, %v2794_v38  ;;  %5878 = vmatprep.subr.bf16.mxu0 %v6106_v0  ;;  %v5922_v38 = vpack.c.bf16 %v3570_v37, %v3569_v34 }
0x1062   :  { %5868 = vmatpush3.bf16.msra.mxu1 %v6847_v58  ;;  %5457 = vmatprep.mubr.msk.f32.mxu0 %vm6107_vm0, %v6108_v3 }
0x1063   :  { %5869 = vmatprep.subr.bf16.mxu1 %v6106_v0 }
0x1064   :  { %5880 = vmatpush3.bf16.msra.mxu0 %v6732_v12 }
0x1065   :  { %5881 = vmatprep.subr.bf16.mxu0 %v6106_v0 }
0x1066   :  { %5871 = vmatpush3.bf16.msra.mxu1 %v6862_v53 }
0x1067   :  { %5884 = vmatprep.subr.bf16.mxu1 %v6106_v0 }
0x1068   :  { %5883 = vmatpush3.bf16.msra.mxu0 %v6805_v44 }
0x1069   :  { %5428 = vmatmul.mubr.msk.f32.vlgmr.msra.gmra.mrb[36].mxu1 %vm2575_vm6, %v2881_v17  ;;  %5896 = vmatprep.subr.bf16.mxu0 %v6106_v0 }
0x106a   :  { %5886 = vmatpush3.bf16.msra.mxu1 %v6749_v24  ;;  %5476 = vmatprep.mubr.msk.f32.mxu1 %vm6107_vm0, %v6108_v3 }
0x106b   :  { %5887 = vmatprep.subr.bf16.mxu1 %v6106_v0 }
0x106e   :  { %5889 = vmatpush3.bf16.msra.mxu1 %v6765_v32 }
0x106f   :  { %5890 = vmatprep.subr.bf16.mxu1 %v6106_v0 }
0x1072   :  { %5892 = vmatpush3.bf16.msra.mxu1 %v6781_v39 }
0x1073   :  { %5893 = vmatprep.subr.bf16.mxu1 %v6106_v0 }
0x1076   :  { %5895 = vmatpush3.bf16.msra.mxu1 %v6792_v33 }
0x1077   :  { %5909 = vmatprep.subr.bf16.mxu1 %v6474_v41 }
0x1128   :  { %v3044_v60 = vpop.f32.mrb[36].mxu0 }
0x1129   :  { %v5410_v62 = vpop.f32.mrb[37].mxu0 }
0x112c   :  { %v2971_v5 = vpop.f32.mrb[34].mxu1  ;;  %v3204_v26 = vpop.f32.mrb[38].mxu0 }
0x112d   :  { %v3045_v35 = vadd.f32 %v3044_v60, %v2971_v5  ;;  %v5434_v36 = vpop.f32.mrb[39].mxu0  ;;  %5477 = vmatmul.mubr.msk.f32.vlgmr.msra.gmra.mrb[38].mxu1 %vm2575_vm6, %v3204_v26  ;;  %v5391_v59 = vpop.f32.mrb[35].mxu1 }
0x112e   :  { %5911 = vmatpush3.bf16.msra.mxu1 %v6474_v41  ;;  %5502 = vmatprep.mubr.msk.f32.mxu1 %vm82_vm1, %v6887_v63 }
0x112f   :  { %5912 = vmatprep.subr.bf16.mxu1 %v6106_v0 }
0x1130   :  { %v3209_v13 = vpop.f32.mrb[40].mxu0 }
0x1131   :  { %5458 = vmatmul.mubr.msk.f32.vlgmr.msra.gmra.mrb[44].mxu0 %vm2575_vm6, %v3209_v13  ;;  %5503 = vmatmul.mubr.msk.f32.vlgmr.msra.gmra.mrb[40].mxu1 %vm82_vm1, %v3485_v29  ;;  %v5437_v41 = vpop.f32.mrb[41].mxu0 }
0x1132   :  { %5898 = vmatpush3.bf16.msra.mxu0 %v6818_v1  ;;  %5914 = vmatpush3.bf16.msra.mxu1 %v5913_v30 }
0x1133   :  { %5899 = vmatprep.subr.bf16.mxu0 %v6106_v0  ;;  %5915 = vmatprep.subr.bf16.mxu1 %v6106_v0 }
0x1134   :  { %v3214_v15 = vpop.f32.mrb[42].mxu0  ;;  %5495 = vmatprep.mubr.msk.f32.mxu0 %vm6107_vm0, %v6108_v3  ;;  %5513 = vmatprep.mubr.msk.f32.mxu1 %vm6107_vm0, %v6108_v3 }
0x1135   :  { %v5440_v16 = vpop.f32.mrb[43].mxu0 }
0x1136   :  { %5901 = vmatpush3.bf16.msra.mxu0 %v6832_v54  ;;  %5917 = vmatpush3.bf16.msra.mxu1 %v5916_v10 }
0x1137   :  { %5925 = vmatprep.subr.bf16.mxu1 %v6604_v6  ;;  %5902 = vmatprep.subr.bf16.mxu0 %v6106_v0 }
0x113a   :  { %5904 = vmatpush3.bf16.msra.mxu0 %v6847_v58 }
0x113b   :  { %5905 = vmatprep.subr.bf16.mxu0 %v6106_v0 }
0x113c   :  { %v3126_v19 = vpop.f32.mrb[36].mxu1 }
0x113d   :  { %v3130_v18 = vadd.f32 %v3126_v19, %v3045_v35  ;;  %v5429_v20 = vpop.f32.mrb[37].mxu1 }
0x113e   :  { %5907 = vmatpush3.bf16.msra.mxu0 %v6862_v53 }
0x113f   :  { %v3137_v22 = vadd.f32 %v3135_v21, %v3130_v18  ;;  %5918 = vmatprep.subr.bf16.mxu0 %v6106_v0 }
0x1141   :  { %5496 = vmatmul.mubr.msk.f32.vlgmr.msra.gmra.mrb[46].mxu0 %vm2575_vm6, %v3214_v15  ;;  %v3439_v14 = vsel %vm2575_vm6, %v3137_v22, 0.0 }
0x1142   :  { %3440 = vadd.xlane.f32.xlu1 %v3439_v14  ;;  %5524 = vmatprep.mubr.msk.f32.mxu0 %vm6107_vm0, %v6108_v3 }
0x1143   :  { %5920 = vmatpush3.bf16.msra.mxu0 %v5919_v31 }
0x1144   :  { %5921 = vmatprep.subr.bf16.mxu0 %v6106_v0 }
0x1147   :  { %5923 = vmatpush3.bf16.msra.mxu0 %v5922_v38 }
0x1148   :  { %5928 = vmatprep.subr.bf16.mxu0 %v6106_v0 }
0x11cf   :  { %v3441_v55 = vpop.xlane.xlu1 %3440 }
0x1200   :  { %v3360_v23 = vpop.f32.mrb[38].mxu1 }
0x1201   :  { %v5478_v42 = vpop.f32.mrb[39].mxu1 }
0x1204   :  { %v3287_v40 = vpop.f32.mrb[44].mxu0  ;;  %v5504_v43 = vpop.f32.mrb[40].mxu1 }
0x1205   :  { %v3361_v45 = vadd.f32 %v3360_v23, %v3287_v40  ;;  %v3558_v2 = vpop.f32.mrb[41].mxu1  ;;  %5514 = vmatmul.mubr.msk.f32.vlgmr.msra.gmra.mrb[42].mxu1 %vm465_vm4, %v5504_v43  ;;  %v5459_v46 = vpop.f32.mrb[45].mxu0 }
0x1206   :  { %5927 = vmatpush3.bf16.msra.mxu1 %v6604_v6  ;;  %5525 = vmatmul.mubr.msk.f32.vlgmr.msra.gmra.mrb[48].mxu0 %vm465_vm4, %v3558_v2  ;;  %v4793_v2 = vld [vmem:[%s7111_s16 + $0x8] sm:$0xff] }
0x1207   :  { %5531 = vmatprep.mubr.msk.f32.mxu1 %vm82_vm1, %v6887_v63  ;;  %5930 = vmatpush3.bf16.msra.mxu0 %v5913_v30 }
0x1208   :  { %5934 = vmatprep.subr.bf16.mxu1 %v6106_v0  ;;  %5931 = vmatprep.subr.bf16.mxu0 %v6106_v0 }
0x1209   :  { %5532 = vmatmul.mubr.msk.f32.vlgmr.msra.gmra.mrb[44].mxu1 %vm82_vm1, %v3485_v29  ;;  %5542 = vmatprep.mubr.msk.f32.mxu0 %vm6107_vm0, %v6108_v3 }
0x120a   :  { %5936 = vmatpush3.bf16.msra.mxu1 %v5919_v31  ;;  %5553 = vmatprep.mubr.msk.f32.mxu1 %vm6107_vm0, %v6108_v3 }
0x120b   :  { %5933 = vmatpush3.bf16.msra.mxu0 %v5916_v10  ;;  %5937 = vmatprep.subr.bf16.mxu1 %v6106_v0 }
0x120c   :  { %5556 = vmatprep.subr.mxu0 %v6108_v3 }
0x120e   :  { %5939 = vmatpush3.bf16.msra.mxu1 %v5922_v38 }
0x120f   :  { %5940 = vmatprep.subr.bf16.mxu1 %v6106_v0 }
0x1214   :  { %v3433_v6 = vpop.f32.mrb[46].mxu0 }
0x1215   :  { %v3437_v47 = vadd.f32 %v3433_v6, %v3361_v45  ;;  %v5497_v48 = vpop.f32.mrb[47].mxu0  ;;  %v4794_v6 = vld [vmem:[%s7111_s16 + $0x10] sm:$0xff] }
0x1217   :  { %v3438_v49 = vadd.f32 %v3437_v47, %v3135_v21  ;;  %v4808_v47 = vld [vmem:[%s7112_s19 + $0x10] sm:$0xff] }
0x1219   :  { %v3443_v50 = vsel %vm2575_vm6, %v3438_v49, 0.0 }
0x121a   :  { %3444 = vadd.xlane.f32.xlu0 %v3443_v50 }
0x12a7   :  { %v3445_v61 = vpop.xlane.xlu0 %3444 }
0x12a8   :  { %v3446_v17 = vadd.f32 %v3445_v61, %v3441_v55 }
0x12aa   :  { %v3447_v57 = vmul.f32 0.0078125, %v3446_v17 }
0x12ac   :  { %v6959_v62 = vsub.f32 %v3137_v22, %v3447_v57  ;;  %v3454_v11 = vsub.f32 %v3438_v49, %v3447_v57 }
0x12ae   :  { %v3449_v36 = vmul.f32 %v6959_v62, %v6959_v62  ;;  %v3455_v16 = vmul.f32 %v3454_v11, %v3454_v11 }
0x12b0   :  { %v3450_v59 = vsel %vm2575_vm6, %v3449_v36, 0.0  ;;  %v3456_v19 = vsel %vm2575_vm6, %v3455_v16, 0.0 }
0x12d8   :  { %v3645_v7 = vpop.f32.mrb[42].mxu1 }
0x12d9   :  { %v5515_v52 = vpop.f32.mrb[43].mxu1  ;;  %v3718_v60 = vpop.f32.mrb[48].mxu0 }
0x12da   :  { %v3719_v63 = vadd.f32 %v3718_v60, %v3645_v7  ;;  %v5526_v9 = vpop.f32.mrb[49].mxu0  ;;  %v4807_v52 = vld [vmem:[%s7112_s19 + $0x8] sm:$0xff] }
0x12db   :  { %v4312_v9 = vld [vmem:[%s7118_s21] sm:$0xff] }
0x12dc   :  { %v5533_v4 = vpop.f32.mrb[44].mxu1  ;;  %v3728_v5 = vadd.f32 %v3726_v51, %v3719_v63 }
0x12dd   :  { %v3795_v26 = vpop.f32.mrb[45].mxu1  ;;  %5543 = vmatmul.mubr.msk.f32.vlgmr.msra.gmra.mrb[50].mxu0 %vm465_vm4, %v5533_v4 }
0x12de   :  { %5554 = vmatmul.mubr.msk.f32.vlgmr.msra.gmra.mrb[46].mxu1 %vm465_vm4, %v3795_v26  ;;  %v3951_v35 = vsel %vm2575_vm6, %v3728_v5, 0.0  ;;  %5558 = vmatprep.mubr.msk.f32.mxu0 %vm6107_vm0, %v6108_v3 }
0x12df   :  { %3952 = vadd.xlane.f32.xlu1 %v3951_v35  ;;  %5942 = vmatpush3.bf16.msra.mxu1 %v6713_v28 }
0x12e0   :  { %5943 = vmatprep.subr.bf16.mxu1 %v6106_v0  ;;  %5583 = vmatprep.mubr.msk.f32.mxu1 %vm6107_vm0, %v6108_v3 }
0x12e3   :  { %3451 = vadd.xlane.f32.xlu1 %v3450_v59  ;;  %5945 = vmatpush3.bf16.msra.mxu1 %v6722_v25 }
0x12e4   :  { %5946 = vmatprep.subr.bf16.mxu1 %v6106_v0 }
0x12e7   :  { %5948 = vmatpush3.bf16.msra.mxu1 %v6732_v12 }
0x12e8   :  { %5949 = vmatprep.subr.bf16.mxu1 %v6106_v0 }
0x12eb   :  { %5951 = vmatpush3.bf16.msra.mxu1 %v6805_v44 }
0x12ec   :  { %5964 = vmatprep.subr.bf16.mxu1 %v6106_v0 }
0x136c   :  { %v3953_v18 = vpop.xlane.xlu1 %3952 }
0x1370   :  { %v3452_v14 = vpop.xlane.xlu1 %3451 }
0x13b0   :  { %v3873_v29 = vpop.f32.mrb[50].mxu0 }
0x13b1   :  { %v5544_v30 = vpop.f32.mrb[51].mxu0  ;;  %v3946_v8 = vpop.f32.mrb[46].mxu1 }
0x13b2   :  { %v3947_v13 = vadd.f32 %v3946_v8, %v3873_v29  ;;  %v5555_v41 = vpop.f32.mrb[47].mxu1 }
0x13b4   :  { %v3950_v10 = vadd.f32 %v3947_v13, %v3726_v51 }
0x13b6   :  { %v3955_v15 = vsel %vm2575_vm6, %v3950_v10, 0.0 }
0x13b7   :  { %3956 = vadd.xlane.f32.xlu0 %v3955_v15 }
0x13bb   :  { %3457 = vadd.xlane.f32.xlu0 %v3456_v19  ;;  %v4000_v19 = vld [vmem:[%s7119_s20] sm:$0xff] }
0x1444   :  { %v3957_v20 = vpop.xlane.xlu0 %3956 }
0x1445   :  { %v3958_v21 = vadd.f32 %v3957_v20, %v3953_v18  ;;  %v4002_v18 = vld [vmem:[%s7119_s20 + $0x10] sm:$0xff] }
0x1447   :  { %v3959_v22 = vmul.f32 0.0078125, %v3958_v21 }
0x1448   :  { %v3458_v56 = vpop.xlane.xlu0 %3457 }
0x1449   :  { %v3960_v27 = vsub.f32 %v3728_v5, %v3959_v22  ;;  %v3966_v31 = vsub.f32 %v3950_v10, %v3959_v22  ;;  %v3459_v34 = vadd.f32 %v3458_v56, %v3452_v14 }
0x144b   :  { %v3460_v37 = vmul.f32 0.0078125, %v3459_v34  ;;  %v3967_v38 = vmul.f32 %v3966_v31, %v3966_v31  ;;  %v3961_v23 = vmul.f32 %v3960_v27, %v3960_v27 }
0x144d   :  { %v3461_v42 = vadd.f32 1e-05, %v3460_v37  ;;  %v3968_v40 = vsel %vm2575_vm6, %v3967_v38, 0.0  ;;  %v3962_v43 = vsel %vm2575_vm6, %v3961_v23, 0.0 }
0x144e   :  { %3969 = vadd.xlane.f32.xlu0 %v3968_v40  ;;  %3963 = vadd.xlane.f32.xlu1 %v3962_v43 }
0x144f   :  { %6100 = vrsqrt.f32 %v3461_v42 }
0x1459   :  { %v6101_v45 = vpop.eup %6100 }
0x145a   :  { %v3465_v46 = vmul.f32 %v6101_v45, %v4793_v2 }
0x145f   :  { %3468 = vperm.xlu1 %6017, %v3465_v46  }
0x1463   :  { %3476 = vperm.xlu1 %6017, %v4794_v6  }
0x1467   :  { %3988 = vperm.xlu1 %6017, %v4808_v47  }
0x14db   :  { %v3964_v48 = vpop.xlane.xlu1 %3963  ;;  %v3970_v49 = vpop.xlane.xlu0 %3969 }
0x14dc   :  { %v3971_v50 = vadd.f32 %v3970_v49, %v3964_v48 }
0x14de   :  { %v3972_v51 = vmul.f32 0.0078125, %v3971_v50 }
0x14df   :  { %v3469_v61 = vpop.permute.xlu1 %3468 }
0x14e0   :  { %v3973_v55 = vadd.f32 1e-05, %v3972_v51  ;;  %v3481_v17 = vmul.f32 %v3469_v61, %v3454_v11  ;;  %v3471_v4 = vmul.f32 %v3469_v61, %v6959_v62  ;;  %v4001_v62 = vld [vmem:[%s7119_s20 + $0x8] sm:$0xff] }
0x14e2   :  { %6102 = vrsqrt.f32 %v3973_v55 }
0x14e3   :  { %v3477_v57 = vpop.permute.xlu1 %3476 }
0x14e4   :  { %v3482_v7 = vadd.f32 %v3481_v17, %v3477_v57  ;;  %v3479_v26 = vadd.f32 %v3477_v57, %v3471_v4 }
0x14e6   :  { %v3480_v8 = vmax.f32 %v3479_v26, 0.0  ;;  %v3483_v11 = vmax.f32 %v3482_v7, 0.0 }
0x14e7   :  { %v3989_v59 = vpop.permute.xlu1 %3988 }
0x14ec   :  { %v6103_v60 = vpop.eup %6102 }
0x14ed   :  { %v3977_v63 = vmul.f32 %v6103_v60, %v4807_v52 }
0x14ef   :  { %3980 = vperm.xlu0 %6016, %v3977_v63   ;;  %v4822_v63 = vld [vmem:[%s7118_s21 + $0x10] sm:$0xff] }
0x14f3   :  { %4315 = vperm.xlu0 %6016, %v4312_v9  }
0x156e   :  { %v3981_v5 = vpop.permute.xlu0 %3980 }
0x156f   :  { %v3983_v35 = vmul.f32 %v3981_v5, %v3960_v27  ;;  %v3993_v36 = vmul.f32 %v3981_v5, %v3966_v31 }
0x1571   :  { %v3991_v29 = vadd.f32 %v3989_v59, %v3983_v35  ;;  %v3994_v30 = vadd.f32 %v3993_v36, %v3989_v59  ;;  %v4821_v36 = vld [vmem:[%s7118_s21 + $0x8] sm:$0xff] }
0x1572   :  { %v4316_v43 = vpop.permute.xlu0 %4315 }
0x1573   :  { %v3992_v13 = vmax.f32 %v3991_v29, 0.0  ;;  %v3995_v41 = vmax.f32 %v3994_v30, 0.0 }
0x1575   :  { %v3996_v10 = vadd.f32 %v3992_v13, %v3480_v8  ;;  %v3998_v15 = vadd.f32 %v3995_v41, %v3483_v11 }
0x1577   :  { %v3997_v16 = vmax.f32 %v3996_v10, 0.0  ;;  %v3999_v20 = vmax.f32 %v3998_v15, 0.0 }
0x1579   :  { %5557 = vmatpush3.msra.mxu0 %v3997_v16 }
0x157a   :  { %5559 = vmatmul.mubr.msk.f32.vlgmr.msra.gmra.mrb[52].mxu0 %vm2795_vm7, %v4000_v19  ;;  %5952 = vmatprep.subr.bf16.mxu0 %v6106_v0 }
0x157b   :  { %5561 = vmatprep.mubr.msk.f32.mxu0 %vm6107_vm0, %v6108_v3  ;;  %5954 = vmatpush3.bf16.msra.mxu0 %v6749_v24 }
0x157c   :  { %5955 = vmatprep.subr.bf16.mxu0 %v6106_v0 }
0x157e   :  { %5562 = vmatmul.mubr.msk.f32.gmra.mrb[54].mxu0 %vm2795_vm7, %v4001_v62 }
0x157f   :  { %5564 = vmatprep.mubr.msk.f32.mxu0 %vm6107_vm0, %v6108_v3  ;;  %5957 = vmatpush3.bf16.msra.mxu0 %v6765_v32 }
0x1580   :  { %5958 = vmatprep.subr.bf16.mxu0 %v6106_v0 }
0x1582   :  { %5565 = vmatmul.mubr.msk.f32.gmra.mrb[56].mxu0 %vm2795_vm7, %v4002_v18 }
0x1583   :  { %5960 = vmatpush3.bf16.msra.mxu0 %v6781_v39  ;;  %5602 = vmatprep.mubr.msk.f32.mxu0 %vm6107_vm0, %v6108_v3 }
0x1584   :  { %5961 = vmatprep.subr.bf16.mxu0 %v6106_v0 }
0x1587   :  { %5963 = vmatpush3.bf16.msra.mxu0 %v6792_v33 }
0x1588   :  { %5624 = vmatprep.subr.mxu0 %v6108_v3 }
0x164d   :  { %v4078_v21 = vpop.f32.mrb[52].mxu0 }
0x164e   :  { %5603 = vmatmul.mubr.msk.f32.vlgmr.msra.gmra.mrb[58].mxu0 %vm2575_vm6, %v4078_v21  ;;  %v5560_v22 = vpop.f32.mrb[53].mxu0 }
0x164f   :  { %5625 = vmatpush3.msra.mxu0 %v3999_v20  ;;  %5626 = vmatprep.mubr.msk.f32.mxu0 %vm6107_vm0, %v6108_v3 }
0x1650   :  { %5976 = vmatprep.subr.bf16.mxu0 %v6106_v0 }
0x1651   :  { %v4083_v14 = vpop.f32.mrb[54].mxu0 }
0x1652   :  { %5584 = vmatmul.mubr.msk.f32.vlgmr.msra.gmra.mrb[48].mxu1 %vm2575_vm6, %v4083_v14  ;;  %5627 = vmatmul.mubr.msk.f32.vlgmr.msra.gmra.mrb[60].mxu0 %vm2795_vm7, %v4000_v19  ;;  %v5563_v56 = vpop.f32.mrb[55].mxu0 }
0x1653   :  { %5966 = vmatpush3.bf16.msra.mxu1 %v6818_v1  ;;  %5629 = vmatprep.mubr.msk.f32.mxu0 %vm6107_vm0, %v6108_v3 }
0x1654   :  { %5967 = vmatprep.subr.bf16.mxu1 %v6106_v0  ;;  %5621 = vmatprep.mubr.msk.f32.mxu1 %vm6107_vm0, %v6108_v3 }
0x1655   :  { %v4088_v27 = vpop.f32.mrb[56].mxu0  ;;  %5978 = vmatpush3.bf16.msra.mxu0 %v6713_v28 }
0x1656   :  { %5630 = vmatmul.mubr.msk.f32.gmra.mrb[62].mxu0 %vm2795_vm7, %v4001_v62  ;;  %5979 = vmatprep.subr.bf16.mxu0 %v6106_v0  ;;  %v5566_v31 = vpop.f32.mrb[57].mxu0 }
0x1657   :  { %5969 = vmatpush3.bf16.msra.mxu1 %v6832_v54  ;;  %5632 = vmatprep.mubr.msk.f32.mxu0 %vm6107_vm0, %v6108_v3 }
0x1658   :  { %5970 = vmatprep.subr.bf16.mxu1 %v6106_v0 }
0x1659   :  { %5981 = vmatpush3.bf16.msra.mxu0 %v6722_v25 }
0x165a   :  { %5633 = vmatmul.mubr.msk.f32.gmra.mrb[64].mxu0 %vm2795_vm7, %v4002_v18  ;;  %5982 = vmatprep.subr.bf16.mxu0 %v6106_v0 }
0x165b   :  { %5972 = vmatpush3.bf16.msra.mxu1 %v6847_v58  ;;  %5651 = vmatprep.mubr.msk.f32.mxu0 %vm6107_vm0, %v6108_v3 }
0x165c   :  { %5973 = vmatprep.subr.bf16.mxu1 %v6106_v0 }
0x165d   :  { %5984 = vmatpush3.bf16.msra.mxu0 %v6732_v12 }
0x165e   :  { %5985 = vmatprep.subr.bf16.mxu0 %v6106_v0 }
0x165f   :  { %5975 = vmatpush3.bf16.msra.mxu1 %v6862_v53 }
0x1660   :  { %5988 = vmatprep.subr.bf16.mxu1 %v6106_v0 }
0x1661   :  { %5987 = vmatpush3.bf16.msra.mxu0 %v6805_v44 }
0x1662   :  { %5622 = vmatmul.mubr.msk.f32.vlgmr.msra.gmra.mrb[50].mxu1 %vm2575_vm6, %v4088_v27  ;;  %6000 = vmatprep.subr.bf16.mxu0 %v6106_v0 }
0x1663   :  { %5990 = vmatpush3.bf16.msra.mxu1 %v6749_v24  ;;  %5670 = vmatprep.mubr.msk.f32.mxu1 %vm6107_vm0, %v6108_v3 }
0x1664   :  { %5991 = vmatprep.subr.bf16.mxu1 %v6106_v0 }
0x1667   :  { %5993 = vmatpush3.bf16.msra.mxu1 %v6765_v32 }
0x1668   :  { %5994 = vmatprep.subr.bf16.mxu1 %v6106_v0 }
0x166b   :  { %5996 = vmatpush3.bf16.msra.mxu1 %v6781_v39 }
0x166c   :  { %5997 = vmatprep.subr.bf16.mxu1 %v6106_v0 }
0x166f   :  { %5999 = vmatpush3.bf16.msra.mxu1 %v6792_v33 }
0x1721   :  { %v4234_v28 = vpop.f32.mrb[58].mxu0 }
0x1722   :  { %v5604_v25 = vpop.f32.mrb[59].mxu0 }
0x1725   :  { %v4161_v12 = vpop.f32.mrb[48].mxu1  ;;  %v4385_v44 = vpop.f32.mrb[60].mxu0 }
0x1726   :  { %v4235_v24 = vadd.f32 %v4234_v28, %v4161_v12  ;;  %v5628_v34 = vpop.f32.mrb[61].mxu0  ;;  %5671 = vmatmul.mubr.msk.f32.vlgmr.msra.gmra.mrb[52].mxu1 %vm2575_vm6, %v4385_v44  ;;  %v5585_v37 = vpop.f32.mrb[49].mxu1 }
0x1729   :  { %v4390_v38 = vpop.f32.mrb[62].mxu0 }
0x172a   :  { %5652 = vmatmul.mubr.msk.f32.vlgmr.msra.gmra.mrb[66].mxu0 %vm2575_vm6, %v4390_v38  ;;  %v5631_v32 = vpop.f32.mrb[63].mxu0 }
0x172b   :  { %6002 = vmatpush3.bf16.msra.mxu0 %v6818_v1  ;;  %5689 = vmatprep.mubr.msk.f32.mxu0 %vm6107_vm0, %v6108_v3 }
0x172c   :  { %6003 = vmatprep.subr.bf16.mxu0 %v6106_v0 }
0x172d   :  { %v4395_v39 = vpop.f32.mrb[64].mxu0 }
0x172e   :  { %v5634_v33 = vpop.f32.mrb[65].mxu0 }
0x172f   :  { %6005 = vmatpush3.bf16.msra.mxu0 %v6832_v54 }
0x1730   :  { %6006 = vmatprep.subr.bf16.mxu0 %v6106_v0 }
0x1733   :  { %6008 = vmatpush3.bf16.msra.mxu0 %v6847_v58 }
0x1734   :  { %6009 = vmatprep.subr.bf16.mxu0 %v6106_v0 }
0x1735   :  { %v4307_v23 = vpop.f32.mrb[50].mxu1 }
0x1736   :  { %v4311_v42 = vadd.f32 %v4307_v23, %v4235_v24  ;;  %v5623_v40 = vpop.f32.mrb[51].mxu1 }
0x1737   :  { %6011 = vmatpush3.bf16.msra.mxu0 %v6862_v53 }
0x1738   :  { %v4318_v1 = vadd.f32 %v4316_v43, %v4311_v42 }
0x173a   :  { %5690 = vmatmul.mubr.msk.f32.vlgmr.msra.gmra.mrb[68].mxu0 %vm2575_vm6, %v4395_v39  ;;  %v4620_v3 = vsel %vm2575_vm6, %v4318_v1, 0.0 }
0x173b   :  { %4621 = vadd.xlane.f32.xlu1 %v4620_v3 }
0x17c8   :  { %v4622_v50 = vpop.xlane.xlu1 %4621 }
0x17f9   :  { %v4541_v45 = vpop.f32.mrb[52].mxu1 }
0x17fa   :  { %v5672_v54 = vpop.f32.mrb[53].mxu1 }
0x17fd   :  { %v4468_v2 = vpop.f32.mrb[66].mxu0 }
0x17fe   :  { %v4542_v46 = vadd.f32 %v4541_v45, %v4468_v2  ;;  %v5653_v6 = vpop.f32.mrb[67].mxu0 }
0x180d   :  { %v4614_v58 = vpop.f32.mrb[68].mxu0 }
0x180e   :  { %v4618_v47 = vadd.f32 %v4614_v58, %v4542_v46  ;;  %v5691_v0 = vpop.f32.mrb[69].mxu0 }
0x1810   :  { %v4619_v48 = vadd.f32 %v4618_v47, %v4316_v43 }
0x1812   :  { %v4624_v49 = vsel %vm2575_vm6, %v4619_v48, 0.0 }
0x1813   :  { %4625 = vadd.xlane.f32.xlu0 %v4624_v49 }
0x18a0   :  { %v4626_v53 = vpop.xlane.xlu0 %4625 }
0x18a1   :  { %v4627_v51 = vadd.f32 %v4626_v53, %v4622_v50 }
0x18a3   :  { %v4628_v61 = vmul.f32 0.0078125, %v4627_v51 }
0x18a5   :  { %v4629_v55 = vsub.f32 %v4318_v1, %v4628_v61  ;;  %v4635_v17 = vsub.f32 %v4619_v48, %v4628_v61 }
0x18a7   :  { %v4636_v57 = vmul.f32 %v4635_v17, %v4635_v17  ;;  %v4630_v7 = vmul.f32 %v4629_v55, %v4629_v55 }
0x18a9   :  { %v4637_v52 = vsel %vm2575_vm6, %v4636_v57, 0.0  ;;  %v4631_v60 = vsel %vm2575_vm6, %v4630_v7, 0.0 }
0x18aa   :  { %4638 = vadd.xlane.f32.xlu1 %v4637_v52  ;;  %4632 = vadd.xlane.f32.xlu0 %v4631_v60 }
0x18bb   :  { %4657 = vperm.xlu1 %6017, %v4822_v63  }
0x1937   :  { %v4639_v9 = vpop.xlane.xlu1 %4638  ;;  %v4633_v4 = vpop.xlane.xlu0 %4632 }
0x1938   :  { %v4640_v5 = vadd.f32 %v4639_v9, %v4633_v4 }
0x193a   :  { %v4641_v26 = vmul.f32 0.0078125, %v4640_v5 }
0x193b   :  { %v4658_v13 = vpop.permute.xlu1 %4657 }
0x193c   :  { %v4642_v35 = vadd.f32 1e-05, %v4641_v26 }
0x193e   :  { %6104 = vrsqrt.f32 %v4642_v35 }
0x1948   :  { %v6105_v59 = vpop.eup %6104 }
0x1949   :  { %v4646_v29 = vmul.f32 %v6105_v59, %v4821_v36 }
0x194b   :  { %4649 = vperm.xlu0 %6016, %v4646_v29  }
0x19ca   :  { %v4650_v30 = vpop.permute.xlu0 %4649 }
0x19cb   :  { %v4652_v8 = vmul.f32 %v4650_v30, %v4629_v55  ;;  %v4662_v11 = vmul.f32 %v4650_v30, %v4635_v17 }
0x19cd   :  { %v4660_v41 = vadd.f32 %v4658_v13, %v4652_v8  ;;  %v4663_v10 = vadd.f32 %v4662_v11, %v4658_v13 }
0x19cf   :  { %v4661_v15 = vmax.f32 %v4660_v41, 0.0  ;;  %v4664_v16 = vmax.f32 %v4663_v10, 0.0 }
0x19d1   :  { %4665 = vst.msk [vmem:[%s7120_s22] sm:$0xff] %vm2575_vm6, %v4661_v15  ;;  %4823 = vst.msk [vmem:[%s7120_s22 + $0x8] sm:$0xff] %vm2575_vm6, %v4664_v16 }

</bundles_post_ra>
